<compile_context>
chip_gen: v6e
topology: v6e:2x2x1
jax: 0.10.0
libtpu: 0.0.40
codegen_flags: <defaults>
</compile_context>

<pallas_src>
import jax
import jax.numpy as jnp
from jax.experimental import pallas as pl
from jax.experimental.pallas import tpu as pltpu

IN_DIM = 32 * 32 * 3      # 3072 = 24 * 128, already lane-aligned
H1, H1P = 500, 512        # fc1 width, padded to lane multiple
H2, H2P = 100, 128        # fc2 width, padded to lane multiple
OUT_DIM = 10              # kept at 10: output store is tiny vs input/weight DMA
MAX_TB = 512              # largest batch tile (rows) per grid step


def mlp_kernel(x_ref, w1_ref, b1_ref, w2_ref, b2_ref, w3_ref, b3_ref, o_ref):
    # fc1: bf16 MXU matmul with f32 accumulation, bias + ReLU in f32
    h1 = jnp.dot(x_ref[...], w1_ref[...], preferred_element_type=jnp.float32)
    h1 = jnp.maximum(h1 + b1_ref[...], 0.0)                       # (TB, 512)
    # fc2
    h2 = jnp.dot(h1.astype(jnp.bfloat16), w2_ref[...],
                 preferred_element_type=jnp.float32)
    h2 = jnp.maximum(h2 + b2_ref[...], 0.0)                       # (TB, 128)
    # fc3
    logits = jnp.dot(h2.astype(jnp.bfloat16), w3_ref[...],
                     preferred_element_type=jnp.float32)
    logits = logits + b3_ref[...]                                 # (TB, 10)
    # log_softmax over dim=1 (numerically stable); only the 10 real classes
    m = jnp.max(logits, axis=-1, keepdims=True)
    shifted = logits - m
    lse = jnp.log(jnp.sum(jnp.exp(shifted), axis=-1, keepdims=True))
    o_ref[...] = (shifted - lse).astype(o_ref.dtype)


def _round_up(x, m):
    return (x + m - 1) // m * m


def prepare_params(params):
    """One-time weight prep: zero-pad hidden dims 500->512 / 100->128 and cast
    weights to bf16 (biases stay f32). Zero padding is numerically inert
    through matmul + ReLU, so the real outputs are unchanged."""
    w1, b1, w2, b2, w3, b3 = params
    w1p = jnp.zeros((IN_DIM, H1P), jnp.bfloat16).at[:, :H1].set(w1.astype(jnp.bfloat16))
    b1p = jnp.zeros((1, H1P), jnp.float32).at[:, :H1].set(b1)
    w2p = jnp.zeros((H1P, H2P), jnp.bfloat16).at[:H1, :H2].set(w2.astype(jnp.bfloat16))
    b2p = jnp.zeros((1, H2P), jnp.float32).at[:, :H2].set(b2)
    w3p = jnp.zeros((H2P, OUT_DIM), jnp.bfloat16).at[:H2, :].set(w3.astype(jnp.bfloat16))
    b3p = b3.astype(jnp.float32)
    return (w1p, b1p, w2p, b2p, w3p, b3p)


def net_forward(x_nchw, prepped_params):
    """x_nchw: (B, 3, 32, 32) float32 -> (B, 10) log-probabilities."""
    w1, b1, w2, b2, w3, b3 = prepped_params
    B = x_nchw.shape[0]

    # Batch tile: round up to the sublane multiple of 8, cap at MAX_TB so the
    # x double-buffer stays ~6 MiB and each grid step carries ~1 us of MXU work.
    TB = min(MAX_TB, _round_up(B, 8))
    B_pad = _round_up(B, TB)

    x_flat = x_nchw.reshape(B, IN_DIM).astype(jnp.bfloat16)
    if B_pad != B:
        x_flat = jnp.pad(x_flat, ((0, B_pad - B), (0, 0)))  # zero rows, sliced off below

    resident = lambda shape: pl.BlockSpec(shape, lambda i: (0, 0))

    flops = 2 * B_pad * (IN_DIM * H1P + H1P * H2P + H2P * OUT_DIM)
    bytes_accessed = (
        B_pad * IN_DIM * 2                                # x (bf16)
        + (IN_DIM * H1P + H1P * H2P + H2P * OUT_DIM) * 2  # weights (bf16)
        + (H1P + H2P + OUT_DIM) * 4                       # biases (f32)
        + B_pad * OUT_DIM * 4                             # output (f32)
    )

    out = pl.pallas_call(
        mlp_kernel,
        out_shape=jax.ShapeDtypeStruct((B_pad, OUT_DIM), jnp.float32),
        grid_spec=pltpu.PrefetchScalarGridSpec(
            num_scalar_prefetch=0,
            grid=(B_pad // TB,),
            in_specs=[
                pl.BlockSpec((TB, IN_DIM), lambda i: (i, 0)),      # x: tiled over batch
                resident((IN_DIM, H1P)), resident((1, H1P)),       # fc1 (resident)
                resident((H1P, H2P)),    resident((1, H2P)),       # fc2 (resident)
                resident((H2P, OUT_DIM)), resident((1, OUT_DIM)),  # fc3 (resident)
            ],
            out_specs=pl.BlockSpec((TB, OUT_DIM), lambda i: (i, 0)),
        ),
        compiler_params=pltpu.CompilerParams(
            dimension_semantics=("parallel",),   # v7x: shard batch across both TCs
            vmem_limit_bytes=32 << 20,           # ~15 MiB worst-case working set + headroom
        ),
        cost_estimate=pl.CostEstimate(
            flops=flops,
            transcendentals=B_pad * (OUT_DIM + 1),  # exp per class + log per row
            bytes_accessed=bytes_accessed,
        ),
    )(x_flat, w1, b1, w2, b2, w3, b3)
    return out[:B]


def init_params(key):
    """Deterministic init mimicking nn.Linear default (uniform +- 1/sqrt(fan_in)).
    Weights stored as (in, out) f32 masters; prepare_params pads/casts them."""
    ks = jax.random.split(key, 6)

    def linear(kw, kb, fan_in, fan_out):
        bound = 1.0 / jnp.sqrt(fan_in)
        w = jax.random.uniform(kw, (fan_in, fan_out), jnp.float32, -bound, bound)
        b = jax.random.uniform(kb, (1, fan_out), jnp.float32, -bound, bound)
        return w, b

    w1, b1 = linear(ks[0], ks[1], IN_DIM, H1)
    w2, b2 = linear(ks[2], ks[3], H1, H2)
    w3, b3 = linear(ks[4], ks[5], H2, OUT_DIM)
    return (w1, b1, w2, b2, w3, b3)


def _reference_forward(x_nchw, prepped_params):
    """Pure-JAX reference using the same padded bf16 weights (f32 accumulation)."""
    w1, b1, w2, b2, w3, b3 = prepped_params
    x = x_nchw.reshape(x_nchw.shape[0], IN_DIM).astype(jnp.bfloat16)
    h1 = jnp.maximum(jnp.dot(x, w1, preferred_element_type=jnp.float32) + b1, 0.0)
    h2 = jnp.maximum(
        jnp.dot(h1.astype(jnp.bfloat16), w2, preferred_element_type=jnp.float32) + b2, 0.0)
    logits = jnp.dot(h2.astype(jnp.bfloat16), w3,
                     preferred_element_type=jnp.float32) + b3
    return jax.nn.log_softmax(logits, axis=-1)


if __name__ == "__main__":
    key = jax.random.PRNGKey(0)
    k_x, k_p = jax.random.split(key)
    B = 2
    x = jax.random.normal(k_x, (B, 3, 32, 32), dtype=jnp.float32)
    params = init_params(k_p)
    prepped = prepare_params(params)   # one-time: pad + bf16 cast, reuse across calls

    out = net_forward(x, prepped)
    out = jax.block_until_ready(out)

    # sanity 1: log_softmax rows must sum (in prob space) to ~1
    probs_sum = jnp.sum(jnp.exp(out), axis=-1)
    assert out.shape == (B, 10)
    assert bool(jnp.all(jnp.abs(probs_sum - 1.0) < 1e-4))

    # sanity 2: matches a pure-JAX reference built from the same bf16 weights
    ref = _reference_forward(x, prepped)
    assert bool(jnp.all(jnp.abs(out - ref) < 5e-2))

    print("KERNEL_OK")
</pallas_src>

<mosaic_0001>
module attributes {stable_mosaic.version = 11 : i64} {
  func.func @mlp_kernel(%arg0: i32, %arg1: memref<8x3072xbf16, #tpu.memory_space<vmem>>, %arg2: memref<3072x512xbf16, #tpu.memory_space<vmem>>, %arg3: memref<1x512xf32, #tpu.memory_space<vmem>>, %arg4: memref<512x128xbf16, #tpu.memory_space<vmem>>, %arg5: memref<1x128xf32, #tpu.memory_space<vmem>>, %arg6: memref<128x10xbf16, #tpu.memory_space<vmem>>, %arg7: memref<1x10xf32, #tpu.memory_space<vmem>>, %arg8: memref<8x10xf32, #tpu.memory_space<vmem>>) attributes {dimension_semantics = [#tpu.dimension_semantics<parallel>], iteration_bounds = array<i64: 1>, scalar_prefetch = 0 : i64, scratch_operands = 0 : i64, tpu.core_type = #tpu.core_type<tc>, window_params = [{transform_indices = @transform_0, window_bounds = array<i64: 8, 3072>}, {pipeline_mode = #tpu.pipeline_mode<synchronous>, transform_indices = @transform_1, window_bounds = array<i64: 3072, 512>}, {pipeline_mode = #tpu.pipeline_mode<synchronous>, transform_indices = @transform_2, window_bounds = array<i64: 1, 512>}, {pipeline_mode = #tpu.pipeline_mode<synchronous>, transform_indices = @transform_3, window_bounds = array<i64: 512, 128>}, {pipeline_mode = #tpu.pipeline_mode<synchronous>, transform_indices = @transform_4, window_bounds = array<i64: 1, 128>}, {pipeline_mode = #tpu.pipeline_mode<synchronous>, transform_indices = @transform_5, window_bounds = array<i64: 128, 10>}, {pipeline_mode = #tpu.pipeline_mode<synchronous>, transform_indices = @transform_6, window_bounds = array<i64: 1, 10>}, {transform_indices = @transform_7, window_bounds = array<i64: 8, 10>}]} {
    %c0 = arith.constant 0 : index
    %c0_0 = arith.constant 0 : index
    %0 = vector.load %arg1[%c0, %c0_0] : memref<8x3072xbf16, #tpu.memory_space<vmem>>, vector<8x3072xbf16>
    %c0_1 = arith.constant 0 : index
    %c0_2 = arith.constant 0 : index
    %1 = vector.load %arg2[%c0_1, %c0_2] : memref<3072x512xbf16, #tpu.memory_space<vmem>>, vector<3072x512xbf16>
    %cst = arith.constant dense<0.000000e+00> : vector<8x512xf32>
    %2 = tpu.matmul %0, %1, %cst {dimension_numbers = #tpu.dot_dimension_numbers<[1], [0], [0], [1], [0, 0, 1, 1], [], []>} : vector<8x3072xbf16>, vector<3072x512xbf16>, vector<8x512xf32> -> vector<8x512xf32>
    %c0_3 = arith.constant 0 : index
    %c0_4 = arith.constant 0 : index
    %3 = vector.load %arg3[%c0_3, %c0_4] : memref<1x512xf32, #tpu.memory_space<vmem>>, vector<1x512xf32>
    %4 = vector.broadcast %3 : vector<1x512xf32> to vector<8x512xf32>
    %5 = arith.addf %2, %4 : vector<8x512xf32>
    %cst_5 = arith.constant 0.000000e+00 : f32
    %6 = vector.broadcast %cst_5 : f32 to vector<8x512xf32>
    %7 = arith.maximumf %5, %6 : vector<8x512xf32>
    %8 = arith.truncf %7 : vector<8x512xf32> to vector<8x512xbf16>
    %c0_6 = arith.constant 0 : index
    %c0_7 = arith.constant 0 : index
    %9 = vector.load %arg4[%c0_6, %c0_7] : memref<512x128xbf16, #tpu.memory_space<vmem>>, vector<512x128xbf16>
    %cst_8 = arith.constant dense<0.000000e+00> : vector<8x128xf32>
    %10 = tpu.matmul %8, %9, %cst_8 {dimension_numbers = #tpu.dot_dimension_numbers<[1], [0], [0], [1], [0, 0, 1, 1], [], []>} : vector<8x512xbf16>, vector<512x128xbf16>, vector<8x128xf32> -> vector<8x128xf32>
    %c0_9 = arith.constant 0 : index
    %c0_10 = arith.constant 0 : index
    %11 = vector.load %arg5[%c0_9, %c0_10] : memref<1x128xf32, #tpu.memory_space<vmem>>, vector<1x128xf32>
    %12 = vector.broadcast %11 : vector<1x128xf32> to vector<8x128xf32>
    %13 = arith.addf %10, %12 : vector<8x128xf32>
    %cst_11 = arith.constant 0.000000e+00 : f32
    %14 = vector.broadcast %cst_11 : f32 to vector<8x128xf32>
    %15 = arith.maximumf %13, %14 : vector<8x128xf32>
    %16 = arith.truncf %15 : vector<8x128xf32> to vector<8x128xbf16>
    %c0_12 = arith.constant 0 : index
    %c0_13 = arith.constant 0 : index
    %17 = vector.load %arg6[%c0_12, %c0_13] : memref<128x10xbf16, #tpu.memory_space<vmem>>, vector<128x10xbf16>
    %cst_14 = arith.constant dense<0.000000e+00> : vector<8x10xf32>
    %18 = tpu.matmul %16, %17, %cst_14 {dimension_numbers = #tpu.dot_dimension_numbers<[1], [0], [0], [1], [0, 0, 1, 1], [], []>} : vector<8x128xbf16>, vector<128x10xbf16>, vector<8x10xf32> -> vector<8x10xf32>
    %c0_15 = arith.constant 0 : index
    %c0_16 = arith.constant 0 : index
    %19 = vector.load %arg7[%c0_15, %c0_16] : memref<1x10xf32, #tpu.memory_space<vmem>>, vector<1x10xf32>
    %20 = vector.broadcast %19 : vector<1x10xf32> to vector<8x10xf32>
    %21 = arith.addf %18, %20 : vector<8x10xf32>
    %cst_17 = arith.constant dense<0xFF800000> : vector<8xf32>
    %22 = vector.multi_reduction <maximumf>, %21, %cst_17 [1] : vector<8x10xf32> to vector<8xf32>
    %23 = vector.shape_cast %22 : vector<8xf32> to vector<8x1xf32>
    %24 = vector.broadcast %23 : vector<8x1xf32> to vector<8x10xf32>
    %25 = arith.subf %21, %24 : vector<8x10xf32>
    %26 = math.exp %25 : vector<8x10xf32>
    %cst_18 = arith.constant dense<0.000000e+00> : vector<8xf32>
    %27 = vector.multi_reduction <add>, %26, %cst_18 [1] : vector<8x10xf32> to vector<8xf32>
    %28 = vector.shape_cast %27 : vector<8xf32> to vector<8x1xf32>
    %29 = math.log %28 : vector<8x1xf32>
    %30 = vector.broadcast %29 : vector<8x1xf32> to vector<8x10xf32>
    %31 = arith.subf %25, %30 : vector<8x10xf32>
    %c0_19 = arith.constant 0 : index
    %c0_20 = arith.constant 0 : index
    %32 = vector.load %arg8[%c0_19, %c0_20] : memref<8x10xf32, #tpu.memory_space<vmem>>, vector<8x10xf32>
    tpu.vector_store %arg8[%c0_19, %c0_20], %31 {strides = array<i32>} : memref<8x10xf32, #tpu.memory_space<vmem>>, vector<8x10xf32>,
    return
  }
  func.func @transform_0(%arg0: i32) -> (i32, i32) {
    %c0_i32 = arith.constant 0 : i32
    %c0_i32_0 = arith.constant 0 : i32
    return %arg0, %c0_i32 : i32, i32
  }
  func.func @transform_1(%arg0: i32) -> (i32, i32) {
    %c0_i32 = arith.constant 0 : i32
    %c0_i32_0 = arith.constant 0 : i32
    %c0_i32_1 = arith.constant 0 : i32
    return %c0_i32, %c0_i32_0 : i32, i32
  }
  func.func @transform_2(%arg0: i32) -> (i32, i32) {
    %c0_i32 = arith.constant 0 : i32
    %c0_i32_0 = arith.constant 0 : i32
    %c0_i32_1 = arith.constant 0 : i32
    return %c0_i32, %c0_i32_0 : i32, i32
  }
  func.func @transform_3(%arg0: i32) -> (i32, i32) {
    %c0_i32 = arith.constant 0 : i32
    %c0_i32_0 = arith.constant 0 : i32
    %c0_i32_1 = arith.constant 0 : i32
    return %c0_i32, %c0_i32_0 : i32, i32
  }
  func.func @transform_4(%arg0: i32) -> (i32, i32) {
    %c0_i32 = arith.constant 0 : i32
    %c0_i32_0 = arith.constant 0 : i32
    %c0_i32_1 = arith.constant 0 : i32
    return %c0_i32, %c0_i32_0 : i32, i32
  }
  func.func @transform_5(%arg0: i32) -> (i32, i32) {
    %c0_i32 = arith.constant 0 : i32
    %c0_i32_0 = arith.constant 0 : i32
    %c0_i32_1 = arith.constant 0 : i32
    return %c0_i32, %c0_i32_0 : i32, i32
  }
  func.func @transform_6(%arg0: i32) -> (i32, i32) {
    %c0_i32 = arith.constant 0 : i32
    %c0_i32_0 = arith.constant 0 : i32
    %c0_i32_1 = arith.constant 0 : i32
    return %c0_i32, %c0_i32_0 : i32, i32
  }
  func.func @transform_7(%arg0: i32) -> (i32, i32) {
    %c0_i32 = arith.constant 0 : i32
    %c0_i32_0 = arith.constant 0 : i32
    return %arg0, %c0_i32 : i32, i32
  }
}

</mosaic_0001>

<bundles_post_ra>
// kernel: tpu_custom_call.1
= control target key start
LH: loop header
LB: loop body
LE: loop exit
PB: predicated region body
PF: predicated region fallthrough
CT: control target
= control target key end

     0   :  { %12 = vsyncpa [#allocation3], 0  ;;  %s8910_s0 = inlined_call_operand.hbm [shape: bf16[8,3072], index: 0, kind: input, shape index: {}]   ;;  %s8911_s1 = inlined_call_operand.hbm [shape: bf16[3072,512], index: 1, kind: input, shape index: {}]   ;;  %s8912_s2 = inlined_call_operand.hbm [shape: f32[1,512], index: 2, kind: input, shape index: {}]   ;;  %s8913_s3 = inlined_call_operand.hbm [shape: bf16[512,128], index: 3, kind: input, shape index: {}]   ;;  %s8914_s4 = inlined_call_operand.hbm [shape: f32[1,128], index: 4, kind: input, shape index: {}]   ;;  %s8915_s5 = inlined_call_operand.vmem [shape: bf16[128,10], index: 5, kind: input, shape index: {}]   ;;  %s8916_s6 = inlined_call_operand.hbm [shape: f32[1,10], index: 6, kind: input, shape index: {}]   ;;  %s8917_s7 = inlined_call_operand.hbm [shape: f32[8,10], index: 7, kind: output, shape index: {}]  }
   0x1   :  { %13 = vsyncpa [#allocation6], 0 }
   0x2   :  { %14 = vsyncpa [#allocation9], 0 }
   0x3   :  { %15 = vsyncpa [#allocation12], 0 }
   0x4   :  { %16 = vsyncpa [#allocation4], 0  ;;  %s8599_s24 = smov [#allocation5]  }
   0x5   :  { %s32_s25 = sshll.u32 %s8599_s24, 4  ;;  %s33_s25 = int_to_ptr.vmem [resolvable:$true] %s32_s25 }
   0x6   :  { %s8457_s26 = scalar_lea.vmem %s33_s25, 98304  ;;  %p8462_p1 = scmp.lt.s32.totalorder %s33_s25, %s33_s25 }
   0x7   :  { %p8458_p0 = scmp.ne.s32.totalorder %s33_s25, %s8457_s26  ;;  %p8463_p2 = scmp.lt.s32.totalorder %s8457_s26, %s8457_s26 }
   0x9   :  { %p8464_p3 = por %p8463_p2, %p8462_p1 }
   0xb   :  { %p8465_p4 = pnand %p8464_p3, %p8458_p0 }
   0xd   :  { %8468 = shalt.err (!%p8465_p4)
}
   0xe   :  { %s8600_s27 = smov 256   ;;  %s8601_s28 = smov 16  }
   0xf   :  { %38 = dma.hbm_to_vmem [thread:$0]  %s8911_s1, 98304, %s33_s25, [#allocation6], %s8600_s27, %s8600_s27, %s8601_s28  }
  0x10   :  { %s8602_s8 = smov [#allocation8]  }
  0x11   :  { %s54_s9 = sshll.u32 %s8602_s8, 4  ;;  %s55_s9 = int_to_ptr.vmem [resolvable:$true] %s54_s9 }
  0x12   :  { %s8477_s10 = scalar_lea.vmem %s55_s9, 4096  ;;  %p8482_p6 = scmp.lt.s32.totalorder %s55_s9, %s55_s9 }
  0x13   :  { %p8478_p5 = scmp.ne.s32.totalorder %s55_s9, %s8477_s10  ;;  %p8483_p7 = scmp.lt.s32.totalorder %s8477_s10, %s8477_s10 }
  0x15   :  { %p8484_p8 = por %p8483_p7, %p8482_p6 }
  0x17   :  { %p8485_p9 = pnand %p8484_p8, %p8478_p5 }
  0x19   :  { %8488 = shalt.err (!%p8485_p9)
}
  0x1a   :  { %s8603_s11 = smov 64   ;;  %s8604_s12 = smov 4  }
  0x1b   :  { %60 = dma.hbm_to_vmem [thread:$0]  %s8913_s3, 4096, %s55_s9, [#allocation9], %s8603_s11, %s8603_s11, %s8604_s12  }
  0x1c   :  { %s8605_s15 = smov [#allocation2]   ;;  %s8606_s17 = smov [#allocation7]  }
  0x1d   :  { %s23_s16 = sshll.u32 %s8605_s15, 4  ;;  %s45_s1 = sshll.u32 %s8606_s17, 4  ;;  %s24_s16 = int_to_ptr.vmem [resolvable:$true] %s23_s16  ;;  %s46_s1 = int_to_ptr.vmem [resolvable:$true] %s45_s1 }
  0x1e   :  { %s8497_s18 = scalar_lea.vmem %s24_s16, 1536  ;;  %p8502_p11 = scmp.lt.s32.totalorder %s24_s16, %s24_s16 }
  0x1f   :  { %p8498_p10 = scmp.ne.s32.totalorder %s24_s16, %s8497_s18  ;;  %p8503_p12 = scmp.lt.s32.totalorder %s8497_s18, %s8497_s18 }
  0x21   :  { %p8504_p13 = por %p8503_p12, %p8502_p11 }
  0x23   :  { %p8505_p0 = pnand %p8504_p13, %p8498_p10 }
  0x25   :  { %8508 = shalt.err (!%p8505_p0)
}
  0x26   :  { %26 = dma.hbm_to_vmem [thread:$0]  %s8910_s0, 1536, %s24_s16, [#allocation3]  }
  0x27   :  { %s8517_s21 = scalar_lea.vmem %s46_s1, 64  ;;  %p8522_p2 = scmp.lt.s32.totalorder %s46_s1, %s46_s1 }
  0x28   :  { %p8518_p1 = scmp.ne.s32.totalorder %s46_s1, %s8517_s21  ;;  %p8523_p3 = scmp.lt.s32.totalorder %s8517_s21, %s8517_s21 }
  0x2a   :  { %p8524_p4 = por %p8523_p3, %p8522_p2 }
  0x2c   :  { %p8525_p5 = pnand %p8524_p4, %p8518_p1 }
  0x2e   :  { %8528 = shalt.err (!%p8525_p5)
}
  0x2f   :  { %48 = dma.hbm_to_vmem [thread:$0]  %s8912_s2, 64, %s46_s1, [#allocation6]  }
  0x30   :  { %s8607_s23 = smov [#allocation10]   ;;  %s8608_s25 = smov [#allocation11]  }
  0x31   :  { %s67_s24 = sshll.u32 %s8607_s23, 4  ;;  %s79_s26 = sshll.u32 %s8608_s25, 4  ;;  %s68_s24 = int_to_ptr.vmem [resolvable:$true] %s67_s24  ;;  %s80_s26 = int_to_ptr.vmem [resolvable:$true] %s79_s26 }
  0x32   :  { %s8537_s27 = scalar_lea.vmem %s68_s24, 16  ;;  %s8541_s0 = scalar_lea.vmem %s68_s24, 32 }
  0x33   :  { %p8538_p6 = scmp.ne.s32.totalorder %s68_s24, %s8537_s27  ;;  %p8542_p7 = scmp.lt.s32.totalorder %s68_s24, %s68_s24 }
  0x34   :  { %p8543_p8 = scmp.lt.s32.totalorder %s8541_s0, %s8537_s27 }
  0x36   :  { %p8544_p9 = por %p8543_p8, %p8542_p7 }
  0x38   :  { %p8545_p10 = pnand %p8544_p9, %p8538_p6 }
  0x3a   :  { %8548 = shalt.err (!%p8545_p10)
}
  0x3b   :  { %70 = dma.hbm_to_vmem [thread:$0]  %s8914_s4, 16, %s68_s24, [#allocation9]  }
  0x3c   :  { %s8557_s30 = scalar_lea.vmem %s80_s26, 16  ;;  %s8561_s2 = scalar_lea.vmem %s80_s26, 32 }
  0x3d   :  { %p8558_p11 = scmp.ne.s32.totalorder %s80_s26, %s8557_s30  ;;  %p8562_p12 = scmp.lt.s32.totalorder %s80_s26, %s80_s26 }
  0x3e   :  { %p8563_p13 = scmp.lt.s32.totalorder %s8561_s2, %s8557_s30 }
  0x40   :  { %p8564_p0 = por %p8563_p13, %p8562_p12 }
  0x42   :  { %p8565_p1 = pnand %p8564_p0, %p8558_p11 }
  0x44   :  { %8568 = shalt.err (!%p8565_p1)
}
  0x45   :  { %82 = dma.hbm_to_vmem [thread:$0]  %s8916_s6, 16, %s80_s26, [#allocation12]  }
  0x46   :  { %8589 = dma.done.wait [#allocation3], 1536  }
  0x47   :  { %8590 = vsyncadd [#allocation3], 4294965760 }
  0x48   :  { %8591 = dma.done.wait [#allocation6], 98368  }
  0x49   :  { %8592 = vsyncadd [#allocation6], 4294868928 }
  0x4a   :  { %8593 = dma.done.wait [#allocation9], 4112  }
  0x4b   :  { %8594 = vsyncadd [#allocation9], 4294963184 }
  0x4c   :  { %8595 = dma.done.wait [#allocation12], 16  }
  0x4d   :  { %8596 = vsyncadd [#allocation12], 4294967280  ;;  %v7228_v0 = vld [vmem:[#allocation5 + $0xe4] ss:$16 sps:$4 sm:$0xff]   ;;  %v7232_v2 = vld [vmem:[#allocation5 + $0xe0] ss:$16 sps:$4 sm:$0xff]  }
  0x4e   :  { %v7230_v1 = vld [vmem:[#allocation5 + $0x2e4] ss:$16 sps:$4 sm:$0xff]   ;;  %4828 = vmatprep.subr.bf16.mxu0 %v7228_v0  ;;  %v7233_v3 = vld [vmem:[#allocation5 + $0x2e0] ss:$16 sps:$4 sm:$0xff]   ;;  %v103_v48 = vld [vmem:[#allocation2 + $0x8] sm:$0xff]  ;;  %vm8610_vm0 = vmmov 0  }
  0x4f   :  { %4869 = vmatprep.subr.bf16.mxu1 %v7230_v1  ;;  %v7234_v4 = vld [vmem:[#allocation5 + $0xc4] ss:$16 sps:$4 sm:$0xff]   ;;  %4829 = vmatpush1.bf16.msra.mxu0 %v7232_v2  ;;  %v7238_v6 = vld [vmem:[#allocation5 + $0xc0] ss:$16 sps:$4 sm:$0xff]   ;;  %v8672_v51 = vcombine.high %v103_v48, %v103_v48  ;;  %vm6276_vm1 = vcmask 80896  }
  0x50   :  { %4870 = vmatpush1.bf16.msra.mxu1 %v7233_v3  ;;  %v7236_v5 = vld [vmem:[#allocation5 + $0x2c4] ss:$16 sps:$4 sm:$0xff]   ;;  %4830 = vmatprep.subr.bf16.mxu0 %v7234_v4  ;;  %v7239_v7 = vld [vmem:[#allocation5 + $0x2c0] ss:$16 sps:$4 sm:$0xff]  }
  0x51   :  { %4871 = vmatprep.subr.bf16.mxu1 %v7236_v5  ;;  %v7240_v8 = vld [vmem:[#allocation5 + $0xa4] ss:$16 sps:$4 sm:$0xff]   ;;  %v7244_v10 = vld [vmem:[#allocation5 + $0xa0] ss:$16 sps:$4 sm:$0xff]   ;;  %4901 = vmatprep.mubr.bf16.mxu1 %v8672_v51 }
  0x52   :  { %v7242_v9 = vld [vmem:[#allocation5 + $0x2a4] ss:$16 sps:$4 sm:$0xff]   ;;  %v7245_v11 = vld [vmem:[#allocation5 + $0x2a0] ss:$16 sps:$4 sm:$0xff]  }
  0x53   :  { %4831 = vmatpush1.bf16.msra.mxu0 %v7238_v6  ;;  %v7246_v12 = vld [vmem:[#allocation5 + $0x84] ss:$16 sps:$4 sm:$0xff]   ;;  %v7250_v14 = vld [vmem:[#allocation5 + $0x80] ss:$16 sps:$4 sm:$0xff]  }
  0x54   :  { %4872 = vmatpush1.bf16.msra.mxu1 %v7239_v7  ;;  %4832 = vmatprep.subr.bf16.mxu0 %v7240_v8  ;;  %v7248_v13 = vld [vmem:[#allocation5 + $0x284] ss:$16 sps:$4 sm:$0xff]   ;;  %v7251_v15 = vld [vmem:[#allocation5 + $0x280] ss:$16 sps:$4 sm:$0xff]   ;;  %v8678_v7 = vcombine.low %v103_v48, %v103_v48 }
  0x55   :  { %4873 = vmatprep.subr.bf16.mxu1 %v7242_v9  ;;  %v7252_v16 = vld [vmem:[#allocation5 + $0x64] ss:$16 sps:$4 sm:$0xff]   ;;  %v7256_v18 = vld [vmem:[#allocation5 + $0x60] ss:$16 sps:$4 sm:$0xff]  }
  0x56   :  { %v7254_v17 = vld [vmem:[#allocation5 + $0x264] ss:$16 sps:$4 sm:$0xff]   ;;  %v7257_v19 = vld [vmem:[#allocation5 + $0x260] ss:$16 sps:$4 sm:$0xff]  }
  0x57   :  { %4833 = vmatpush1.bf16.msra.mxu0 %v7244_v10  ;;  %v7258_v20 = vld [vmem:[#allocation5 + $0x44] ss:$16 sps:$4 sm:$0xff]   ;;  %v7262_v22 = vld [vmem:[#allocation5 + $0x40] ss:$16 sps:$4 sm:$0xff]  }
  0x58   :  { %4874 = vmatpush1.bf16.msra.mxu1 %v7245_v11  ;;  %4834 = vmatprep.subr.bf16.mxu0 %v7246_v12  ;;  %v7260_v21 = vld [vmem:[#allocation5 + $0x244] ss:$16 sps:$4 sm:$0xff]   ;;  %v7263_v23 = vld [vmem:[#allocation5 + $0x240] ss:$16 sps:$4 sm:$0xff]  }
  0x59   :  { %4875 = vmatprep.subr.bf16.mxu1 %v7248_v13  ;;  %v7264_v24 = vld [vmem:[#allocation5 + $0x24] ss:$16 sps:$4 sm:$0xff]   ;;  %v7268_v26 = vld [vmem:[#allocation5 + $0x20] ss:$16 sps:$4 sm:$0xff]  }
  0x5a   :  { %v7266_v25 = vld [vmem:[#allocation5 + $0x224] ss:$16 sps:$4 sm:$0xff]   ;;  %v7269_v27 = vld [vmem:[#allocation5 + $0x220] ss:$16 sps:$4 sm:$0xff]  }
  0x5b   :  { %4835 = vmatpush1.bf16.msra.mxu0 %v7250_v14  ;;  %v7270_v28 = vld [vmem:[#allocation5 + $0x4] ss:$16 sps:$4 sm:$0xff]   ;;  %v7274_v30 = vld [vmem:[#allocation5] ss:$16 sps:$4 sm:$0xff]  }
  0x5c   :  { %4876 = vmatpush1.bf16.msra.mxu1 %v7251_v15  ;;  %4836 = vmatprep.subr.bf16.mxu0 %v7252_v16  ;;  %v7272_v29 = vld [vmem:[#allocation5 + $0x204] ss:$16 sps:$4 sm:$0xff]   ;;  %v7275_v31 = vld [vmem:[#allocation5 + $0x200] ss:$16 sps:$4 sm:$0xff]  }
  0x5d   :  { %4877 = vmatprep.subr.bf16.mxu1 %v7254_v17  ;;  %v7276_v32 = vld [vmem:[#allocation5 + $0x1e4] ss:$16 sps:$4 sm:$0xff]   ;;  %v7280_v34 = vld [vmem:[#allocation5 + $0x1e0] ss:$16 sps:$4 sm:$0xff]  }
  0x5e   :  { %v7278_v33 = vld [vmem:[#allocation5 + $0x3e4] ss:$16 sps:$4 sm:$0xff]   ;;  %v7281_v35 = vld [vmem:[#allocation5 + $0x3e0] ss:$16 sps:$4 sm:$0xff]  }
  0x5f   :  { %4837 = vmatpush1.bf16.msra.mxu0 %v7256_v18  ;;  %v7282_v36 = vld [vmem:[#allocation5 + $0x1c4] ss:$16 sps:$4 sm:$0xff]   ;;  %v7286_v38 = vld [vmem:[#allocation5 + $0x1c0] ss:$16 sps:$4 sm:$0xff]  }
  0x60   :  { %4878 = vmatpush1.bf16.msra.mxu1 %v7257_v19  ;;  %4838 = vmatprep.subr.bf16.mxu0 %v7258_v20  ;;  %v7284_v37 = vld [vmem:[#allocation5 + $0x3c4] ss:$16 sps:$4 sm:$0xff]   ;;  %v7287_v39 = vld [vmem:[#allocation5 + $0x3c0] ss:$16 sps:$4 sm:$0xff]  }
  0x61   :  { %4879 = vmatprep.subr.bf16.mxu1 %v7260_v21  ;;  %v7288_v40 = vld [vmem:[#allocation5 + $0x1a4] ss:$16 sps:$4 sm:$0xff]   ;;  %v7292_v42 = vld [vmem:[#allocation5 + $0x1a0] ss:$16 sps:$4 sm:$0xff]  }
  0x62   :  { %v7290_v41 = vld [vmem:[#allocation5 + $0x3a4] ss:$16 sps:$4 sm:$0xff]   ;;  %v7293_v43 = vld [vmem:[#allocation5 + $0x3a0] ss:$16 sps:$4 sm:$0xff]  }
  0x63   :  { %4839 = vmatpush1.bf16.msra.mxu0 %v7262_v22  ;;  %v7294_v44 = vld [vmem:[#allocation5 + $0x184] ss:$16 sps:$4 sm:$0xff]   ;;  %v7298_v49 = vld [vmem:[#allocation5 + $0x180] ss:$16 sps:$4 sm:$0xff]  }
  0x64   :  { %4880 = vmatpush1.bf16.msra.mxu1 %v7263_v23  ;;  %4840 = vmatprep.subr.bf16.mxu0 %v7264_v24  ;;  %v7296_v45 = vld [vmem:[#allocation5 + $0x384] ss:$16 sps:$4 sm:$0xff]   ;;  %v7299_v50 = vld [vmem:[#allocation5 + $0x380] ss:$16 sps:$4 sm:$0xff]  }
  0x65   :  { %4881 = vmatprep.subr.bf16.mxu1 %v7266_v25  ;;  %v102_v46 = vld [vmem:[#allocation2] sm:$0xff] }
  0x66   :  { %v8670_v47 = vcombine.high %v102_v46, %v102_v46  ;;  %v7300_v52 = vld [vmem:[#allocation5 + $0x164] ss:$16 sps:$4 sm:$0xff]   ;;  %v7304_v54 = vld [vmem:[#allocation5 + $0x160] ss:$16 sps:$4 sm:$0xff]   ;;  %v8676_v6 = vcombine.low %v102_v46, %v102_v46 }
  0x67   :  { %4841 = vmatpush1.bf16.msra.mxu0 %v7268_v26  ;;  %v7302_v53 = vld [vmem:[#allocation5 + $0x364] ss:$16 sps:$4 sm:$0xff]   ;;  %v7305_v55 = vld [vmem:[#allocation5 + $0x360] ss:$16 sps:$4 sm:$0xff]  }
  0x68   :  { %4882 = vmatpush1.bf16.msra.mxu1 %v7269_v27  ;;  %4842 = vmatprep.subr.bf16.mxu0 %v7270_v28  ;;  %v7306_v56 = vld [vmem:[#allocation5 + $0x144] ss:$16 sps:$4 sm:$0xff]   ;;  %v7310_v58 = vld [vmem:[#allocation5 + $0x140] ss:$16 sps:$4 sm:$0xff]  }
  0x69   :  { %4883 = vmatprep.subr.bf16.mxu1 %v7272_v29  ;;  %4860 = vmatprep.mubr.bf16.mxu0 %v8670_v47  ;;  %v7308_v57 = vld [vmem:[#allocation5 + $0x344] ss:$16 sps:$4 sm:$0xff]   ;;  %v7311_v59 = vld [vmem:[#allocation5 + $0x340] ss:$16 sps:$4 sm:$0xff]  }
  0x6a   :  { %v7312_v60 = vld [vmem:[#allocation5 + $0x124] ss:$16 sps:$4 sm:$0xff]   ;;  %v7316_v62 = vld [vmem:[#allocation5 + $0x120] ss:$16 sps:$4 sm:$0xff]  }
  0x6b   :  { %4843 = vmatpush1.bf16.msra.mxu0 %v7274_v30  ;;  %v7314_v61 = vld [vmem:[#allocation5 + $0x324] ss:$16 sps:$4 sm:$0xff]   ;;  %v7317_v63 = vld [vmem:[#allocation5 + $0x320] ss:$16 sps:$4 sm:$0xff]  }
  0x6c   :  { %4884 = vmatpush1.bf16.msra.mxu1 %v7275_v31  ;;  %4844 = vmatprep.subr.bf16.mxu0 %v7276_v32  ;;  %v7318_v0 = vld [vmem:[#allocation5 + $0x104] ss:$16 sps:$4 sm:$0xff]   ;;  %v7322_v2 = vld [vmem:[#allocation5 + $0x100] ss:$16 sps:$4 sm:$0xff]  }
  0x6d   :  { %4885 = vmatprep.subr.bf16.mxu1 %v7278_v33  ;;  %v7320_v1 = vld [vmem:[#allocation5 + $0x304] ss:$16 sps:$4 sm:$0xff]   ;;  %v7323_v3 = vld [vmem:[#allocation5 + $0x300] ss:$16 sps:$4 sm:$0xff]   ;;  %v8684_v33 = vld [vmem:[#allocation2 + $0x18] sm:$0xff] }
  0x6e   :  { %v7330_v4 = vld [vmem:[#allocation5 + $0x4e4] ss:$16 sps:$4 sm:$0xff]   ;;  %v7328_v8 = vld [vmem:[#allocation5 + $0x4e0] ss:$16 sps:$4 sm:$0xff]  }
  0x6f   :  { %4845 = vmatpush2.bf16.msra.mxu0 %v7280_v34  ;;  %v7333_v5 = vld [vmem:[#allocation5 + $0x6e4] ss:$16 sps:$4 sm:$0xff]   ;;  %v7331_v9 = vld [vmem:[#allocation5 + $0x6e0] ss:$16 sps:$4 sm:$0xff]  }
  0x70   :  { %4886 = vmatpush2.bf16.msra.mxu1 %v7281_v35  ;;  %4846 = vmatprep.subr.bf16.mxu0 %v7282_v36  ;;  %v7336_v10 = vld [vmem:[#allocation5 + $0x4c4] ss:$16 sps:$4 sm:$0xff]   ;;  %v7334_v12 = vld [vmem:[#allocation5 + $0x4c0] ss:$16 sps:$4 sm:$0xff]  }
  0x71   :  { %4887 = vmatprep.subr.bf16.mxu1 %v7284_v37  ;;  %v7339_v11 = vld [vmem:[#allocation5 + $0x6c4] ss:$16 sps:$4 sm:$0xff]   ;;  %v7337_v13 = vld [vmem:[#allocation5 + $0x6c0] ss:$16 sps:$4 sm:$0xff]   ;;  %v8692_v37 = vcombine.high %v8684_v33, %v8684_v33 }
  0x72   :  { %v7342_v14 = vld [vmem:[#allocation5 + $0x4a4] ss:$16 sps:$4 sm:$0xff]   ;;  %v7340_v16 = vld [vmem:[#allocation5 + $0x4a0] ss:$16 sps:$4 sm:$0xff]  }
  0x73   :  { %4847 = vmatpush2.bf16.msra.mxu0 %v7286_v38  ;;  %v7345_v15 = vld [vmem:[#allocation5 + $0x6a4] ss:$16 sps:$4 sm:$0xff]   ;;  %v7343_v17 = vld [vmem:[#allocation5 + $0x6a0] ss:$16 sps:$4 sm:$0xff]  }
  0x74   :  { %4888 = vmatpush2.bf16.msra.mxu1 %v7287_v39  ;;  %4848 = vmatprep.subr.bf16.mxu0 %v7288_v40  ;;  %v7348_v18 = vld [vmem:[#allocation5 + $0x484] ss:$16 sps:$4 sm:$0xff]   ;;  %v7346_v20 = vld [vmem:[#allocation5 + $0x480] ss:$16 sps:$4 sm:$0xff]  }
  0x75   :  { %4889 = vmatprep.subr.bf16.mxu1 %v7290_v41  ;;  %v7351_v19 = vld [vmem:[#allocation5 + $0x684] ss:$16 sps:$4 sm:$0xff]   ;;  %v7349_v21 = vld [vmem:[#allocation5 + $0x680] ss:$16 sps:$4 sm:$0xff]  }
  0x76   :  { %v7354_v22 = vld [vmem:[#allocation5 + $0x464] ss:$16 sps:$4 sm:$0xff]   ;;  %v7352_v24 = vld [vmem:[#allocation5 + $0x460] ss:$16 sps:$4 sm:$0xff]  }
  0x77   :  { %4849 = vmatpush2.bf16.msra.mxu0 %v7292_v42  ;;  %v7357_v23 = vld [vmem:[#allocation5 + $0x664] ss:$16 sps:$4 sm:$0xff]   ;;  %v7355_v25 = vld [vmem:[#allocation5 + $0x660] ss:$16 sps:$4 sm:$0xff]  }
  0x78   :  { %4890 = vmatpush2.bf16.msra.mxu1 %v7293_v43  ;;  %4850 = vmatprep.subr.bf16.mxu0 %v7294_v44  ;;  %v7360_v26 = vld [vmem:[#allocation5 + $0x444] ss:$16 sps:$4 sm:$0xff]   ;;  %v7358_v28 = vld [vmem:[#allocation5 + $0x440] ss:$16 sps:$4 sm:$0xff]  }
  0x79   :  { %4891 = vmatprep.subr.bf16.mxu1 %v7296_v45  ;;  %v7363_v27 = vld [vmem:[#allocation5 + $0x644] ss:$16 sps:$4 sm:$0xff]   ;;  %v7361_v29 = vld [vmem:[#allocation5 + $0x640] ss:$16 sps:$4 sm:$0xff]  }
  0x7a   :  { %v7366_v30 = vld [vmem:[#allocation5 + $0x424] ss:$16 sps:$4 sm:$0xff]   ;;  %v7364_v34 = vld [vmem:[#allocation5 + $0x420] ss:$16 sps:$4 sm:$0xff]  }
  0x7b   :  { %4851 = vmatpush2.bf16.msra.mxu0 %v7298_v49  ;;  %v7369_v31 = vld [vmem:[#allocation5 + $0x624] ss:$16 sps:$4 sm:$0xff]   ;;  %v7367_v35 = vld [vmem:[#allocation5 + $0x620] ss:$16 sps:$4 sm:$0xff]  }
  0x7c   :  { %4892 = vmatpush2.bf16.msra.mxu1 %v7299_v50  ;;  %4852 = vmatprep.subr.bf16.mxu0 %v7300_v52  ;;  %v8682_v32 = vld [vmem:[#allocation2 + $0x10] sm:$0xff] }
  0x7d   :  { %4893 = vmatprep.subr.bf16.mxu1 %v7302_v53  ;;  %v8688_v36 = vcombine.high %v8682_v32, %v8682_v32  ;;  %v7372_v38 = vld [vmem:[#allocation5 + $0x404] ss:$16 sps:$4 sm:$0xff]   ;;  %v7370_v40 = vld [vmem:[#allocation5 + $0x400] ss:$16 sps:$4 sm:$0xff]  }
  0x7e   :  { %v7375_v39 = vld [vmem:[#allocation5 + $0x604] ss:$16 sps:$4 sm:$0xff]   ;;  %v7373_v41 = vld [vmem:[#allocation5 + $0x600] ss:$16 sps:$4 sm:$0xff]  }
  0x7f   :  { %4853 = vmatpush2.bf16.msra.mxu0 %v7304_v54  ;;  %v7378_v42 = vld [vmem:[#allocation5 + $0x5e4] ss:$16 sps:$4 sm:$0xff]   ;;  %v7376_v44 = vld [vmem:[#allocation5 + $0x5e0] ss:$16 sps:$4 sm:$0xff]  }
  0x80   :  { %4894 = vmatpush2.bf16.msra.mxu1 %v7305_v55  ;;  %4854 = vmatprep.subr.bf16.mxu0 %v7306_v56  ;;  %v7381_v43 = vld [vmem:[#allocation5 + $0x7e4] ss:$16 sps:$4 sm:$0xff]   ;;  %v7379_v45 = vld [vmem:[#allocation5 + $0x7e0] ss:$16 sps:$4 sm:$0xff]  }
  0x81   :  { %4895 = vmatprep.subr.bf16.mxu1 %v7308_v57  ;;  %v7384_v46 = vld [vmem:[#allocation5 + $0x5c4] ss:$16 sps:$4 sm:$0xff]   ;;  %v7382_v49 = vld [vmem:[#allocation5 + $0x5c0] ss:$16 sps:$4 sm:$0xff]  }
  0x82   :  { %v7387_v48 = vld [vmem:[#allocation5 + $0x7c4] ss:$16 sps:$4 sm:$0xff]   ;;  %v7385_v50 = vld [vmem:[#allocation5 + $0x7c0] ss:$16 sps:$4 sm:$0xff]  }
  0x83   :  { %4855 = vmatpush2.bf16.msra.mxu0 %v7310_v58  ;;  %v7390_v52 = vld [vmem:[#allocation5 + $0x5a4] ss:$16 sps:$4 sm:$0xff]   ;;  %v7388_v54 = vld [vmem:[#allocation5 + $0x5a0] ss:$16 sps:$4 sm:$0xff]  }
  0x84   :  { %4896 = vmatpush2.bf16.msra.mxu1 %v7311_v59  ;;  %4856 = vmatprep.subr.bf16.mxu0 %v7312_v60  ;;  %v7393_v53 = vld [vmem:[#allocation5 + $0x7a4] ss:$16 sps:$4 sm:$0xff]   ;;  %v7391_v55 = vld [vmem:[#allocation5 + $0x7a0] ss:$16 sps:$4 sm:$0xff]  }
  0x85   :  { %4897 = vmatprep.subr.bf16.mxu1 %v7314_v61  ;;  %v7396_v56 = vld [vmem:[#allocation5 + $0x584] ss:$16 sps:$4 sm:$0xff]   ;;  %v7394_v58 = vld [vmem:[#allocation5 + $0x580] ss:$16 sps:$4 sm:$0xff]  }
  0x86   :  { %v7399_v57 = vld [vmem:[#allocation5 + $0x784] ss:$16 sps:$4 sm:$0xff]   ;;  %v7397_v59 = vld [vmem:[#allocation5 + $0x780] ss:$16 sps:$4 sm:$0xff]  }
  0x87   :  { %4857 = vmatpush2.bf16.msra.mxu0 %v7316_v62  ;;  %v7402_v60 = vld [vmem:[#allocation5 + $0x564] ss:$16 sps:$4 sm:$0xff]   ;;  %v7400_v62 = vld [vmem:[#allocation5 + $0x560] ss:$16 sps:$4 sm:$0xff]  }
  0x88   :  { %4898 = vmatpush2.bf16.msra.mxu1 %v7317_v63  ;;  %4858 = vmatprep.subr.bf16.mxu0 %v7318_v0  ;;  %v7405_v61 = vld [vmem:[#allocation5 + $0x764] ss:$16 sps:$4 sm:$0xff]   ;;  %v7403_v63 = vld [vmem:[#allocation5 + $0x760] ss:$16 sps:$4 sm:$0xff]  }
  0x89   :  { %4899 = vmatprep.subr.bf16.mxu1 %v7320_v1  ;;  %v7408_v0 = vld [vmem:[#allocation5 + $0x544] ss:$16 sps:$4 sm:$0xff]  }
  0x8a   :  { %v7411_v1 = vld [vmem:[#allocation5 + $0x744] ss:$16 sps:$4 sm:$0xff]  }
  0x8b   :  { %4859 = vmatpush2.bf16.msra.mxu0 %v7322_v2  ;;  %v7406_v2 = vld [vmem:[#allocation5 + $0x540] ss:$16 sps:$4 sm:$0xff]  }
  0x8c   :  { %4900 = vmatpush2.bf16.msra.mxu1 %v7323_v3  ;;  %4910 = vmatprep.subr.bf16.mxu0 %v7330_v4  ;;  %v7409_v3 = vld [vmem:[#allocation5 + $0x740] ss:$16 sps:$4 sm:$0xff]   ;;  %v7414_v4 = vld [vmem:[#allocation5 + $0x524] ss:$16 sps:$4 sm:$0xff]  }
  0x8d   :  { %4951 = vmatprep.subr.bf16.mxu1 %v7333_v5  ;;  %v7417_v5 = vld [vmem:[#allocation5 + $0x724] ss:$16 sps:$4 sm:$0xff]  }
  0x8e   :  { %4861 = vmatmul.mubr.bf16.vlgmr.msra.gmra.mxu0 %v8676_v6 }
  0x8f   :  { %4902 = vmatmul.mubr.bf16.vlgmr.msra.gmra.mxu1 %v8678_v7  ;;  %4911 = vmatpush1.bf16.msra.mxu0 %v7328_v8  ;;  %v7412_v8 = vld [vmem:[#allocation5 + $0x520] ss:$16 sps:$4 sm:$0xff]  }
  0x90   :  { %4952 = vmatpush1.bf16.msra.mxu1 %v7331_v9  ;;  %4912 = vmatprep.subr.bf16.mxu0 %v7336_v10  ;;  %v7415_v9 = vld [vmem:[#allocation5 + $0x720] ss:$16 sps:$4 sm:$0xff]   ;;  %v7420_v10 = vld [vmem:[#allocation5 + $0x504] ss:$16 sps:$4 sm:$0xff]  }
  0x91   :  { %4953 = vmatprep.subr.bf16.mxu1 %v7339_v11  ;;  %4942 = vmatprep.mubr.bf16.mxu0 %v8688_v36  ;;  %v7423_v11 = vld [vmem:[#allocation5 + $0x704] ss:$16 sps:$4 sm:$0xff]  }
  0x92   :  { %4983 = vmatprep.mubr.bf16.mxu1 %v8692_v37 }
  0x93   :  { %4913 = vmatpush1.bf16.msra.mxu0 %v7334_v12  ;;  %v7418_v12 = vld [vmem:[#allocation5 + $0x500] ss:$16 sps:$4 sm:$0xff]  }
  0x94   :  { %4954 = vmatpush1.bf16.msra.mxu1 %v7337_v13  ;;  %4914 = vmatprep.subr.bf16.mxu0 %v7342_v14  ;;  %v7421_v13 = vld [vmem:[#allocation5 + $0x700] ss:$16 sps:$4 sm:$0xff]   ;;  %v7430_v14 = vld [vmem:[#allocation5 + $0x8e4] ss:$16 sps:$4 sm:$0xff]  }
  0x95   :  { %4955 = vmatprep.subr.bf16.mxu1 %v7345_v15  ;;  %v7433_v15 = vld [vmem:[#allocation5 + $0xae4] ss:$16 sps:$4 sm:$0xff]  }
  0x97   :  { %4915 = vmatpush1.bf16.msra.mxu0 %v7340_v16  ;;  %v8698_v16 = vcombine.low %v8682_v32, %v8682_v32  ;;  %v7448_v32 = vld [vmem:[#allocation5 + $0x884] ss:$16 sps:$4 sm:$0xff]  }
  0x98   :  { %4956 = vmatpush1.bf16.msra.mxu1 %v7343_v17  ;;  %4916 = vmatprep.subr.bf16.mxu0 %v7348_v18  ;;  %v8702_v17 = vcombine.low %v8684_v33, %v8684_v33  ;;  %v7428_v18 = vld [vmem:[#allocation5 + $0x8e0] ss:$16 sps:$4 sm:$0xff]   ;;  %v7451_v33 = vld [vmem:[#allocation5 + $0xa84] ss:$16 sps:$4 sm:$0xff]  }
  0x99   :  { %4957 = vmatprep.subr.bf16.mxu1 %v7351_v19  ;;  %v7431_v19 = vld [vmem:[#allocation5 + $0xae0] ss:$16 sps:$4 sm:$0xff]  }
  0x9b   :  { %4917 = vmatpush1.bf16.msra.mxu0 %v7346_v20  ;;  %v7436_v20 = vld [vmem:[#allocation5 + $0x8c4] ss:$16 sps:$4 sm:$0xff]  }
  0x9c   :  { %4958 = vmatpush1.bf16.msra.mxu1 %v7349_v21  ;;  %4918 = vmatprep.subr.bf16.mxu0 %v7354_v22  ;;  %v7439_v21 = vld [vmem:[#allocation5 + $0xac4] ss:$16 sps:$4 sm:$0xff]  }
  0x9d   :  { %4959 = vmatprep.subr.bf16.mxu1 %v7357_v23  ;;  %v8704_v22 = vld [vmem:[#allocation2 + $0x20] sm:$0xff]  ;;  %v8706_v23 = vld [vmem:[#allocation2 + $0x28] sm:$0xff] }
  0x9f   :  { %4919 = vmatpush1.bf16.msra.mxu0 %v7352_v24  ;;  %v8710_v24 = vcombine.high %v8704_v22, %v8704_v22 }
  0xa0   :  { %4960 = vmatpush1.bf16.msra.mxu1 %v7355_v25  ;;  %4920 = vmatprep.subr.bf16.mxu0 %v7360_v26  ;;  %v8714_v25 = vcombine.high %v8706_v23, %v8706_v23  ;;  %v7434_v26 = vld [vmem:[#allocation5 + $0x8c0] ss:$16 sps:$4 sm:$0xff]  }
  0xa1   :  { %4961 = vmatprep.subr.bf16.mxu1 %v7363_v27  ;;  %v7437_v27 = vld [vmem:[#allocation5 + $0xac0] ss:$16 sps:$4 sm:$0xff]  }
  0xa3   :  { %4921 = vmatpush1.bf16.msra.mxu0 %v7358_v28  ;;  %v7442_v28 = vld [vmem:[#allocation5 + $0x8a4] ss:$16 sps:$4 sm:$0xff]  }
  0xa4   :  { %4962 = vmatpush1.bf16.msra.mxu1 %v7361_v29  ;;  %4922 = vmatprep.subr.bf16.mxu0 %v7366_v30  ;;  %v7445_v29 = vld [vmem:[#allocation5 + $0xaa4] ss:$16 sps:$4 sm:$0xff]   ;;  %v7440_v30 = vld [vmem:[#allocation5 + $0x8a0] ss:$16 sps:$4 sm:$0xff]  }
  0xa5   :  { %4963 = vmatprep.subr.bf16.mxu1 %v7369_v31  ;;  %v7443_v31 = vld [vmem:[#allocation5 + $0xaa0] ss:$16 sps:$4 sm:$0xff]  }
  0xa7   :  { %4923 = vmatpush1.bf16.msra.mxu0 %v7364_v34  ;;  %v7446_v34 = vld [vmem:[#allocation5 + $0x880] ss:$16 sps:$4 sm:$0xff]  }
  0xa8   :  { %4964 = vmatpush1.bf16.msra.mxu1 %v7367_v35  ;;  %4924 = vmatprep.subr.bf16.mxu0 %v7372_v38  ;;  %v7449_v35 = vld [vmem:[#allocation5 + $0xa80] ss:$16 sps:$4 sm:$0xff]   ;;  %v7454_v38 = vld [vmem:[#allocation5 + $0x864] ss:$16 sps:$4 sm:$0xff]  }
  0xa9   :  { %4965 = vmatprep.subr.bf16.mxu1 %v7375_v39  ;;  %v7457_v39 = vld [vmem:[#allocation5 + $0xa64] ss:$16 sps:$4 sm:$0xff]  }
  0xab   :  { %4925 = vmatpush1.bf16.msra.mxu0 %v7370_v40  ;;  %v7452_v40 = vld [vmem:[#allocation5 + $0x860] ss:$16 sps:$4 sm:$0xff]  }
  0xac   :  { %4966 = vmatpush1.bf16.msra.mxu1 %v7373_v41  ;;  %4926 = vmatprep.subr.bf16.mxu0 %v7378_v42  ;;  %v7455_v41 = vld [vmem:[#allocation5 + $0xa60] ss:$16 sps:$4 sm:$0xff]   ;;  %v7460_v42 = vld [vmem:[#allocation5 + $0x844] ss:$16 sps:$4 sm:$0xff]  }
  0xad   :  { %4967 = vmatprep.subr.bf16.mxu1 %v7381_v43  ;;  %v7463_v43 = vld [vmem:[#allocation5 + $0xa44] ss:$16 sps:$4 sm:$0xff]  }
  0xaf   :  { %4927 = vmatpush2.bf16.msra.mxu0 %v7376_v44  ;;  %v7458_v44 = vld [vmem:[#allocation5 + $0x840] ss:$16 sps:$4 sm:$0xff]  }
  0xb0   :  { %4968 = vmatpush2.bf16.msra.mxu1 %v7379_v45  ;;  %4928 = vmatprep.subr.bf16.mxu0 %v7384_v46  ;;  %v7461_v45 = vld [vmem:[#allocation5 + $0xa40] ss:$16 sps:$4 sm:$0xff]   ;;  %v7466_v46 = vld [vmem:[#allocation5 + $0x824] ss:$16 sps:$4 sm:$0xff]  }
  0xb1   :  { %4969 = vmatprep.subr.bf16.mxu1 %v7387_v48  ;;  %v7469_v48 = vld [vmem:[#allocation5 + $0xa24] ss:$16 sps:$4 sm:$0xff]  }
  0xb3   :  { %4929 = vmatpush2.bf16.msra.mxu0 %v7382_v49  ;;  %v7464_v49 = vld [vmem:[#allocation5 + $0x820] ss:$16 sps:$4 sm:$0xff]  }
  0xb4   :  { %4970 = vmatpush2.bf16.msra.mxu1 %v7385_v50  ;;  %4930 = vmatprep.subr.bf16.mxu0 %v7390_v52  ;;  %v7467_v50 = vld [vmem:[#allocation5 + $0xa20] ss:$16 sps:$4 sm:$0xff]   ;;  %v7472_v52 = vld [vmem:[#allocation5 + $0x804] ss:$16 sps:$4 sm:$0xff]  }
  0xb5   :  { %4971 = vmatprep.subr.bf16.mxu1 %v7393_v53  ;;  %v7475_v53 = vld [vmem:[#allocation5 + $0xa04] ss:$16 sps:$4 sm:$0xff]  }
  0xb7   :  { %4931 = vmatpush2.bf16.msra.mxu0 %v7388_v54  ;;  %v7470_v54 = vld [vmem:[#allocation5 + $0x800] ss:$16 sps:$4 sm:$0xff]  }
  0xb8   :  { %4972 = vmatpush2.bf16.msra.mxu1 %v7391_v55  ;;  %4932 = vmatprep.subr.bf16.mxu0 %v7396_v56  ;;  %v7473_v55 = vld [vmem:[#allocation5 + $0xa00] ss:$16 sps:$4 sm:$0xff]   ;;  %v7478_v56 = vld [vmem:[#allocation5 + $0x9e4] ss:$16 sps:$4 sm:$0xff]  }
  0xb9   :  { %4973 = vmatprep.subr.bf16.mxu1 %v7399_v57  ;;  %v7481_v57 = vld [vmem:[#allocation5 + $0xbe4] ss:$16 sps:$4 sm:$0xff]  }
  0xbb   :  { %4933 = vmatpush2.bf16.msra.mxu0 %v7394_v58  ;;  %v7476_v58 = vld [vmem:[#allocation5 + $0x9e0] ss:$16 sps:$4 sm:$0xff]  }
  0xbc   :  { %4974 = vmatpush2.bf16.msra.mxu1 %v7397_v59  ;;  %4934 = vmatprep.subr.bf16.mxu0 %v7402_v60  ;;  %v7479_v59 = vld [vmem:[#allocation5 + $0xbe0] ss:$16 sps:$4 sm:$0xff]   ;;  %v7484_v60 = vld [vmem:[#allocation5 + $0x9c4] ss:$16 sps:$4 sm:$0xff]  }
  0xbd   :  { %4975 = vmatprep.subr.bf16.mxu1 %v7405_v61  ;;  %v7487_v61 = vld [vmem:[#allocation5 + $0xbc4] ss:$16 sps:$4 sm:$0xff]  }
  0xbf   :  { %4935 = vmatpush2.bf16.msra.mxu0 %v7400_v62  ;;  %v7482_v62 = vld [vmem:[#allocation5 + $0x9c0] ss:$16 sps:$4 sm:$0xff]  }
  0xc0   :  { %4976 = vmatpush2.bf16.msra.mxu1 %v7403_v63  ;;  %4936 = vmatprep.subr.bf16.mxu0 %v7408_v0  ;;  %v7485_v63 = vld [vmem:[#allocation5 + $0xbc0] ss:$16 sps:$4 sm:$0xff]   ;;  %v7490_v0 = vld [vmem:[#allocation5 + $0x9a4] ss:$16 sps:$4 sm:$0xff]  }
  0xc1   :  { %4977 = vmatprep.subr.bf16.mxu1 %v7411_v1  ;;  %v7493_v1 = vld [vmem:[#allocation5 + $0xba4] ss:$16 sps:$4 sm:$0xff]  }
  0xc3   :  { %4937 = vmatpush2.bf16.msra.mxu0 %v7406_v2  ;;  %v7488_v2 = vld [vmem:[#allocation5 + $0x9a0] ss:$16 sps:$4 sm:$0xff]  }
  0xc4   :  { %4978 = vmatpush2.bf16.msra.mxu1 %v7409_v3  ;;  %4938 = vmatprep.subr.bf16.mxu0 %v7414_v4  ;;  %v7491_v3 = vld [vmem:[#allocation5 + $0xba0] ss:$16 sps:$4 sm:$0xff]   ;;  %v7496_v4 = vld [vmem:[#allocation5 + $0x984] ss:$16 sps:$4 sm:$0xff]  }
  0xc5   :  { %4979 = vmatprep.subr.bf16.mxu1 %v7417_v5  ;;  %v7499_v5 = vld [vmem:[#allocation5 + $0xb84] ss:$16 sps:$4 sm:$0xff]  }
  0xc7   :  { %4939 = vmatpush2.bf16.msra.mxu0 %v7412_v8  ;;  %v7494_v8 = vld [vmem:[#allocation5 + $0x980] ss:$16 sps:$4 sm:$0xff]  }
  0xc8   :  { %4980 = vmatpush2.bf16.msra.mxu1 %v7415_v9  ;;  %4940 = vmatprep.subr.bf16.mxu0 %v7420_v10  ;;  %v7497_v9 = vld [vmem:[#allocation5 + $0xb80] ss:$16 sps:$4 sm:$0xff]   ;;  %v7502_v10 = vld [vmem:[#allocation5 + $0x964] ss:$16 sps:$4 sm:$0xff]  }
  0xc9   :  { %4981 = vmatprep.subr.bf16.mxu1 %v7423_v11  ;;  %v7505_v11 = vld [vmem:[#allocation5 + $0xb64] ss:$16 sps:$4 sm:$0xff]  }
  0xcb   :  { %4941 = vmatpush2.bf16.msra.mxu0 %v7418_v12  ;;  %v7500_v12 = vld [vmem:[#allocation5 + $0x960] ss:$16 sps:$4 sm:$0xff]  }
  0xcc   :  { %4982 = vmatpush2.bf16.msra.mxu1 %v7421_v13  ;;  %4992 = vmatprep.subr.bf16.mxu0 %v7430_v14  ;;  %v7503_v13 = vld [vmem:[#allocation5 + $0xb60] ss:$16 sps:$4 sm:$0xff]   ;;  %v7508_v14 = vld [vmem:[#allocation5 + $0x944] ss:$16 sps:$4 sm:$0xff]  }
  0xcd   :  { %5033 = vmatprep.subr.bf16.mxu1 %v7433_v15  ;;  %v7511_v15 = vld [vmem:[#allocation5 + $0xb44] ss:$16 sps:$4 sm:$0xff]  }
  0xce   :  { %4943 = vmatmul.mubr.bf16.vlgmr.msra.gmra.mxu0 %v8698_v16 }
  0xcf   :  { %4984 = vmatmul.mubr.bf16.vlgmr.msra.gmra.mxu1 %v8702_v17  ;;  %4993 = vmatpush1.bf16.msra.mxu0 %v7428_v18  ;;  %v7506_v18 = vld [vmem:[#allocation5 + $0x940] ss:$16 sps:$4 sm:$0xff]  }
  0xd0   :  { %5034 = vmatpush1.bf16.msra.mxu1 %v7431_v19  ;;  %4994 = vmatprep.subr.bf16.mxu0 %v7436_v20  ;;  %v7509_v19 = vld [vmem:[#allocation5 + $0xb40] ss:$16 sps:$4 sm:$0xff]   ;;  %v7514_v20 = vld [vmem:[#allocation5 + $0x924] ss:$16 sps:$4 sm:$0xff]  }
  0xd1   :  { %5035 = vmatprep.subr.bf16.mxu1 %v7439_v21  ;;  %5024 = vmatprep.mubr.bf16.mxu0 %v8710_v24  ;;  %v7517_v21 = vld [vmem:[#allocation5 + $0xb24] ss:$16 sps:$4 sm:$0xff]  }
  0xd2   :  { %5065 = vmatprep.mubr.bf16.mxu1 %v8714_v25 }
  0xd3   :  { %4995 = vmatpush1.bf16.msra.mxu0 %v7434_v26  ;;  %v7512_v26 = vld [vmem:[#allocation5 + $0x920] ss:$16 sps:$4 sm:$0xff]  }
  0xd4   :  { %5036 = vmatpush1.bf16.msra.mxu1 %v7437_v27  ;;  %4996 = vmatprep.subr.bf16.mxu0 %v7442_v28  ;;  %v7515_v27 = vld [vmem:[#allocation5 + $0xb20] ss:$16 sps:$4 sm:$0xff]   ;;  %v7520_v28 = vld [vmem:[#allocation5 + $0x904] ss:$16 sps:$4 sm:$0xff]  }
  0xd5   :  { %5037 = vmatprep.subr.bf16.mxu1 %v7445_v29  ;;  %v7523_v29 = vld [vmem:[#allocation5 + $0xb04] ss:$16 sps:$4 sm:$0xff]  }
  0xd7   :  { %4997 = vmatpush1.bf16.msra.mxu0 %v7440_v30  ;;  %v7518_v30 = vld [vmem:[#allocation5 + $0x900] ss:$16 sps:$4 sm:$0xff]  }
  0xd8   :  { %5038 = vmatpush1.bf16.msra.mxu1 %v7443_v31  ;;  %4998 = vmatprep.subr.bf16.mxu0 %v7448_v32  ;;  %v7521_v31 = vld [vmem:[#allocation5 + $0xb00] ss:$16 sps:$4 sm:$0xff]   ;;  %v7530_v32 = vld [vmem:[#allocation5 + $0xce4] ss:$16 sps:$4 sm:$0xff]  }
  0xd9   :  { %5039 = vmatprep.subr.bf16.mxu1 %v7451_v33  ;;  %v7533_v33 = vld [vmem:[#allocation5 + $0xee4] ss:$16 sps:$4 sm:$0xff]  }
  0xdb   :  { %4999 = vmatpush1.bf16.msra.mxu0 %v7446_v34  ;;  %v7528_v34 = vld [vmem:[#allocation5 + $0xce0] ss:$16 sps:$4 sm:$0xff]  }
  0xdc   :  { %5040 = vmatpush1.bf16.msra.mxu1 %v7449_v35  ;;  %5000 = vmatprep.subr.bf16.mxu0 %v7454_v38  ;;  %v8720_v35 = vld [vmem:[#allocation2 + $0x30] sm:$0xff]  ;;  %v8724_v38 = vcombine.low %v8704_v22, %v8704_v22 }
  0xdd   :  { %5041 = vmatprep.subr.bf16.mxu1 %v7457_v39  ;;  %v8728_v39 = vcombine.low %v8706_v23, %v8706_v23  ;;  %v7534_v23 = vld [vmem:[#allocation5 + $0xcc0] ss:$16 sps:$4 sm:$0xff]  }
  0xdf   :  { %5001 = vmatpush1.bf16.msra.mxu0 %v7452_v40  ;;  %v8730_v40 = vld [vmem:[#allocation2 + $0x38] sm:$0xff] }
  0xe0   :  { %5042 = vmatpush1.bf16.msra.mxu1 %v7455_v41  ;;  %5002 = vmatprep.subr.bf16.mxu0 %v7460_v42  ;;  %v7531_v41 = vld [vmem:[#allocation5 + $0xee0] ss:$16 sps:$4 sm:$0xff]   ;;  %v7536_v42 = vld [vmem:[#allocation5 + $0xcc4] ss:$16 sps:$4 sm:$0xff]   ;;  %v8738_v22 = vcombine.high %v8730_v40, %v8730_v40 }
  0xe1   :  { %5043 = vmatprep.subr.bf16.mxu1 %v7463_v43  ;;  %v7539_v43 = vld [vmem:[#allocation5 + $0xec4] ss:$16 sps:$4 sm:$0xff]  }
  0xe3   :  { %5003 = vmatpush1.bf16.msra.mxu0 %v7458_v44  ;;  %v8734_v44 = vcombine.high %v8720_v35, %v8720_v35 }
  0xe4   :  { %5044 = vmatpush1.bf16.msra.mxu1 %v7461_v45  ;;  %5004 = vmatprep.subr.bf16.mxu0 %v7466_v46  ;;  %v7537_v45 = vld [vmem:[#allocation5 + $0xec0] ss:$16 sps:$4 sm:$0xff]   ;;  %v7542_v46 = vld [vmem:[#allocation5 + $0xca4] ss:$16 sps:$4 sm:$0xff]  }
  0xe5   :  { %5045 = vmatprep.subr.bf16.mxu1 %v7469_v48  ;;  %v7545_v48 = vld [vmem:[#allocation5 + $0xea4] ss:$16 sps:$4 sm:$0xff]  }
  0xe7   :  { %5005 = vmatpush1.bf16.msra.mxu0 %v7464_v49  ;;  %v7540_v49 = vld [vmem:[#allocation5 + $0xca0] ss:$16 sps:$4 sm:$0xff]  }
  0xe8   :  { %5046 = vmatpush1.bf16.msra.mxu1 %v7467_v50  ;;  %5006 = vmatprep.subr.bf16.mxu0 %v7472_v52  ;;  %v7543_v50 = vld [vmem:[#allocation5 + $0xea0] ss:$16 sps:$4 sm:$0xff]   ;;  %v7548_v52 = vld [vmem:[#allocation5 + $0xc84] ss:$16 sps:$4 sm:$0xff]  }
  0xe9   :  { %5047 = vmatprep.subr.bf16.mxu1 %v7475_v53  ;;  %v7551_v53 = vld [vmem:[#allocation5 + $0xe84] ss:$16 sps:$4 sm:$0xff]  }
  0xeb   :  { %5007 = vmatpush1.bf16.msra.mxu0 %v7470_v54  ;;  %v7546_v54 = vld [vmem:[#allocation5 + $0xc80] ss:$16 sps:$4 sm:$0xff]  }
  0xec   :  { %5048 = vmatpush1.bf16.msra.mxu1 %v7473_v55  ;;  %5008 = vmatprep.subr.bf16.mxu0 %v7478_v56  ;;  %v7549_v55 = vld [vmem:[#allocation5 + $0xe80] ss:$16 sps:$4 sm:$0xff]   ;;  %v7554_v56 = vld [vmem:[#allocation5 + $0xc64] ss:$16 sps:$4 sm:$0xff]  }
  0xed   :  { %5049 = vmatprep.subr.bf16.mxu1 %v7481_v57  ;;  %v7557_v57 = vld [vmem:[#allocation5 + $0xe64] ss:$16 sps:$4 sm:$0xff]  }
  0xef   :  { %5009 = vmatpush2.bf16.msra.mxu0 %v7476_v58  ;;  %v7552_v58 = vld [vmem:[#allocation5 + $0xc60] ss:$16 sps:$4 sm:$0xff]  }
  0xf0   :  { %5050 = vmatpush2.bf16.msra.mxu1 %v7479_v59  ;;  %5010 = vmatprep.subr.bf16.mxu0 %v7484_v60  ;;  %v7555_v59 = vld [vmem:[#allocation5 + $0xe60] ss:$16 sps:$4 sm:$0xff]   ;;  %v7560_v60 = vld [vmem:[#allocation5 + $0xc44] ss:$16 sps:$4 sm:$0xff]  }
  0xf1   :  { %5051 = vmatprep.subr.bf16.mxu1 %v7487_v61  ;;  %v7563_v61 = vld [vmem:[#allocation5 + $0xe44] ss:$16 sps:$4 sm:$0xff]  }
  0xf3   :  { %5011 = vmatpush2.bf16.msra.mxu0 %v7482_v62  ;;  %v7558_v62 = vld [vmem:[#allocation5 + $0xc40] ss:$16 sps:$4 sm:$0xff]  }
  0xf4   :  { %5052 = vmatpush2.bf16.msra.mxu1 %v7485_v63  ;;  %5012 = vmatprep.subr.bf16.mxu0 %v7490_v0  ;;  %v7561_v63 = vld [vmem:[#allocation5 + $0xe40] ss:$16 sps:$4 sm:$0xff]   ;;  %v7566_v0 = vld [vmem:[#allocation5 + $0xc24] ss:$16 sps:$4 sm:$0xff]  }
  0xf5   :  { %5053 = vmatprep.subr.bf16.mxu1 %v7493_v1  ;;  %v7569_v1 = vld [vmem:[#allocation5 + $0xe24] ss:$16 sps:$4 sm:$0xff]  }
  0xf7   :  { %5013 = vmatpush2.bf16.msra.mxu0 %v7488_v2  ;;  %v7564_v2 = vld [vmem:[#allocation5 + $0xc20] ss:$16 sps:$4 sm:$0xff]  }
  0xf8   :  { %5054 = vmatpush2.bf16.msra.mxu1 %v7491_v3  ;;  %5014 = vmatprep.subr.bf16.mxu0 %v7496_v4  ;;  %v7567_v3 = vld [vmem:[#allocation5 + $0xe20] ss:$16 sps:$4 sm:$0xff]   ;;  %v7572_v4 = vld [vmem:[#allocation5 + $0xc04] ss:$16 sps:$4 sm:$0xff]  }
  0xf9   :  { %5055 = vmatprep.subr.bf16.mxu1 %v7499_v5  ;;  %v7575_v5 = vld [vmem:[#allocation5 + $0xe04] ss:$16 sps:$4 sm:$0xff]  }
  0xfb   :  { %5015 = vmatpush2.bf16.msra.mxu0 %v7494_v8  ;;  %v7570_v8 = vld [vmem:[#allocation5 + $0xc00] ss:$16 sps:$4 sm:$0xff]  }
  0xfc   :  { %5056 = vmatpush2.bf16.msra.mxu1 %v7497_v9  ;;  %5016 = vmatprep.subr.bf16.mxu0 %v7502_v10  ;;  %v7573_v9 = vld [vmem:[#allocation5 + $0xe00] ss:$16 sps:$4 sm:$0xff]   ;;  %v7578_v10 = vld [vmem:[#allocation5 + $0xde4] ss:$16 sps:$4 sm:$0xff]  }
  0xfd   :  { %5057 = vmatprep.subr.bf16.mxu1 %v7505_v11  ;;  %v7581_v11 = vld [vmem:[#allocation5 + $0xfe4] ss:$16 sps:$4 sm:$0xff]  }
  0xff   :  { %5017 = vmatpush2.bf16.msra.mxu0 %v7500_v12  ;;  %v7576_v12 = vld [vmem:[#allocation5 + $0xde0] ss:$16 sps:$4 sm:$0xff]  }
 0x100   :  { %5058 = vmatpush2.bf16.msra.mxu1 %v7503_v13  ;;  %5018 = vmatprep.subr.bf16.mxu0 %v7508_v14  ;;  %v7579_v13 = vld [vmem:[#allocation5 + $0xfe0] ss:$16 sps:$4 sm:$0xff]   ;;  %v7584_v14 = vld [vmem:[#allocation5 + $0xdc4] ss:$16 sps:$4 sm:$0xff]  }
 0x101   :  { %5059 = vmatprep.subr.bf16.mxu1 %v7511_v15  ;;  %v7587_v15 = vld [vmem:[#allocation5 + $0xfc4] ss:$16 sps:$4 sm:$0xff]  }
 0x103   :  { %5019 = vmatpush2.bf16.msra.mxu0 %v7506_v18  ;;  %v7582_v18 = vld [vmem:[#allocation5 + $0xdc0] ss:$16 sps:$4 sm:$0xff]  }
 0x104   :  { %5060 = vmatpush2.bf16.msra.mxu1 %v7509_v19  ;;  %5020 = vmatprep.subr.bf16.mxu0 %v7514_v20  ;;  %v7585_v19 = vld [vmem:[#allocation5 + $0xfc0] ss:$16 sps:$4 sm:$0xff]   ;;  %v7590_v20 = vld [vmem:[#allocation5 + $0xda4] ss:$16 sps:$4 sm:$0xff]  }
 0x105   :  { %5061 = vmatprep.subr.bf16.mxu1 %v7517_v21  ;;  %v7593_v21 = vld [vmem:[#allocation5 + $0xfa4] ss:$16 sps:$4 sm:$0xff]  }
 0x107   :  { %5021 = vmatpush2.bf16.msra.mxu0 %v7512_v26  ;;  %v7588_v26 = vld [vmem:[#allocation5 + $0xda0] ss:$16 sps:$4 sm:$0xff]  }
 0x108   :  { %5062 = vmatpush2.bf16.msra.mxu1 %v7515_v27  ;;  %5022 = vmatprep.subr.bf16.mxu0 %v7520_v28  ;;  %v7591_v27 = vld [vmem:[#allocation5 + $0xfa0] ss:$16 sps:$4 sm:$0xff]   ;;  %v7596_v28 = vld [vmem:[#allocation5 + $0xd84] ss:$16 sps:$4 sm:$0xff]  }
 0x109   :  { %5063 = vmatprep.subr.bf16.mxu1 %v7523_v29  ;;  %v7599_v29 = vld [vmem:[#allocation5 + $0xf84] ss:$16 sps:$4 sm:$0xff]  }
 0x10b   :  { %5023 = vmatpush2.bf16.msra.mxu0 %v7518_v30  ;;  %v7594_v30 = vld [vmem:[#allocation5 + $0xd80] ss:$16 sps:$4 sm:$0xff]  }
 0x10c   :  { %5064 = vmatpush2.bf16.msra.mxu1 %v7521_v31  ;;  %5074 = vmatprep.subr.bf16.mxu0 %v7530_v32  ;;  %v7597_v31 = vld [vmem:[#allocation5 + $0xf80] ss:$16 sps:$4 sm:$0xff]   ;;  %v7602_v32 = vld [vmem:[#allocation5 + $0xd64] ss:$16 sps:$4 sm:$0xff]  }
 0x10d   :  { %5115 = vmatprep.subr.bf16.mxu1 %v7533_v33  ;;  %v7605_v33 = vld [vmem:[#allocation5 + $0xf64] ss:$16 sps:$4 sm:$0xff]  }
 0x10e   :  { %5025 = vmatmul.mubr.bf16.vlgmr.msra.gmra.mxu0 %v8724_v38 }
 0x10f   :  { %5066 = vmatmul.mubr.bf16.vlgmr.msra.gmra.mxu1 %v8728_v39  ;;  %5075 = vmatpush1.bf16.msra.mxu0 %v7528_v34  ;;  %v7600_v34 = vld [vmem:[#allocation5 + $0xd60] ss:$16 sps:$4 sm:$0xff]  }
 0x110   :  { %5116 = vmatpush1.bf16.msra.mxu1 %v7531_v41  ;;  %5076 = vmatprep.subr.bf16.mxu0 %v7536_v42  ;;  %v7603_v41 = vld [vmem:[#allocation5 + $0xf60] ss:$16 sps:$4 sm:$0xff]   ;;  %v7608_v42 = vld [vmem:[#allocation5 + $0xd44] ss:$16 sps:$4 sm:$0xff]  }
 0x111   :  { %5117 = vmatprep.subr.bf16.mxu1 %v7539_v43  ;;  %5106 = vmatprep.mubr.bf16.mxu0 %v8734_v44  ;;  %v7611_v43 = vld [vmem:[#allocation5 + $0xf44] ss:$16 sps:$4 sm:$0xff]  }
 0x112   :  { %5147 = vmatprep.mubr.bf16.mxu1 %v8738_v22 }
 0x113   :  { %5077 = vmatpush1.bf16.msra.mxu0 %v7534_v23  ;;  %v7606_v23 = vld [vmem:[#allocation5 + $0xd40] ss:$16 sps:$4 sm:$0xff]  }
 0x114   :  { %5118 = vmatpush1.bf16.msra.mxu1 %v7537_v45  ;;  %5078 = vmatprep.subr.bf16.mxu0 %v7542_v46  ;;  %v7609_v45 = vld [vmem:[#allocation5 + $0xf40] ss:$16 sps:$4 sm:$0xff]   ;;  %v7614_v46 = vld [vmem:[#allocation5 + $0xd24] ss:$16 sps:$4 sm:$0xff]  }
 0x115   :  { %5119 = vmatprep.subr.bf16.mxu1 %v7545_v48  ;;  %v884_v48 = vlaneseq }
 0x117   :  { %5079 = vmatpush1.bf16.msra.mxu0 %v7540_v49  ;;  %v7617_v49 = vld [vmem:[#allocation5 + $0xf24] ss:$16 sps:$4 sm:$0xff]  }
 0x118   :  { %5120 = vmatpush1.bf16.msra.mxu1 %v7543_v50  ;;  %5080 = vmatprep.subr.bf16.mxu0 %v7548_v52  ;;  %v7612_v50 = vld [vmem:[#allocation5 + $0xd20] ss:$16 sps:$4 sm:$0xff]  }
 0x119   :  { %5121 = vmatprep.subr.bf16.mxu1 %v7551_v53  ;;  %v7615_v52 = vld [vmem:[#allocation5 + $0xf20] ss:$16 sps:$4 sm:$0xff]   ;;  %v7620_v53 = vld [vmem:[#allocation5 + $0xd04] ss:$16 sps:$4 sm:$0xff]  }
 0x11b   :  { %5081 = vmatpush1.bf16.msra.mxu0 %v7546_v54  ;;  %v8744_v54 = vshrl.u32 %v884_v48, 7  ;;  %v7652_v48 = vld [vmem:[#allocation5 + $0x1060] ss:$16 sps:$4 sm:$0xff]  }
 0x11c   :  { %5122 = vmatpush1.bf16.msra.mxu1 %v7549_v55  ;;  %5082 = vmatprep.subr.bf16.mxu0 %v7554_v56  ;;  %v7623_v55 = vld [vmem:[#allocation5 + $0xf04] ss:$16 sps:$4 sm:$0xff]   ;;  %v7618_v56 = vld [vmem:[#allocation5 + $0xd00] ss:$16 sps:$4 sm:$0xff]  }
 0x11d   :  { %5123 = vmatprep.subr.bf16.mxu1 %v7557_v57  ;;  %v7621_v57 = vld [vmem:[#allocation5 + $0xf00] ss:$16 sps:$4 sm:$0xff]  }
 0x11f   :  { %5083 = vmatpush1.bf16.msra.mxu0 %v7552_v58  ;;  %v882_v58 = vld [vmem:[#allocation7] sm:$0xf] }
 0x120   :  { %5124 = vmatpush1.bf16.msra.mxu1 %v7555_v59  ;;  %5084 = vmatprep.subr.bf16.mxu0 %v7560_v60  ;;  %v886_v59 = vsub.s32 0, %v8744_v54  ;;  %v7630_v60 = vld [vmem:[#allocation5 + $0x10e4] ss:$16 sps:$4 sm:$0xff]  }
 0x121   :  { %5125 = vmatprep.subr.bf16.mxu1 %v7563_v61  ;;  %v7633_v61 = vld [vmem:[#allocation5 + $0x12e4] ss:$16 sps:$4 sm:$0xff]  }
 0x123   :  { %5085 = vmatpush1.bf16.msra.mxu0 %v7558_v62  ;;  %v7628_v62 = vld [vmem:[#allocation5 + $0x10e0] ss:$16 sps:$4 sm:$0xff]  }
 0x124   :  { %5126 = vmatpush1.bf16.msra.mxu1 %v7561_v63  ;;  %5086 = vmatprep.subr.bf16.mxu0 %v7566_v0  ;;  %v890_v63 = vsub.s32 1, %v8744_v54  ;;  %v8750_v0 = vcombine.low %v8720_v35, %v8720_v35 }
 0x125   :  { %5127 = vmatprep.subr.bf16.mxu1 %v7569_v1  ;;  %v8754_v1 = vcombine.low %v8730_v40, %v8730_v40 }
 0x127   :  { %5087 = vmatpush1.bf16.msra.mxu0 %v7564_v2  ;;  %v8756_v2 = vld [vmem:[#allocation2 + $0x40] sm:$0xff] }
 0x128   :  { %5128 = vmatpush1.bf16.msra.mxu1 %v7567_v3  ;;  %5088 = vmatprep.subr.bf16.mxu0 %v7572_v4  ;;  %v8758_v3 = vld [vmem:[#allocation2 + $0x48] sm:$0xff]  ;;  %v887_v4 = vrot.slane %v882_v58, %v886_v59  ;;  %v8762_v35 = vcombine.high %v8756_v2, %v8756_v2  ;;  %v7667_v59 = vld [vmem:[#allocation5 + $0x1220] ss:$16 sps:$4 sm:$0xff]  }
 0x129   :  { %5129 = vmatprep.subr.bf16.mxu1 %v7575_v5  ;;  %v7631_v5 = vld [vmem:[#allocation5 + $0x12e0] ss:$16 sps:$4 sm:$0xff]   ;;  %v8766_v40 = vcombine.high %v8758_v3, %v8758_v3 }
 0x12b   :  { %5089 = vmatpush1.bf16.msra.mxu0 %v7570_v8  ;;  %v7636_v8 = vld [vmem:[#allocation5 + $0x10c4] ss:$16 sps:$4 sm:$0xff]  }
 0x12c   :  { %5130 = vmatpush1.bf16.msra.mxu1 %v7573_v9  ;;  %5090 = vmatprep.subr.bf16.mxu0 %v7578_v10  ;;  %v7639_v9 = vld [vmem:[#allocation5 + $0x12c4] ss:$16 sps:$4 sm:$0xff]   ;;  %v891_v10 = vrot.slane %v882_v58, %v890_v63  ;;  %v7664_v58 = vld [vmem:[#allocation5 + $0x1020] ss:$16 sps:$4 sm:$0xff]  }
 0x12d   :  { %5131 = vmatprep.subr.bf16.mxu1 %v7581_v11  ;;  %v7673_v63 = vld [vmem:[#allocation5 + $0x1200] ss:$16 sps:$4 sm:$0xff]  }
 0x12f   :  { %5091 = vmatpush2.bf16.msra.mxu0 %v7576_v12 }
 0x130   :  { %5132 = vmatpush2.bf16.msra.mxu1 %v7579_v13  ;;  %5092 = vmatprep.subr.bf16.mxu0 %v7584_v14  ;;  %v7634_v13 = vld [vmem:[#allocation5 + $0x10c0] ss:$16 sps:$4 sm:$0xff]  }
 0x131   :  { %5133 = vmatprep.subr.bf16.mxu1 %v7587_v15  ;;  %v7637_v15 = vld [vmem:[#allocation5 + $0x12c0] ss:$16 sps:$4 sm:$0xff]  }
 0x133   :  { %5093 = vmatpush2.bf16.msra.mxu0 %v7582_v18 }
 0x134   :  { %5134 = vmatpush2.bf16.msra.mxu1 %v7585_v19  ;;  %5094 = vmatprep.subr.bf16.mxu0 %v7590_v20  ;;  %v7642_v20 = vld [vmem:[#allocation5 + $0x10a4] ss:$16 sps:$4 sm:$0xff]  }
 0x135   :  { %5135 = vmatprep.subr.bf16.mxu1 %v7593_v21  ;;  %v7645_v21 = vld [vmem:[#allocation5 + $0x12a4] ss:$16 sps:$4 sm:$0xff]  }
 0x137   :  { %5095 = vmatpush2.bf16.msra.mxu0 %v7588_v26 }
 0x138   :  { %5136 = vmatpush2.bf16.msra.mxu1 %v7591_v27  ;;  %5096 = vmatprep.subr.bf16.mxu0 %v7596_v28 }
 0x139   :  { %5137 = vmatprep.subr.bf16.mxu1 %v7599_v29 }
 0x13b   :  { %5097 = vmatpush2.bf16.msra.mxu0 %v7594_v30  ;;  %v7640_v30 = vld [vmem:[#allocation5 + $0x10a0] ss:$16 sps:$4 sm:$0xff]  }
 0x13c   :  { %5138 = vmatpush2.bf16.msra.mxu1 %v7597_v31  ;;  %5098 = vmatprep.subr.bf16.mxu0 %v7602_v32  ;;  %v7643_v32 = vld [vmem:[#allocation5 + $0x12a0] ss:$16 sps:$4 sm:$0xff]  }
 0x13d   :  { %5139 = vmatprep.subr.bf16.mxu1 %v7605_v33 }
 0x13f   :  { %5099 = vmatpush2.bf16.msra.mxu0 %v7600_v34 }
 0x140   :  { %5140 = vmatpush2.bf16.msra.mxu1 %v7603_v41  ;;  %5100 = vmatprep.subr.bf16.mxu0 %v7608_v42  ;;  %v7648_v41 = vld [vmem:[#allocation5 + $0x1084] ss:$16 sps:$4 sm:$0xff]  }
 0x141   :  { %5141 = vmatprep.subr.bf16.mxu1 %v7611_v43  ;;  %v7651_v42 = vld [vmem:[#allocation5 + $0x1284] ss:$16 sps:$4 sm:$0xff]   ;;  %v7646_v43 = vld [vmem:[#allocation5 + $0x1080] ss:$16 sps:$4 sm:$0xff]  }
 0x143   :  { %5101 = vmatpush2.bf16.msra.mxu0 %v7606_v23  ;;  %v7649_v23 = vld [vmem:[#allocation5 + $0x1280] ss:$16 sps:$4 sm:$0xff]  }
 0x144   :  { %5142 = vmatpush2.bf16.msra.mxu1 %v7609_v45  ;;  %5102 = vmatprep.subr.bf16.mxu0 %v7614_v46  ;;  %v7654_v45 = vld [vmem:[#allocation5 + $0x1064] ss:$16 sps:$4 sm:$0xff]  }
 0x145   :  { %5143 = vmatprep.subr.bf16.mxu1 %v7617_v49  ;;  %v7657_v46 = vld [vmem:[#allocation5 + $0x1264] ss:$16 sps:$4 sm:$0xff]   ;;  %v7655_v49 = vld [vmem:[#allocation5 + $0x1260] ss:$16 sps:$4 sm:$0xff]  }
 0x147   :  { %5103 = vmatpush2.bf16.msra.mxu0 %v7612_v50  ;;  %v7660_v50 = vld [vmem:[#allocation5 + $0x1044] ss:$16 sps:$4 sm:$0xff]  }
 0x148   :  { %5144 = vmatpush2.bf16.msra.mxu1 %v7615_v52  ;;  %5104 = vmatprep.subr.bf16.mxu0 %v7620_v53  ;;  %v7663_v52 = vld [vmem:[#allocation5 + $0x1244] ss:$16 sps:$4 sm:$0xff]   ;;  %v7658_v53 = vld [vmem:[#allocation5 + $0x1040] ss:$16 sps:$4 sm:$0xff]  }
 0x149   :  { %5145 = vmatprep.subr.bf16.mxu1 %v7623_v55  ;;  %v7661_v55 = vld [vmem:[#allocation5 + $0x1240] ss:$16 sps:$4 sm:$0xff]  }
 0x14b   :  { %5105 = vmatpush2.bf16.msra.mxu0 %v7618_v56  ;;  %v7666_v56 = vld [vmem:[#allocation5 + $0x1024] ss:$16 sps:$4 sm:$0xff]  }
 0x14c   :  { %5146 = vmatpush2.bf16.msra.mxu1 %v7621_v57  ;;  %5156 = vmatprep.subr.bf16.mxu0 %v7630_v60  ;;  %v7669_v57 = vld [vmem:[#allocation5 + $0x1224] ss:$16 sps:$4 sm:$0xff]  }
 0x14d   :  { %5197 = vmatprep.subr.bf16.mxu1 %v7633_v61  ;;  %v7672_v60 = vld [vmem:[#allocation5 + $0x1004] ss:$16 sps:$4 sm:$0xff]  }
 0x14e   :  { %v4862_v11 = vpop.f32.mrf.mxu0  ;;  %5107 = vmatmul.mubr.bf16.vlgmr.msra.gmra.mxu0 %v8750_v0  ;;  %v7675_v61 = vld [vmem:[#allocation5 + $0x1204] ss:$16 sps:$4 sm:$0xff]  }
 0x14f   :  { %v4903_v12 = vpop.f32.mrf.mxu1  ;;  %5148 = vmatmul.mubr.bf16.vlgmr.msra.gmra.mxu1 %v8754_v1  ;;  %v4863_v14 = vadd.f32 %v4862_v11, %v887_v4  ;;  %5157 = vmatpush1.bf16.msra.mxu0 %v7628_v62  ;;  %v7670_v62 = vld [vmem:[#allocation5 + $0x1000] ss:$16 sps:$4 sm:$0xff]   ;;  %v7678_v4 = vld [vmem:[#allocation5 + $0x11e4] ss:$16 sps:$4 sm:$0xff]  }
 0x150   :  { %5198 = vmatpush1.bf16.msra.mxu1 %v7631_v5  ;;  %v4864_v18 = vpop.f32.mrf.mxu0  ;;  %5158 = vmatprep.subr.bf16.mxu0 %v7636_v8  ;;  %v7681_v5 = vld [vmem:[#allocation5 + $0x13e4] ss:$16 sps:$4 sm:$0xff]   ;;  %v7676_v8 = vld [vmem:[#allocation5 + $0x11e0] ss:$16 sps:$4 sm:$0xff]  }
 0x151   :  { %v4905_v19 = vpop.f32.mrf.mxu1  ;;  %5199 = vmatprep.subr.bf16.mxu1 %v7639_v9  ;;  %v8770_v26 = vadd.f32 %v4903_v12, %v4863_v14  ;;  %v4865_v27 = vadd.f32 %v4864_v18, %v891_v10  ;;  %5188 = vmatprep.mubr.bf16.mxu0 %v8762_v35  ;;  %v7679_v9 = vld [vmem:[#allocation5 + $0x13e0] ss:$16 sps:$4 sm:$0xff]   ;;  %v7684_v10 = vld [vmem:[#allocation5 + $0x11c4] ss:$16 sps:$4 sm:$0xff]  }
 0x152   :  { %5229 = vmatprep.mubr.bf16.mxu1 %v8766_v40  ;;  %v4866_v28 = vpop.f32.mrf.mxu0  ;;  %v7687_v11 = vld [vmem:[#allocation5 + $0x13c4] ss:$16 sps:$4 sm:$0xff]   ;;  %v7682_v12 = vld [vmem:[#allocation5 + $0x11c0] ss:$16 sps:$4 sm:$0xff]  }
 0x153   :  { %v4907_v29 = vpop.f32.mrf.mxu1  ;;  %v8774_v31 = vadd.f32 %v4905_v19, %v4865_v27  ;;  %5159 = vmatpush1.bf16.msra.mxu0 %v7634_v13  ;;  %v7685_v13 = vld [vmem:[#allocation5 + $0x13c0] ss:$16 sps:$4 sm:$0xff]   ;;  %v7690_v14 = vld [vmem:[#allocation5 + $0x11a4] ss:$16 sps:$4 sm:$0xff]  }
 0x154   :  { %5200 = vmatpush1.bf16.msra.mxu1 %v7637_v15  ;;  %v4867_v33 = vpop.f32.mrf.mxu0  ;;  %5160 = vmatprep.subr.bf16.mxu0 %v7642_v20  ;;  %v7693_v15 = vld [vmem:[#allocation5 + $0x13a4] ss:$16 sps:$4 sm:$0xff]   ;;  %v7688_v18 = vld [vmem:[#allocation5 + $0x11a0] ss:$16 sps:$4 sm:$0xff]  }
 0x155   :  { %v4908_v34 = vpop.f32.mrf.mxu1  ;;  %5201 = vmatprep.subr.bf16.mxu1 %v7645_v21  ;;  %v7691_v19 = vld [vmem:[#allocation5 + $0x13a0] ss:$16 sps:$4 sm:$0xff]   ;;  %v7696_v20 = vld [vmem:[#allocation5 + $0x1184] ss:$16 sps:$4 sm:$0xff]  }
 0x156   :  { %v7699_v21 = vld [vmem:[#allocation5 + $0x1384] ss:$16 sps:$4 sm:$0xff]   ;;  %v7694_v27 = vld [vmem:[#allocation5 + $0x1180] ss:$16 sps:$4 sm:$0xff]  }
 0x157   :  { %5161 = vmatpush1.bf16.msra.mxu0 %v7640_v30  ;;  %v7697_v28 = vld [vmem:[#allocation5 + $0x1380] ss:$16 sps:$4 sm:$0xff]   ;;  %v7702_v29 = vld [vmem:[#allocation5 + $0x1164] ss:$16 sps:$4 sm:$0xff]  }
 0x158   :  { %5202 = vmatpush1.bf16.msra.mxu1 %v7643_v32  ;;  %5162 = vmatprep.subr.bf16.mxu0 %v7648_v41  ;;  %v7705_v30 = vld [vmem:[#allocation5 + $0x1364] ss:$16 sps:$4 sm:$0xff]   ;;  %v7700_v32 = vld [vmem:[#allocation5 + $0x1160] ss:$16 sps:$4 sm:$0xff]  }
 0x159   :  { %5203 = vmatprep.subr.bf16.mxu1 %v7651_v42  ;;  %v7703_v33 = vld [vmem:[#allocation5 + $0x1360] ss:$16 sps:$4 sm:$0xff]   ;;  %v7708_v34 = vld [vmem:[#allocation5 + $0x1144] ss:$16 sps:$4 sm:$0xff]  }
 0x15a   :  { %v7711_v41 = vld [vmem:[#allocation5 + $0x1344] ss:$16 sps:$4 sm:$0xff]   ;;  %v7706_v42 = vld [vmem:[#allocation5 + $0x1140] ss:$16 sps:$4 sm:$0xff]  }
 0x15b   :  { %5163 = vmatpush1.bf16.msra.mxu0 %v7646_v43  ;;  %v7709_v43 = vld [vmem:[#allocation5 + $0x1340] ss:$16 sps:$4 sm:$0xff]  }
 0x15c   :  { %5204 = vmatpush1.bf16.msra.mxu1 %v7649_v23  ;;  %5164 = vmatprep.subr.bf16.mxu0 %v7654_v45  ;;  %v7714_v23 = vld [vmem:[#allocation5 + $0x1124] ss:$16 sps:$4 sm:$0xff]  }
 0x15d   :  { %5205 = vmatprep.subr.bf16.mxu1 %v7657_v46  ;;  %v7717_v45 = vld [vmem:[#allocation5 + $0x1324] ss:$16 sps:$4 sm:$0xff]   ;;  %v7712_v46 = vld [vmem:[#allocation5 + $0x1120] ss:$16 sps:$4 sm:$0xff]  }
 0x15f   :  { %5165 = vmatpush1.bf16.msra.mxu0 %v7652_v48  ;;  %v7715_v48 = vld [vmem:[#allocation5 + $0x1320] ss:$16 sps:$4 sm:$0xff]  }
 0x160   :  { %5206 = vmatpush1.bf16.msra.mxu1 %v7655_v49  ;;  %5166 = vmatprep.subr.bf16.mxu0 %v7660_v50  ;;  %v7720_v49 = vld [vmem:[#allocation5 + $0x1104] ss:$16 sps:$4 sm:$0xff]  }
 0x161   :  { %5207 = vmatprep.subr.bf16.mxu1 %v7663_v52  ;;  %v7723_v50 = vld [vmem:[#allocation5 + $0x1304] ss:$16 sps:$4 sm:$0xff]   ;;  %v7718_v52 = vld [vmem:[#allocation5 + $0x1100] ss:$16 sps:$4 sm:$0xff]  }
 0x163   :  { %5167 = vmatpush1.bf16.msra.mxu0 %v7658_v53  ;;  %v7721_v53 = vld [vmem:[#allocation5 + $0x1300] ss:$16 sps:$4 sm:$0xff]  }
 0x164   :  { %5208 = vmatpush1.bf16.msra.mxu1 %v7661_v55  ;;  %5168 = vmatprep.subr.bf16.mxu0 %v7666_v56  ;;  %v7730_v55 = vld [vmem:[#allocation5 + $0x14e4] ss:$16 sps:$4 sm:$0xff]  }
 0x165   :  { %5209 = vmatprep.subr.bf16.mxu1 %v7669_v57  ;;  %v7733_v56 = vld [vmem:[#allocation5 + $0x16e4] ss:$16 sps:$4 sm:$0xff]  }
 0x166   :  { %v8776_v57 = vld [vmem:[#allocation2 + $0x50] sm:$0xff] }
 0x167   :  { %5169 = vmatpush1.bf16.msra.mxu0 %v7664_v58  ;;  %v8778_v58 = vld [vmem:[#allocation2 + $0x58] sm:$0xff] }
 0x168   :  { %5210 = vmatpush1.bf16.msra.mxu1 %v7667_v59  ;;  %5170 = vmatprep.subr.bf16.mxu0 %v7672_v60  ;;  %v7728_v59 = vld [vmem:[#allocation5 + $0x14e0] ss:$16 sps:$4 sm:$0xff]  }
 0x169   :  { %5211 = vmatprep.subr.bf16.mxu1 %v7675_v61  ;;  %v7731_v60 = vld [vmem:[#allocation5 + $0x16e0] ss:$16 sps:$4 sm:$0xff]   ;;  %v8782_v61 = vcombine.low %v8756_v2, %v8756_v2  ;;  %v8794_v2 = vcombine.high %v8778_v58, %v8778_v58 }
 0x16b   :  { %5171 = vmatpush1.bf16.msra.mxu0 %v7670_v62  ;;  %v8786_v62 = vcombine.low %v8758_v3, %v8758_v3 }
 0x16c   :  { %5212 = vmatpush1.bf16.msra.mxu1 %v7673_v63  ;;  %5172 = vmatprep.subr.bf16.mxu0 %v7678_v4  ;;  %v7736_v63 = vld [vmem:[#allocation5 + $0x14c4] ss:$16 sps:$4 sm:$0xff]  }
 0x16d   :  { %5213 = vmatprep.subr.bf16.mxu1 %v7681_v5  ;;  %v7739_v4 = vld [vmem:[#allocation5 + $0x16c4] ss:$16 sps:$4 sm:$0xff]   ;;  %v7734_v5 = vld [vmem:[#allocation5 + $0x14c0] ss:$16 sps:$4 sm:$0xff]  }
 0x16f   :  { %5173 = vmatpush2.bf16.msra.mxu0 %v7676_v8  ;;  %v7737_v8 = vld [vmem:[#allocation5 + $0x16c0] ss:$16 sps:$4 sm:$0xff]  }
 0x170   :  { %5214 = vmatpush2.bf16.msra.mxu1 %v7679_v9  ;;  %5174 = vmatprep.subr.bf16.mxu0 %v7684_v10  ;;  %v8790_v9 = vcombine.high %v8776_v57, %v8776_v57 }
 0x171   :  { %5215 = vmatprep.subr.bf16.mxu1 %v7687_v11 }
 0x173   :  { %5175 = vmatpush2.bf16.msra.mxu0 %v7682_v12 }
 0x174   :  { %5216 = vmatpush2.bf16.msra.mxu1 %v7685_v13  ;;  %5176 = vmatprep.subr.bf16.mxu0 %v7690_v14  ;;  %v7742_v14 = vld [vmem:[#allocation5 + $0x14a4] ss:$16 sps:$4 sm:$0xff]  }
 0x175   :  { %5217 = vmatprep.subr.bf16.mxu1 %v7693_v15  ;;  %v7745_v15 = vld [vmem:[#allocation5 + $0x16a4] ss:$16 sps:$4 sm:$0xff]  }
 0x177   :  { %5177 = vmatpush2.bf16.msra.mxu0 %v7688_v18 }
 0x178   :  { %5218 = vmatpush2.bf16.msra.mxu1 %v7691_v19  ;;  %5178 = vmatprep.subr.bf16.mxu0 %v7696_v20  ;;  %v7740_v20 = vld [vmem:[#allocation5 + $0x14a0] ss:$16 sps:$4 sm:$0xff]  }
 0x179   :  { %5219 = vmatprep.subr.bf16.mxu1 %v7699_v21  ;;  %v7743_v21 = vld [vmem:[#allocation5 + $0x16a0] ss:$16 sps:$4 sm:$0xff]  }
 0x17b   :  { %5179 = vmatpush2.bf16.msra.mxu0 %v7694_v27 }
 0x17c   :  { %5220 = vmatpush2.bf16.msra.mxu1 %v7697_v28  ;;  %5180 = vmatprep.subr.bf16.mxu0 %v7702_v29 }
 0x17d   :  { %5221 = vmatprep.subr.bf16.mxu1 %v7705_v30 }
 0x17f   :  { %5181 = vmatpush2.bf16.msra.mxu0 %v7700_v32  ;;  %v7748_v32 = vld [vmem:[#allocation5 + $0x1484] ss:$16 sps:$4 sm:$0xff]  }
 0x180   :  { %5222 = vmatpush2.bf16.msra.mxu1 %v7703_v33  ;;  %5182 = vmatprep.subr.bf16.mxu0 %v7708_v34  ;;  %v7751_v33 = vld [vmem:[#allocation5 + $0x1684] ss:$16 sps:$4 sm:$0xff]   ;;  %v7749_v34 = vld [vmem:[#allocation5 + $0x1680] ss:$16 sps:$4 sm:$0xff]  }
 0x181   :  { %5223 = vmatprep.subr.bf16.mxu1 %v7711_v41  ;;  %v7754_v41 = vld [vmem:[#allocation5 + $0x1464] ss:$16 sps:$4 sm:$0xff]  }
 0x183   :  { %5183 = vmatpush2.bf16.msra.mxu0 %v7706_v42  ;;  %v7757_v42 = vld [vmem:[#allocation5 + $0x1664] ss:$16 sps:$4 sm:$0xff]  }
 0x184   :  { %5224 = vmatpush2.bf16.msra.mxu1 %v7709_v43  ;;  %5184 = vmatprep.subr.bf16.mxu0 %v7714_v23  ;;  %v7752_v43 = vld [vmem:[#allocation5 + $0x1460] ss:$16 sps:$4 sm:$0xff]  }
 0x185   :  { %5225 = vmatprep.subr.bf16.mxu1 %v7717_v45  ;;  %v7755_v23 = vld [vmem:[#allocation5 + $0x1660] ss:$16 sps:$4 sm:$0xff]   ;;  %v7760_v45 = vld [vmem:[#allocation5 + $0x1444] ss:$16 sps:$4 sm:$0xff]  }
 0x187   :  { %5185 = vmatpush2.bf16.msra.mxu0 %v7712_v46  ;;  %v7763_v46 = vld [vmem:[#allocation5 + $0x1644] ss:$16 sps:$4 sm:$0xff]  }
 0x188   :  { %5226 = vmatpush2.bf16.msra.mxu1 %v7715_v48  ;;  %5186 = vmatprep.subr.bf16.mxu0 %v7720_v49  ;;  %v7758_v48 = vld [vmem:[#allocation5 + $0x1440] ss:$16 sps:$4 sm:$0xff]  }
 0x189   :  { %5227 = vmatprep.subr.bf16.mxu1 %v7723_v50  ;;  %v7761_v49 = vld [vmem:[#allocation5 + $0x1640] ss:$16 sps:$4 sm:$0xff]   ;;  %v7766_v50 = vld [vmem:[#allocation5 + $0x1424] ss:$16 sps:$4 sm:$0xff]  }
 0x18b   :  { %5187 = vmatpush2.bf16.msra.mxu0 %v7718_v52  ;;  %v7769_v52 = vld [vmem:[#allocation5 + $0x1624] ss:$16 sps:$4 sm:$0xff]  }
 0x18c   :  { %5228 = vmatpush2.bf16.msra.mxu1 %v7721_v53  ;;  %5238 = vmatprep.subr.bf16.mxu0 %v7730_v55  ;;  %v7764_v53 = vld [vmem:[#allocation5 + $0x1420] ss:$16 sps:$4 sm:$0xff]  }
 0x18d   :  { %5279 = vmatprep.subr.bf16.mxu1 %v7733_v56  ;;  %v7767_v55 = vld [vmem:[#allocation5 + $0x1620] ss:$16 sps:$4 sm:$0xff]   ;;  %v7772_v56 = vld [vmem:[#allocation5 + $0x1404] ss:$16 sps:$4 sm:$0xff]  }
 0x18e   :  { %v4944_v10 = vpop.f32.mrf.mxu0  ;;  %5189 = vmatmul.mubr.bf16.vlgmr.msra.gmra.mxu0 %v8782_v61 }
 0x18f   :  { %v4985_v11 = vpop.f32.mrf.mxu1  ;;  %5230 = vmatmul.mubr.bf16.vlgmr.msra.gmra.mxu1 %v8786_v62  ;;  %v4945_v3 = vadd.f32 %v4944_v10, %v8770_v26  ;;  %5239 = vmatpush1.bf16.msra.mxu0 %v7728_v59  ;;  %v7775_v59 = vld [vmem:[#allocation5 + $0x1604] ss:$16 sps:$4 sm:$0xff]   ;;  %v7779_v10 = vld [vmem:[#allocation5 + $0x17e0] ss:$16 sps:$4 sm:$0xff]  }
 0x190   :  { %5280 = vmatpush1.bf16.msra.mxu1 %v7731_v60  ;;  %v4946_v12 = vpop.f32.mrf.mxu0  ;;  %5240 = vmatprep.subr.bf16.mxu0 %v7736_v63  ;;  %v7770_v60 = vld [vmem:[#allocation5 + $0x1400] ss:$16 sps:$4 sm:$0xff]  }
 0x191   :  { %v4987_v13 = vpop.f32.mrf.mxu1  ;;  %5281 = vmatprep.subr.bf16.mxu1 %v7739_v4  ;;  %v8799_v18 = vadd.f32 %v4985_v11, %v4945_v3  ;;  %v4947_v19 = vadd.f32 %v4946_v12, %v8774_v31  ;;  %5270 = vmatprep.mubr.bf16.mxu0 %v8790_v9  ;;  %v7746_v31 = vld [vmem:[#allocation5 + $0x1480] ss:$16 sps:$4 sm:$0xff]   ;;  %v7778_v4 = vld [vmem:[#allocation5 + $0x15e4] ss:$16 sps:$4 sm:$0xff]  }
 0x192   :  { %5311 = vmatprep.mubr.bf16.mxu1 %v8794_v2  ;;  %v4948_v27 = vpop.f32.mrf.mxu0  ;;  %v7773_v63 = vld [vmem:[#allocation5 + $0x1600] ss:$16 sps:$4 sm:$0xff]   ;;  %v7784_v11 = vld [vmem:[#allocation5 + $0x15c4] ss:$16 sps:$4 sm:$0xff]  }
 0x193   :  { %v4989_v26 = vpop.f32.mrf.mxu1  ;;  %v8804_v28 = vadd.f32 %v4987_v13, %v4947_v19  ;;  %5241 = vmatpush1.bf16.msra.mxu0 %v7734_v5  ;;  %v7781_v5 = vld [vmem:[#allocation5 + $0x17e4] ss:$16 sps:$4 sm:$0xff]   ;;  %v7782_v12 = vld [vmem:[#allocation5 + $0x15c0] ss:$16 sps:$4 sm:$0xff]  }
 0x194   :  { %5282 = vmatpush1.bf16.msra.mxu1 %v7737_v8  ;;  %v4949_v29 = vpop.f32.mrf.mxu0  ;;  %5242 = vmatprep.subr.bf16.mxu0 %v7742_v14  ;;  %v7776_v8 = vld [vmem:[#allocation5 + $0x15e0] ss:$16 sps:$4 sm:$0xff]   ;;  %v7787_v3 = vld [vmem:[#allocation5 + $0x17c4] ss:$16 sps:$4 sm:$0xff]  }
 0x195   :  { %v4990_v30 = vpop.f32.mrf.mxu1  ;;  %5283 = vmatprep.subr.bf16.mxu1 %v7745_v15  ;;  %v7785_v13 = vld [vmem:[#allocation5 + $0x17c0] ss:$16 sps:$4 sm:$0xff]   ;;  %v7790_v14 = vld [vmem:[#allocation5 + $0x15a4] ss:$16 sps:$4 sm:$0xff]  }
 0x196   :  { %v7793_v15 = vld [vmem:[#allocation5 + $0x17a4] ss:$16 sps:$4 sm:$0xff]   ;;  %v7788_v19 = vld [vmem:[#allocation5 + $0x15a0] ss:$16 sps:$4 sm:$0xff]  }
 0x197   :  { %5243 = vmatpush1.bf16.msra.mxu0 %v7740_v20  ;;  %v7791_v20 = vld [vmem:[#allocation5 + $0x17a0] ss:$16 sps:$4 sm:$0xff]   ;;  %v7799_v27 = vld [vmem:[#allocation5 + $0x1784] ss:$16 sps:$4 sm:$0xff]  }
 0x198   :  { %5284 = vmatpush1.bf16.msra.mxu1 %v7743_v21  ;;  %5244 = vmatprep.subr.bf16.mxu0 %v7748_v32  ;;  %v7796_v21 = vld [vmem:[#allocation5 + $0x1584] ss:$16 sps:$4 sm:$0xff]   ;;  %v7794_v26 = vld [vmem:[#allocation5 + $0x1580] ss:$16 sps:$4 sm:$0xff]  }
 0x199   :  { %5285 = vmatprep.subr.bf16.mxu1 %v7751_v33  ;;  %v7797_v29 = vld [vmem:[#allocation5 + $0x1780] ss:$16 sps:$4 sm:$0xff]   ;;  %v7802_v30 = vld [vmem:[#allocation5 + $0x1564] ss:$16 sps:$4 sm:$0xff]  }
 0x19a   :  { %v7805_v32 = vld [vmem:[#allocation5 + $0x1764] ss:$16 sps:$4 sm:$0xff]   ;;  %v7800_v33 = vld [vmem:[#allocation5 + $0x1560] ss:$16 sps:$4 sm:$0xff]  }
 0x19b   :  { %5245 = vmatpush1.bf16.msra.mxu0 %v7746_v31  ;;  %v7803_v31 = vld [vmem:[#allocation5 + $0x1760] ss:$16 sps:$4 sm:$0xff]  }
 0x19c   :  { %5286 = vmatpush1.bf16.msra.mxu1 %v7749_v34  ;;  %5246 = vmatprep.subr.bf16.mxu0 %v7754_v41  ;;  %v7808_v34 = vld [vmem:[#allocation5 + $0x1544] ss:$16 sps:$4 sm:$0xff]  }
 0x19d   :  { %5287 = vmatprep.subr.bf16.mxu1 %v7757_v42  ;;  %v7811_v41 = vld [vmem:[#allocation5 + $0x1744] ss:$16 sps:$4 sm:$0xff]   ;;  %v7806_v42 = vld [vmem:[#allocation5 + $0x1540] ss:$16 sps:$4 sm:$0xff]  }
 0x19f   :  { %5247 = vmatpush1.bf16.msra.mxu0 %v7752_v43  ;;  %v7809_v43 = vld [vmem:[#allocation5 + $0x1740] ss:$16 sps:$4 sm:$0xff]  }
 0x1a0   :  { %5288 = vmatpush1.bf16.msra.mxu1 %v7755_v23  ;;  %5248 = vmatprep.subr.bf16.mxu0 %v7760_v45  ;;  %v7814_v23 = vld [vmem:[#allocation5 + $0x1524] ss:$16 sps:$4 sm:$0xff]  }
 0x1a1   :  { %5289 = vmatprep.subr.bf16.mxu1 %v7763_v46  ;;  %v7817_v45 = vld [vmem:[#allocation5 + $0x1724] ss:$16 sps:$4 sm:$0xff]   ;;  %v7812_v46 = vld [vmem:[#allocation5 + $0x1520] ss:$16 sps:$4 sm:$0xff]  }
 0x1a3   :  { %5249 = vmatpush1.bf16.msra.mxu0 %v7758_v48  ;;  %v7815_v48 = vld [vmem:[#allocation5 + $0x1720] ss:$16 sps:$4 sm:$0xff]  }
 0x1a4   :  { %5290 = vmatpush1.bf16.msra.mxu1 %v7761_v49  ;;  %5250 = vmatprep.subr.bf16.mxu0 %v7766_v50  ;;  %v7820_v49 = vld [vmem:[#allocation5 + $0x1504] ss:$16 sps:$4 sm:$0xff]  }
 0x1a5   :  { %5291 = vmatprep.subr.bf16.mxu1 %v7769_v52  ;;  %v7823_v50 = vld [vmem:[#allocation5 + $0x1704] ss:$16 sps:$4 sm:$0xff]   ;;  %v7818_v52 = vld [vmem:[#allocation5 + $0x1500] ss:$16 sps:$4 sm:$0xff]  }
 0x1a7   :  { %5251 = vmatpush1.bf16.msra.mxu0 %v7764_v53  ;;  %v7821_v53 = vld [vmem:[#allocation5 + $0x1700] ss:$16 sps:$4 sm:$0xff]  }
 0x1a8   :  { %5292 = vmatpush1.bf16.msra.mxu1 %v7767_v55  ;;  %5252 = vmatprep.subr.bf16.mxu0 %v7772_v56  ;;  %v7830_v55 = vld [vmem:[#allocation5 + $0xec] ss:$16 sps:$4 sm:$0xff]  }
 0x1a9   :  { %5293 = vmatprep.subr.bf16.mxu1 %v7775_v59  ;;  %v7833_v56 = vld [vmem:[#allocation5 + $0x2ec] ss:$16 sps:$4 sm:$0xff]   ;;  %v7828_v59 = vld [vmem:[#allocation5 + $0xe8] ss:$16 sps:$4 sm:$0xff]  }
 0x1ab   :  { %5253 = vmatpush1.bf16.msra.mxu0 %v7770_v60  ;;  %v7831_v60 = vld [vmem:[#allocation5 + $0x2e8] ss:$16 sps:$4 sm:$0xff]  }
 0x1ac   :  { %5294 = vmatpush1.bf16.msra.mxu1 %v7773_v63  ;;  %5254 = vmatprep.subr.bf16.mxu0 %v7778_v4  ;;  %v8808_v63 = vcombine.low %v8776_v57, %v8776_v57  ;;  %v8812_v4 = vcombine.low %v8778_v58, %v8778_v58 }
 0x1ad   :  { %5295 = vmatprep.subr.bf16.mxu1 %v7781_v5  ;;  %v7836_v5 = vld [vmem:[#allocation5 + $0xcc] ss:$16 sps:$4 sm:$0xff]  }
 0x1af   :  { %5255 = vmatpush2.bf16.msra.mxu0 %v7776_v8  ;;  %v7839_v8 = vld [vmem:[#allocation5 + $0x2cc] ss:$16 sps:$4 sm:$0xff]  }
 0x1b0   :  { %5296 = vmatpush2.bf16.msra.mxu1 %v7779_v10  ;;  %5256 = vmatprep.subr.bf16.mxu0 %v7784_v11  ;;  %v7834_v10 = vld [vmem:[#allocation5 + $0xc8] ss:$16 sps:$4 sm:$0xff]  }
 0x1b1   :  { %5297 = vmatprep.subr.bf16.mxu1 %v7787_v3  ;;  %v7837_v11 = vld [vmem:[#allocation5 + $0x2c8] ss:$16 sps:$4 sm:$0xff]  }
 0x1b3   :  { %5257 = vmatpush2.bf16.msra.mxu0 %v7782_v12 }
 0x1b4   :  { %5298 = vmatpush2.bf16.msra.mxu1 %v7785_v13  ;;  %5258 = vmatprep.subr.bf16.mxu0 %v7790_v14  ;;  %v7842_v14 = vld [vmem:[#allocation5 + $0xac] ss:$16 sps:$4 sm:$0xff]  }
 0x1b5   :  { %5299 = vmatprep.subr.bf16.mxu1 %v7793_v15  ;;  %v7845_v15 = vld [vmem:[#allocation5 + $0x2ac] ss:$16 sps:$4 sm:$0xff]  }
 0x1b7   :  { %5259 = vmatpush2.bf16.msra.mxu0 %v7788_v19 }
 0x1b8   :  { %5300 = vmatpush2.bf16.msra.mxu1 %v7791_v20  ;;  %5260 = vmatprep.subr.bf16.mxu0 %v7796_v21  ;;  %v7840_v21 = vld [vmem:[#allocation5 + $0xa8] ss:$16 sps:$4 sm:$0xff]  }
 0x1b9   :  { %5301 = vmatprep.subr.bf16.mxu1 %v7799_v27  ;;  %v7843_v27 = vld [vmem:[#allocation5 + $0x2a8] ss:$16 sps:$4 sm:$0xff]  }
 0x1bb   :  { %5261 = vmatpush2.bf16.msra.mxu0 %v7794_v26 }
 0x1bc   :  { %5302 = vmatpush2.bf16.msra.mxu1 %v7797_v29  ;;  %5262 = vmatprep.subr.bf16.mxu0 %v7802_v30 }
 0x1bd   :  { %5303 = vmatprep.subr.bf16.mxu1 %v7805_v32 }
 0x1bf   :  { %5263 = vmatpush2.bf16.msra.mxu0 %v7800_v33  ;;  %v7848_v33 = vld [vmem:[#allocation5 + $0x8c] ss:$16 sps:$4 sm:$0xff]  }
 0x1c0   :  { %5304 = vmatpush2.bf16.msra.mxu1 %v7803_v31  ;;  %5264 = vmatprep.subr.bf16.mxu0 %v7808_v34  ;;  %v7851_v31 = vld [vmem:[#allocation5 + $0x28c] ss:$16 sps:$4 sm:$0xff]   ;;  %v7849_v34 = vld [vmem:[#allocation5 + $0x288] ss:$16 sps:$4 sm:$0xff]  }
 0x1c1   :  { %5305 = vmatprep.subr.bf16.mxu1 %v7811_v41  ;;  %v7852_v41 = vld [vmem:[#allocation5 + $0x68] ss:$16 sps:$4 sm:$0xff]  }
 0x1c3   :  { %5265 = vmatpush2.bf16.msra.mxu0 %v7806_v42  ;;  %v7855_v42 = vld [vmem:[#allocation5 + $0x268] ss:$16 sps:$4 sm:$0xff]  }
 0x1c4   :  { %5306 = vmatpush2.bf16.msra.mxu1 %v7809_v43  ;;  %5266 = vmatprep.subr.bf16.mxu0 %v7814_v23  ;;  %v7860_v43 = vld [vmem:[#allocation5 + $0x4c] ss:$16 sps:$4 sm:$0xff]  }
 0x1c5   :  { %5307 = vmatprep.subr.bf16.mxu1 %v7817_v45  ;;  %v7863_v23 = vld [vmem:[#allocation5 + $0x24c] ss:$16 sps:$4 sm:$0xff]   ;;  %v7858_v45 = vld [vmem:[#allocation5 + $0x48] ss:$16 sps:$4 sm:$0xff]  }
 0x1c7   :  { %5267 = vmatpush2.bf16.msra.mxu0 %v7812_v46  ;;  %v7861_v46 = vld [vmem:[#allocation5 + $0x248] ss:$16 sps:$4 sm:$0xff]  }
 0x1c8   :  { %5308 = vmatpush2.bf16.msra.mxu1 %v7815_v48  ;;  %5268 = vmatprep.subr.bf16.mxu0 %v7820_v49  ;;  %v7866_v48 = vld [vmem:[#allocation5 + $0x2c] ss:$16 sps:$4 sm:$0xff]  }
 0x1c9   :  { %5309 = vmatprep.subr.bf16.mxu1 %v7823_v50  ;;  %v7869_v49 = vld [vmem:[#allocation5 + $0x22c] ss:$16 sps:$4 sm:$0xff]   ;;  %v7864_v50 = vld [vmem:[#allocation5 + $0x28] ss:$16 sps:$4 sm:$0xff]  }
 0x1cb   :  { %5269 = vmatpush2.bf16.msra.mxu0 %v7818_v52  ;;  %v7867_v52 = vld [vmem:[#allocation5 + $0x228] ss:$16 sps:$4 sm:$0xff]  }
 0x1cc   :  { %5310 = vmatpush2.bf16.msra.mxu1 %v7821_v53  ;;  %5320 = vmatprep.subr.bf16.mxu0 %v7830_v55  ;;  %v7872_v53 = vld [vmem:[#allocation5 + $0xc] ss:$16 sps:$4 sm:$0xff]  }
 0x1cd   :  { %5361 = vmatprep.subr.bf16.mxu1 %v7833_v56  ;;  %v7875_v55 = vld [vmem:[#allocation5 + $0x20c] ss:$16 sps:$4 sm:$0xff]   ;;  %v7870_v56 = vld [vmem:[#allocation5 + $0x8] ss:$16 sps:$4 sm:$0xff]  }
 0x1ce   :  { %v5026_v3 = vpop.f32.mrf.mxu0  ;;  %5271 = vmatmul.mubr.bf16.vlgmr.msra.gmra.mxu0 %v8808_v63 }
 0x1cf   :  { %v5067_v12 = vpop.f32.mrf.mxu1  ;;  %5312 = vmatmul.mubr.bf16.vlgmr.msra.gmra.mxu1 %v8812_v4  ;;  %v5027_v57 = vadd.f32 %v5026_v3, %v8799_v18  ;;  %5321 = vmatpush1.bf16.msra.mxu0 %v7828_v59  ;;  %v7873_v59 = vld [vmem:[#allocation5 + $0x208] ss:$16 sps:$4 sm:$0xff]   ;;  %v7887_v3 = vld [vmem:[#allocation5 + $0x3cc] ss:$16 sps:$4 sm:$0xff]  }
 0x1d0   :  { %5362 = vmatpush1.bf16.msra.mxu1 %v7831_v60  ;;  %v5028_v58 = vpop.f32.mrf.mxu0  ;;  %5322 = vmatprep.subr.bf16.mxu0 %v7836_v5  ;;  %v7878_v60 = vld [vmem:[#allocation5 + $0x1ec] ss:$16 sps:$4 sm:$0xff]  }
 0x1d1   :  { %v5069_v13 = vpop.f32.mrf.mxu1  ;;  %5363 = vmatprep.subr.bf16.mxu1 %v7839_v8  ;;  %v8817_v19 = vadd.f32 %v5067_v12, %v5027_v57  ;;  %v5029_v20 = vadd.f32 %v5028_v58, %v8804_v28  ;;  %5352 = vmatprep.mubr.bf16.mxu0 %v8670_v47  ;;  %v7846_v28 = vld [vmem:[#allocation5 + $0x88] ss:$16 sps:$4 sm:$0xff]   ;;  %v7854_v47 = vld [vmem:[#allocation5 + $0x6c] ss:$16 sps:$4 sm:$0xff]  }
 0x1d2   :  { %5393 = vmatprep.mubr.bf16.mxu1 %v8672_v51  ;;  %v5030_v26 = vpop.f32.mrf.mxu0  ;;  %v7857_v51 = vld [vmem:[#allocation5 + $0x26c] ss:$16 sps:$4 sm:$0xff]   ;;  %v7876_v8 = vld [vmem:[#allocation5 + $0x1e8] ss:$16 sps:$4 sm:$0xff]  }
 0x1d3   :  { %v5071_v18 = vpop.f32.mrf.mxu1  ;;  %v8822_v29 = vadd.f32 %v5069_v13, %v5029_v20  ;;  %5323 = vmatpush1.bf16.msra.mxu0 %v7834_v10  ;;  %v7881_v5 = vld [vmem:[#allocation5 + $0x3ec] ss:$16 sps:$4 sm:$0xff]   ;;  %v7879_v10 = vld [vmem:[#allocation5 + $0x3e8] ss:$16 sps:$4 sm:$0xff]  }
 0x1d4   :  { %5364 = vmatpush1.bf16.msra.mxu1 %v7837_v11  ;;  %v5031_v30 = vpop.f32.mrf.mxu0  ;;  %5324 = vmatprep.subr.bf16.mxu0 %v7842_v14  ;;  %v7884_v11 = vld [vmem:[#allocation5 + $0x1cc] ss:$16 sps:$4 sm:$0xff]   ;;  %v7882_v12 = vld [vmem:[#allocation5 + $0x1c8] ss:$16 sps:$4 sm:$0xff]  }
 0x1d5   :  { %v5072_v32 = vpop.f32.mrf.mxu1  ;;  %5365 = vmatprep.subr.bf16.mxu1 %v7845_v15  ;;  %v7885_v57 = vld [vmem:[#allocation5 + $0x3c8] ss:$16 sps:$4 sm:$0xff]   ;;  %v7890_v58 = vld [vmem:[#allocation5 + $0x1ac] ss:$16 sps:$4 sm:$0xff]  }
 0x1d6   :  { %v7893_v13 = vld [vmem:[#allocation5 + $0x3ac] ss:$16 sps:$4 sm:$0xff]   ;;  %v7888_v14 = vld [vmem:[#allocation5 + $0x1a8] ss:$16 sps:$4 sm:$0xff]  }
 0x1d7   :  { %5325 = vmatpush1.bf16.msra.mxu0 %v7840_v21  ;;  %v7891_v15 = vld [vmem:[#allocation5 + $0x3a8] ss:$16 sps:$4 sm:$0xff]   ;;  %v7896_v20 = vld [vmem:[#allocation5 + $0x18c] ss:$16 sps:$4 sm:$0xff]  }
 0x1d8   :  { %5366 = vmatpush1.bf16.msra.mxu1 %v7843_v27  ;;  %5326 = vmatprep.subr.bf16.mxu0 %v7848_v33  ;;  %v7899_v21 = vld [vmem:[#allocation5 + $0x38c] ss:$16 sps:$4 sm:$0xff]   ;;  %v7894_v27 = vld [vmem:[#allocation5 + $0x188] ss:$16 sps:$4 sm:$0xff]  }
 0x1d9   :  { %5367 = vmatprep.subr.bf16.mxu1 %v7851_v31  ;;  %v7897_v26 = vld [vmem:[#allocation5 + $0x388] ss:$16 sps:$4 sm:$0xff]   ;;  %v7902_v18 = vld [vmem:[#allocation5 + $0x16c] ss:$16 sps:$4 sm:$0xff]  }
 0x1da   :  { %v7905_v30 = vld [vmem:[#allocation5 + $0x36c] ss:$16 sps:$4 sm:$0xff]   ;;  %v7900_v32 = vld [vmem:[#allocation5 + $0x168] ss:$16 sps:$4 sm:$0xff]  }
 0x1db   :  { %5327 = vmatpush1.bf16.msra.mxu0 %v7846_v28  ;;  %v7903_v33 = vld [vmem:[#allocation5 + $0x368] ss:$16 sps:$4 sm:$0xff]   ;;  %v7908_v31 = vld [vmem:[#allocation5 + $0x14c] ss:$16 sps:$4 sm:$0xff]  }
 0x1dc   :  { %5368 = vmatpush1.bf16.msra.mxu1 %v7849_v34  ;;  %5328 = vmatprep.subr.bf16.mxu0 %v7854_v47  ;;  %v7911_v28 = vld [vmem:[#allocation5 + $0x34c] ss:$16 sps:$4 sm:$0xff]   ;;  %v7906_v34 = vld [vmem:[#allocation5 + $0x148] ss:$16 sps:$4 sm:$0xff]  }
 0x1dd   :  { %5369 = vmatprep.subr.bf16.mxu1 %v7857_v51  ;;  %v7909_v47 = vld [vmem:[#allocation5 + $0x348] ss:$16 sps:$4 sm:$0xff]   ;;  %v7914_v51 = vld [vmem:[#allocation5 + $0x12c] ss:$16 sps:$4 sm:$0xff]  }
 0x1df   :  { %5329 = vmatpush1.bf16.msra.mxu0 %v7852_v41  ;;  %v7917_v41 = vld [vmem:[#allocation5 + $0x32c] ss:$16 sps:$4 sm:$0xff]  }
 0x1e0   :  { %5370 = vmatpush1.bf16.msra.mxu1 %v7855_v42  ;;  %5330 = vmatprep.subr.bf16.mxu0 %v7860_v43  ;;  %v7912_v42 = vld [vmem:[#allocation5 + $0x128] ss:$16 sps:$4 sm:$0xff]  }
 0x1e1   :  { %5371 = vmatprep.subr.bf16.mxu1 %v7863_v23  ;;  %v7915_v43 = vld [vmem:[#allocation5 + $0x328] ss:$16 sps:$4 sm:$0xff]   ;;  %v7920_v23 = vld [vmem:[#allocation5 + $0x10c] ss:$16 sps:$4 sm:$0xff]  }
 0x1e3   :  { %5331 = vmatpush1.bf16.msra.mxu0 %v7858_v45  ;;  %v7923_v45 = vld [vmem:[#allocation5 + $0x30c] ss:$16 sps:$4 sm:$0xff]  }
 0x1e4   :  { %5372 = vmatpush1.bf16.msra.mxu1 %v7861_v46  ;;  %5332 = vmatprep.subr.bf16.mxu0 %v7866_v48  ;;  %v7918_v46 = vld [vmem:[#allocation5 + $0x108] ss:$16 sps:$4 sm:$0xff]  }
 0x1e5   :  { %5373 = vmatprep.subr.bf16.mxu1 %v7869_v49  ;;  %v7921_v48 = vld [vmem:[#allocation5 + $0x308] ss:$16 sps:$4 sm:$0xff]   ;;  %v7926_v49 = vld [vmem:[#allocation5 + $0x4ec] ss:$16 sps:$4 sm:$0xff]  }
 0x1e7   :  { %5333 = vmatpush1.bf16.msra.mxu0 %v7864_v50  ;;  %v7929_v50 = vld [vmem:[#allocation5 + $0x6ec] ss:$16 sps:$4 sm:$0xff]  }
 0x1e8   :  { %5374 = vmatpush1.bf16.msra.mxu1 %v7867_v52  ;;  %5334 = vmatprep.subr.bf16.mxu0 %v7872_v53  ;;  %v7924_v52 = vld [vmem:[#allocation5 + $0x4e8] ss:$16 sps:$4 sm:$0xff]  }
 0x1e9   :  { %5375 = vmatprep.subr.bf16.mxu1 %v7875_v55  ;;  %v7927_v53 = vld [vmem:[#allocation5 + $0x6e8] ss:$16 sps:$4 sm:$0xff]   ;;  %v7932_v55 = vld [vmem:[#allocation5 + $0x4cc] ss:$16 sps:$4 sm:$0xff]  }
 0x1eb   :  { %5335 = vmatpush1.bf16.msra.mxu0 %v7870_v56  ;;  %v7935_v56 = vld [vmem:[#allocation5 + $0x6cc] ss:$16 sps:$4 sm:$0xff]  }
 0x1ec   :  { %5376 = vmatpush1.bf16.msra.mxu1 %v7873_v59  ;;  %5336 = vmatprep.subr.bf16.mxu0 %v7878_v60  ;;  %v7930_v59 = vld [vmem:[#allocation5 + $0x4c8] ss:$16 sps:$4 sm:$0xff]  }
 0x1ed   :  { %5377 = vmatprep.subr.bf16.mxu1 %v7881_v5  ;;  %v7933_v60 = vld [vmem:[#allocation5 + $0x6c8] ss:$16 sps:$4 sm:$0xff]  }
 0x1ef   :  { %5337 = vmatpush2.bf16.msra.mxu0 %v7876_v8 }
 0x1f0   :  { %5378 = vmatpush2.bf16.msra.mxu1 %v7879_v10  ;;  %5338 = vmatprep.subr.bf16.mxu0 %v7884_v11 }
 0x1f1   :  { %5379 = vmatprep.subr.bf16.mxu1 %v7887_v3 }
 0x1f3   :  { %5339 = vmatpush2.bf16.msra.mxu0 %v7882_v12  ;;  %v7938_v12 = vld [vmem:[#allocation5 + $0x4ac] ss:$16 sps:$4 sm:$0xff]  }
 0x1f4   :  { %5380 = vmatpush2.bf16.msra.mxu1 %v7885_v57  ;;  %5340 = vmatprep.subr.bf16.mxu0 %v7890_v58  ;;  %v7941_v57 = vld [vmem:[#allocation5 + $0x6ac] ss:$16 sps:$4 sm:$0xff]  }
 0x1f5   :  { %5381 = vmatprep.subr.bf16.mxu1 %v7893_v13 }
 0x1f7   :  { %5341 = vmatpush2.bf16.msra.mxu0 %v7888_v14  ;;  %v7936_v14 = vld [vmem:[#allocation5 + $0x4a8] ss:$16 sps:$4 sm:$0xff]  }
 0x1f8   :  { %5382 = vmatpush2.bf16.msra.mxu1 %v7891_v15  ;;  %5342 = vmatprep.subr.bf16.mxu0 %v7896_v20  ;;  %v7939_v15 = vld [vmem:[#allocation5 + $0x6a8] ss:$16 sps:$4 sm:$0xff]  }
 0x1f9   :  { %5383 = vmatprep.subr.bf16.mxu1 %v7899_v21 }
 0x1fb   :  { %5343 = vmatpush2.bf16.msra.mxu0 %v7894_v27  ;;  %v7944_v27 = vld [vmem:[#allocation5 + $0x48c] ss:$16 sps:$4 sm:$0xff]  }
 0x1fc   :  { %5384 = vmatpush2.bf16.msra.mxu1 %v7897_v26  ;;  %5344 = vmatprep.subr.bf16.mxu0 %v7902_v18  ;;  %v7947_v26 = vld [vmem:[#allocation5 + $0x68c] ss:$16 sps:$4 sm:$0xff]   ;;  %v7945_v18 = vld [vmem:[#allocation5 + $0x688] ss:$16 sps:$4 sm:$0xff]  }
 0x1fd   :  { %5385 = vmatprep.subr.bf16.mxu1 %v7905_v30  ;;  %v7948_v30 = vld [vmem:[#allocation5 + $0x468] ss:$16 sps:$4 sm:$0xff]  }
 0x1ff   :  { %5345 = vmatpush2.bf16.msra.mxu0 %v7900_v32  ;;  %v7951_v32 = vld [vmem:[#allocation5 + $0x668] ss:$16 sps:$4 sm:$0xff]  }
 0x200   :  { %5386 = vmatpush2.bf16.msra.mxu1 %v7903_v33  ;;  %5346 = vmatprep.subr.bf16.mxu0 %v7908_v31  ;;  %v7956_v33 = vld [vmem:[#allocation5 + $0x44c] ss:$16 sps:$4 sm:$0xff]  }
 0x201   :  { %5387 = vmatprep.subr.bf16.mxu1 %v7911_v28  ;;  %v7959_v31 = vld [vmem:[#allocation5 + $0x64c] ss:$16 sps:$4 sm:$0xff]   ;;  %v7954_v28 = vld [vmem:[#allocation5 + $0x448] ss:$16 sps:$4 sm:$0xff]  }
 0x203   :  { %5347 = vmatpush2.bf16.msra.mxu0 %v7906_v34  ;;  %v7957_v34 = vld [vmem:[#allocation5 + $0x648] ss:$16 sps:$4 sm:$0xff]  }
 0x204   :  { %5388 = vmatpush2.bf16.msra.mxu1 %v7909_v47  ;;  %5348 = vmatprep.subr.bf16.mxu0 %v7914_v51  ;;  %v7962_v47 = vld [vmem:[#allocation5 + $0x42c] ss:$16 sps:$4 sm:$0xff]  }
 0x205   :  { %5389 = vmatprep.subr.bf16.mxu1 %v7917_v41  ;;  %v7965_v51 = vld [vmem:[#allocation5 + $0x62c] ss:$16 sps:$4 sm:$0xff]   ;;  %v7960_v41 = vld [vmem:[#allocation5 + $0x428] ss:$16 sps:$4 sm:$0xff]  }
 0x207   :  { %5349 = vmatpush2.bf16.msra.mxu0 %v7912_v42  ;;  %v7963_v42 = vld [vmem:[#allocation5 + $0x628] ss:$16 sps:$4 sm:$0xff]  }
 0x208   :  { %5390 = vmatpush2.bf16.msra.mxu1 %v7915_v43  ;;  %5350 = vmatprep.subr.bf16.mxu0 %v7920_v23  ;;  %v7968_v43 = vld [vmem:[#allocation5 + $0x40c] ss:$16 sps:$4 sm:$0xff]  }
 0x209   :  { %5391 = vmatprep.subr.bf16.mxu1 %v7923_v45  ;;  %v7971_v23 = vld [vmem:[#allocation5 + $0x60c] ss:$16 sps:$4 sm:$0xff]   ;;  %v7966_v45 = vld [vmem:[#allocation5 + $0x408] ss:$16 sps:$4 sm:$0xff]  }
 0x20b   :  { %5351 = vmatpush2.bf16.msra.mxu0 %v7918_v46  ;;  %v7969_v46 = vld [vmem:[#allocation5 + $0x608] ss:$16 sps:$4 sm:$0xff]  }
 0x20c   :  { %5392 = vmatpush2.bf16.msra.mxu1 %v7921_v48  ;;  %5402 = vmatprep.subr.bf16.mxu0 %v7926_v49  ;;  %v7974_v48 = vld [vmem:[#allocation5 + $0x5ec] ss:$16 sps:$4 sm:$0xff]  }
 0x20d   :  { %5443 = vmatprep.subr.bf16.mxu1 %v7929_v50  ;;  %v7977_v49 = vld [vmem:[#allocation5 + $0x7ec] ss:$16 sps:$4 sm:$0xff]   ;;  %v7972_v50 = vld [vmem:[#allocation5 + $0x5e8] ss:$16 sps:$4 sm:$0xff]  }
 0x20e   :  { %v5108_v5 = vpop.f32.mrf.mxu0  ;;  %5353 = vmatmul.mubr.bf16.vlgmr.msra.gmra.mxu0 %v8676_v6 }
 0x20f   :  { %v5149_v8 = vpop.f32.mrf.mxu1  ;;  %5394 = vmatmul.mubr.bf16.vlgmr.msra.gmra.mxu1 %v8678_v7  ;;  %v5109_v10 = vadd.f32 %v5108_v5, %v8817_v19  ;;  %5403 = vmatpush1.bf16.msra.mxu0 %v7924_v52  ;;  %v7975_v52 = vld [vmem:[#allocation5 + $0x7e8] ss:$16 sps:$4 sm:$0xff]   ;;  %v7989_v5 = vld [vmem:[#allocation5 + $0x7ac] ss:$16 sps:$4 sm:$0xff]  }
 0x210   :  { %5444 = vmatpush1.bf16.msra.mxu1 %v7927_v53  ;;  %v5110_v11 = vpop.f32.mrf.mxu0  ;;  %5404 = vmatprep.subr.bf16.mxu0 %v7932_v55  ;;  %v7980_v53 = vld [vmem:[#allocation5 + $0x5cc] ss:$16 sps:$4 sm:$0xff]  }
 0x211   :  { %v5151_v3 = vpop.f32.mrf.mxu1  ;;  %5445 = vmatprep.subr.bf16.mxu1 %v7935_v56  ;;  %v8827_v58 = vadd.f32 %v5149_v8, %v5109_v10  ;;  %v5111_v13 = vadd.f32 %v5110_v11, %v8822_v29  ;;  %5434 = vmatprep.mubr.bf16.mxu0 %v8688_v36  ;;  %v7942_v29 = vld [vmem:[#allocation5 + $0x488] ss:$16 sps:$4 sm:$0xff]   ;;  %v7950_v36 = vld [vmem:[#allocation5 + $0x46c] ss:$16 sps:$4 sm:$0xff]  }
 0x212   :  { %5475 = vmatprep.mubr.bf16.mxu1 %v8692_v37  ;;  %v5112_v6 = vpop.f32.mrf.mxu0  ;;  %v7953_v37 = vld [vmem:[#allocation5 + $0x66c] ss:$16 sps:$4 sm:$0xff]   ;;  %v7978_v56 = vld [vmem:[#allocation5 + $0x5c8] ss:$16 sps:$4 sm:$0xff]  }
 0x213   :  { %v5153_v7 = vpop.f32.mrf.mxu1  ;;  %v8832_v19 = vadd.f32 %v5151_v3, %v5111_v13  ;;  %5405 = vmatpush1.bf16.msra.mxu0 %v7930_v59  ;;  %v7983_v55 = vld [vmem:[#allocation5 + $0x7cc] ss:$16 sps:$4 sm:$0xff]   ;;  %v7981_v59 = vld [vmem:[#allocation5 + $0x7c8] ss:$16 sps:$4 sm:$0xff]  }
 0x214   :  { %5446 = vmatpush1.bf16.msra.mxu1 %v7933_v60  ;;  %v5113_v20 = vpop.f32.mrf.mxu0  ;;  %5406 = vmatprep.subr.bf16.mxu0 %v7938_v12  ;;  %v7986_v60 = vld [vmem:[#allocation5 + $0x5ac] ss:$16 sps:$4 sm:$0xff]   ;;  %v7984_v8 = vld [vmem:[#allocation5 + $0x5a8] ss:$16 sps:$4 sm:$0xff]  }
 0x215   :  { %v5154_v21 = vpop.f32.mrf.mxu1  ;;  %5447 = vmatprep.subr.bf16.mxu1 %v7941_v57  ;;  %v7987_v10 = vld [vmem:[#allocation5 + $0x7a8] ss:$16 sps:$4 sm:$0xff]   ;;  %v7992_v11 = vld [vmem:[#allocation5 + $0x58c] ss:$16 sps:$4 sm:$0xff]  }
 0x216   :  { %v7995_v3 = vld [vmem:[#allocation5 + $0x78c] ss:$16 sps:$4 sm:$0xff]   ;;  %v7990_v12 = vld [vmem:[#allocation5 + $0x588] ss:$16 sps:$4 sm:$0xff]  }
 0x217   :  { %5407 = vmatpush1.bf16.msra.mxu0 %v7936_v14  ;;  %v7993_v57 = vld [vmem:[#allocation5 + $0x788] ss:$16 sps:$4 sm:$0xff]   ;;  %v7998_v13 = vld [vmem:[#allocation5 + $0x56c] ss:$16 sps:$4 sm:$0xff]  }
 0x218   :  { %5448 = vmatpush1.bf16.msra.mxu1 %v7939_v15  ;;  %5408 = vmatprep.subr.bf16.mxu0 %v7944_v27  ;;  %v8001_v14 = vld [vmem:[#allocation5 + $0x76c] ss:$16 sps:$4 sm:$0xff]   ;;  %v7996_v15 = vld [vmem:[#allocation5 + $0x568] ss:$16 sps:$4 sm:$0xff]  }
 0x219   :  { %5449 = vmatprep.subr.bf16.mxu1 %v7947_v26  ;;  %v7999_v6 = vld [vmem:[#allocation5 + $0x768] ss:$16 sps:$4 sm:$0xff]   ;;  %v8004_v7 = vld [vmem:[#allocation5 + $0x54c] ss:$16 sps:$4 sm:$0xff]  }
 0x21a   :  { %v8007_v20 = vld [vmem:[#allocation5 + $0x74c] ss:$16 sps:$4 sm:$0xff]   ;;  %v8002_v21 = vld [vmem:[#allocation5 + $0x548] ss:$16 sps:$4 sm:$0xff]  }
 0x21b   :  { %5409 = vmatpush1.bf16.msra.mxu0 %v7942_v29  ;;  %v8005_v27 = vld [vmem:[#allocation5 + $0x748] ss:$16 sps:$4 sm:$0xff]   ;;  %v8010_v26 = vld [vmem:[#allocation5 + $0x52c] ss:$16 sps:$4 sm:$0xff]  }
 0x21c   :  { %5450 = vmatpush1.bf16.msra.mxu1 %v7945_v18  ;;  %5410 = vmatprep.subr.bf16.mxu0 %v7950_v36  ;;  %v8013_v29 = vld [vmem:[#allocation5 + $0x72c] ss:$16 sps:$4 sm:$0xff]   ;;  %v8008_v18 = vld [vmem:[#allocation5 + $0x528] ss:$16 sps:$4 sm:$0xff]  }
 0x21d   :  { %5451 = vmatprep.subr.bf16.mxu1 %v7953_v37  ;;  %v8011_v36 = vld [vmem:[#allocation5 + $0x728] ss:$16 sps:$4 sm:$0xff]   ;;  %v8016_v37 = vld [vmem:[#allocation5 + $0x50c] ss:$16 sps:$4 sm:$0xff]  }
 0x21f   :  { %5411 = vmatpush1.bf16.msra.mxu0 %v7948_v30  ;;  %v8019_v30 = vld [vmem:[#allocation5 + $0x70c] ss:$16 sps:$4 sm:$0xff]  }
 0x220   :  { %5452 = vmatpush1.bf16.msra.mxu1 %v7951_v32  ;;  %5412 = vmatprep.subr.bf16.mxu0 %v7956_v33  ;;  %v8014_v32 = vld [vmem:[#allocation5 + $0x508] ss:$16 sps:$4 sm:$0xff]  }
 0x221   :  { %5453 = vmatprep.subr.bf16.mxu1 %v7959_v31  ;;  %v8017_v33 = vld [vmem:[#allocation5 + $0x708] ss:$16 sps:$4 sm:$0xff]   ;;  %v8022_v31 = vld [vmem:[#allocation5 + $0x8ec] ss:$16 sps:$4 sm:$0xff]  }
 0x223   :  { %5413 = vmatpush1.bf16.msra.mxu0 %v7954_v28  ;;  %v8025_v28 = vld [vmem:[#allocation5 + $0xaec] ss:$16 sps:$4 sm:$0xff]  }
 0x224   :  { %5454 = vmatpush1.bf16.msra.mxu1 %v7957_v34  ;;  %5414 = vmatprep.subr.bf16.mxu0 %v7962_v47  ;;  %v8020_v34 = vld [vmem:[#allocation5 + $0x8e8] ss:$16 sps:$4 sm:$0xff]  }
 0x225   :  { %5455 = vmatprep.subr.bf16.mxu1 %v7965_v51  ;;  %v8023_v47 = vld [vmem:[#allocation5 + $0xae8] ss:$16 sps:$4 sm:$0xff]   ;;  %v8028_v51 = vld [vmem:[#allocation5 + $0x8cc] ss:$16 sps:$4 sm:$0xff]  }
 0x227   :  { %5415 = vmatpush1.bf16.msra.mxu0 %v7960_v41  ;;  %v8031_v41 = vld [vmem:[#allocation5 + $0xacc] ss:$16 sps:$4 sm:$0xff]  }
 0x228   :  { %5456 = vmatpush1.bf16.msra.mxu1 %v7963_v42  ;;  %5416 = vmatprep.subr.bf16.mxu0 %v7968_v43 }
 0x229   :  { %5457 = vmatprep.subr.bf16.mxu1 %v7971_v23 }
 0x22b   :  { %5417 = vmatpush1.bf16.msra.mxu0 %v7966_v45  ;;  %v8026_v45 = vld [vmem:[#allocation5 + $0x8c8] ss:$16 sps:$4 sm:$0xff]  }
 0x22c   :  { %5458 = vmatpush1.bf16.msra.mxu1 %v7969_v46  ;;  %5418 = vmatprep.subr.bf16.mxu0 %v7974_v48  ;;  %v8029_v46 = vld [vmem:[#allocation5 + $0xac8] ss:$16 sps:$4 sm:$0xff]  }
 0x22d   :  { %5459 = vmatprep.subr.bf16.mxu1 %v7977_v49 }
 0x22f   :  { %5419 = vmatpush2.bf16.msra.mxu0 %v7972_v50  ;;  %v8034_v50 = vld [vmem:[#allocation5 + $0x8ac] ss:$16 sps:$4 sm:$0xff]  }
 0x230   :  { %5460 = vmatpush2.bf16.msra.mxu1 %v7975_v52  ;;  %5420 = vmatprep.subr.bf16.mxu0 %v7980_v53  ;;  %v8037_v52 = vld [vmem:[#allocation5 + $0xaac] ss:$16 sps:$4 sm:$0xff]  }
 0x231   :  { %5461 = vmatprep.subr.bf16.mxu1 %v7983_v55 }
 0x233   :  { %5421 = vmatpush2.bf16.msra.mxu0 %v7978_v56  ;;  %v8032_v56 = vld [vmem:[#allocation5 + $0x8a8] ss:$16 sps:$4 sm:$0xff]  }
 0x234   :  { %5462 = vmatpush2.bf16.msra.mxu1 %v7981_v59  ;;  %5422 = vmatprep.subr.bf16.mxu0 %v7986_v60  ;;  %v8035_v59 = vld [vmem:[#allocation5 + $0xaa8] ss:$16 sps:$4 sm:$0xff]  }
 0x235   :  { %5463 = vmatprep.subr.bf16.mxu1 %v7989_v5 }
 0x237   :  { %5423 = vmatpush2.bf16.msra.mxu0 %v7984_v8  ;;  %v8040_v8 = vld [vmem:[#allocation5 + $0x88c] ss:$16 sps:$4 sm:$0xff]  }
 0x238   :  { %5464 = vmatpush2.bf16.msra.mxu1 %v7987_v10  ;;  %5424 = vmatprep.subr.bf16.mxu0 %v7992_v11  ;;  %v8043_v10 = vld [vmem:[#allocation5 + $0xa8c] ss:$16 sps:$4 sm:$0xff]  }
 0x239   :  { %5465 = vmatprep.subr.bf16.mxu1 %v7995_v3  ;;  %v8049_v11 = vld [vmem:[#allocation5 + $0xa6c] ss:$16 sps:$4 sm:$0xff]   ;;  %v8044_v3 = vld [vmem:[#allocation5 + $0x868] ss:$16 sps:$4 sm:$0xff]  }
 0x23b   :  { %5425 = vmatpush2.bf16.msra.mxu0 %v7990_v12  ;;  %v8047_v12 = vld [vmem:[#allocation5 + $0xa68] ss:$16 sps:$4 sm:$0xff]  }
 0x23c   :  { %5466 = vmatpush2.bf16.msra.mxu1 %v7993_v57  ;;  %5426 = vmatprep.subr.bf16.mxu0 %v7998_v13  ;;  %v8052_v57 = vld [vmem:[#allocation5 + $0x84c] ss:$16 sps:$4 sm:$0xff]  }
 0x23d   :  { %5467 = vmatprep.subr.bf16.mxu1 %v8001_v14  ;;  %v8055_v13 = vld [vmem:[#allocation5 + $0xa4c] ss:$16 sps:$4 sm:$0xff]   ;;  %v8050_v14 = vld [vmem:[#allocation5 + $0x848] ss:$16 sps:$4 sm:$0xff]  }
 0x23f   :  { %5427 = vmatpush2.bf16.msra.mxu0 %v7996_v15  ;;  %v8053_v15 = vld [vmem:[#allocation5 + $0xa48] ss:$16 sps:$4 sm:$0xff]  }
 0x240   :  { %5468 = vmatpush2.bf16.msra.mxu1 %v7999_v6  ;;  %5428 = vmatprep.subr.bf16.mxu0 %v8004_v7  ;;  %v8058_v6 = vld [vmem:[#allocation5 + $0x82c] ss:$16 sps:$4 sm:$0xff]  }
 0x241   :  { %5469 = vmatprep.subr.bf16.mxu1 %v8007_v20  ;;  %v8061_v7 = vld [vmem:[#allocation5 + $0xa2c] ss:$16 sps:$4 sm:$0xff]   ;;  %v8056_v20 = vld [vmem:[#allocation5 + $0x828] ss:$16 sps:$4 sm:$0xff]  }
 0x243   :  { %5429 = vmatpush2.bf16.msra.mxu0 %v8002_v21  ;;  %v8059_v21 = vld [vmem:[#allocation5 + $0xa28] ss:$16 sps:$4 sm:$0xff]  }
 0x244   :  { %5470 = vmatpush2.bf16.msra.mxu1 %v8005_v27  ;;  %5430 = vmatprep.subr.bf16.mxu0 %v8010_v26  ;;  %v8064_v27 = vld [vmem:[#allocation5 + $0x80c] ss:$16 sps:$4 sm:$0xff]  }
 0x245   :  { %5471 = vmatprep.subr.bf16.mxu1 %v8013_v29  ;;  %v8067_v26 = vld [vmem:[#allocation5 + $0xa0c] ss:$16 sps:$4 sm:$0xff]   ;;  %v8062_v29 = vld [vmem:[#allocation5 + $0x808] ss:$16 sps:$4 sm:$0xff]  }
 0x247   :  { %5431 = vmatpush2.bf16.msra.mxu0 %v8008_v18  ;;  %v8065_v18 = vld [vmem:[#allocation5 + $0xa08] ss:$16 sps:$4 sm:$0xff]  }
 0x248   :  { %5472 = vmatpush2.bf16.msra.mxu1 %v8011_v36  ;;  %5432 = vmatprep.subr.bf16.mxu0 %v8016_v37  ;;  %v8070_v36 = vld [vmem:[#allocation5 + $0x9ec] ss:$16 sps:$4 sm:$0xff]  }
 0x249   :  { %5473 = vmatprep.subr.bf16.mxu1 %v8019_v30  ;;  %v8073_v37 = vld [vmem:[#allocation5 + $0xbec] ss:$16 sps:$4 sm:$0xff]   ;;  %v8068_v30 = vld [vmem:[#allocation5 + $0x9e8] ss:$16 sps:$4 sm:$0xff]  }
 0x24b   :  { %5433 = vmatpush2.bf16.msra.mxu0 %v8014_v32  ;;  %v8071_v32 = vld [vmem:[#allocation5 + $0xbe8] ss:$16 sps:$4 sm:$0xff]  }
 0x24c   :  { %5474 = vmatpush2.bf16.msra.mxu1 %v8017_v33  ;;  %5484 = vmatprep.subr.bf16.mxu0 %v8022_v31  ;;  %v8076_v33 = vld [vmem:[#allocation5 + $0x9cc] ss:$16 sps:$4 sm:$0xff]  }
 0x24d   :  { %5525 = vmatprep.subr.bf16.mxu1 %v8025_v28  ;;  %v8079_v31 = vld [vmem:[#allocation5 + $0xbcc] ss:$16 sps:$4 sm:$0xff]   ;;  %v8074_v28 = vld [vmem:[#allocation5 + $0x9c8] ss:$16 sps:$4 sm:$0xff]  }
 0x24e   :  { %v5190_v42 = vpop.f32.mrf.mxu0  ;;  %5435 = vmatmul.mubr.bf16.vlgmr.msra.gmra.mxu0 %v8698_v16 }
 0x24f   :  { %v5231_v43 = vpop.f32.mrf.mxu1  ;;  %5476 = vmatmul.mubr.bf16.vlgmr.msra.gmra.mxu1 %v8702_v17  ;;  %v5191_v23 = vadd.f32 %v5190_v42, %v8827_v58  ;;  %5485 = vmatpush1.bf16.msra.mxu0 %v8020_v34  ;;  %v8077_v34 = vld [vmem:[#allocation5 + $0xbc8] ss:$16 sps:$4 sm:$0xff]  }
 0x250   :  { %5526 = vmatpush1.bf16.msra.mxu1 %v8023_v47  ;;  %v5192_v48 = vpop.f32.mrf.mxu0  ;;  %5486 = vmatprep.subr.bf16.mxu0 %v8028_v51  ;;  %v8082_v47 = vld [vmem:[#allocation5 + $0x9ac] ss:$16 sps:$4 sm:$0xff]   ;;  %v8083_v42 = vld [vmem:[#allocation5 + $0xba8] ss:$16 sps:$4 sm:$0xff]  }
 0x251   :  { %v5233_v49 = vpop.f32.mrf.mxu1  ;;  %5527 = vmatprep.subr.bf16.mxu1 %v8031_v41  ;;  %v8837_v53 = vadd.f32 %v5231_v43, %v5191_v23  ;;  %v5193_v55 = vadd.f32 %v5192_v48, %v8832_v19  ;;  %5516 = vmatprep.mubr.bf16.mxu0 %v8710_v24  ;;  %v8038_v19 = vld [vmem:[#allocation5 + $0x888] ss:$16 sps:$4 sm:$0xff]   ;;  %v8085_v51 = vld [vmem:[#allocation5 + $0xbac] ss:$16 sps:$4 sm:$0xff]  }
 0x252   :  { %5557 = vmatprep.mubr.bf16.mxu1 %v8714_v25  ;;  %v5194_v16 = vpop.f32.mrf.mxu0  ;;  %v8041_v24 = vld [vmem:[#allocation5 + $0xa88] ss:$16 sps:$4 sm:$0xff]   ;;  %v8046_v25 = vld [vmem:[#allocation5 + $0x86c] ss:$16 sps:$4 sm:$0xff]  }
 0x253   :  { %v5235_v17 = vpop.f32.mrf.mxu1  ;;  %v8842_v58 = vadd.f32 %v5233_v49, %v5193_v55  ;;  %5487 = vmatpush1.bf16.msra.mxu0 %v8026_v45  ;;  %v8080_v41 = vld [vmem:[#allocation5 + $0x9a8] ss:$16 sps:$4 sm:$0xff]   ;;  %v8088_v43 = vld [vmem:[#allocation5 + $0x98c] ss:$16 sps:$4 sm:$0xff]  }
 0x254   :  { %5528 = vmatpush1.bf16.msra.mxu1 %v8029_v46  ;;  %v5195_v60 = vpop.f32.mrf.mxu0  ;;  %5488 = vmatprep.subr.bf16.mxu0 %v8034_v50  ;;  %v8091_v23 = vld [vmem:[#allocation5 + $0xb8c] ss:$16 sps:$4 sm:$0xff]   ;;  %v8086_v45 = vld [vmem:[#allocation5 + $0x988] ss:$16 sps:$4 sm:$0xff]  }
 0x255   :  { %v5236_v5 = vpop.f32.mrf.mxu1  ;;  %5529 = vmatprep.subr.bf16.mxu1 %v8037_v52  ;;  %v8089_v46 = vld [vmem:[#allocation5 + $0xb88] ss:$16 sps:$4 sm:$0xff]   ;;  %v8094_v48 = vld [vmem:[#allocation5 + $0x96c] ss:$16 sps:$4 sm:$0xff]  }
 0x256   :  { %v8097_v49 = vld [vmem:[#allocation5 + $0xb6c] ss:$16 sps:$4 sm:$0xff]   ;;  %v8092_v50 = vld [vmem:[#allocation5 + $0x968] ss:$16 sps:$4 sm:$0xff]  }
 0x257   :  { %5489 = vmatpush1.bf16.msra.mxu0 %v8032_v56  ;;  %v8095_v52 = vld [vmem:[#allocation5 + $0xb68] ss:$16 sps:$4 sm:$0xff]   ;;  %v8100_v55 = vld [vmem:[#allocation5 + $0x94c] ss:$16 sps:$4 sm:$0xff]  }
 0x258   :  { %5530 = vmatpush1.bf16.msra.mxu1 %v8035_v59  ;;  %5490 = vmatprep.subr.bf16.mxu0 %v8040_v8  ;;  %v8103_v16 = vld [vmem:[#allocation5 + $0xb4c] ss:$16 sps:$4 sm:$0xff]   ;;  %v8098_v17 = vld [vmem:[#allocation5 + $0x948] ss:$16 sps:$4 sm:$0xff]  }
 0x259   :  { %5531 = vmatprep.subr.bf16.mxu1 %v8043_v10  ;;  %v8101_v56 = vld [vmem:[#allocation5 + $0xb48] ss:$16 sps:$4 sm:$0xff]   ;;  %v8106_v59 = vld [vmem:[#allocation5 + $0x92c] ss:$16 sps:$4 sm:$0xff]  }
 0x25a   :  { %v8109_v60 = vld [vmem:[#allocation5 + $0xb2c] ss:$16 sps:$4 sm:$0xff]   ;;  %v8104_v5 = vld [vmem:[#allocation5 + $0x928] ss:$16 sps:$4 sm:$0xff]  }
 0x25b   :  { %5491 = vmatpush1.bf16.msra.mxu0 %v8038_v19  ;;  %v8107_v8 = vld [vmem:[#allocation5 + $0xb28] ss:$16 sps:$4 sm:$0xff]   ;;  %v8112_v10 = vld [vmem:[#allocation5 + $0x90c] ss:$16 sps:$4 sm:$0xff]  }
 0x25c   :  { %5532 = vmatpush1.bf16.msra.mxu1 %v8041_v24  ;;  %5492 = vmatprep.subr.bf16.mxu0 %v8046_v25  ;;  %v8115_v19 = vld [vmem:[#allocation5 + $0xb0c] ss:$16 sps:$4 sm:$0xff]   ;;  %v8110_v24 = vld [vmem:[#allocation5 + $0x908] ss:$16 sps:$4 sm:$0xff]  }
 0x25d   :  { %5533 = vmatprep.subr.bf16.mxu1 %v8049_v11  ;;  %v8113_v25 = vld [vmem:[#allocation5 + $0xb08] ss:$16 sps:$4 sm:$0xff]   ;;  %v8118_v11 = vld [vmem:[#allocation5 + $0xcec] ss:$16 sps:$4 sm:$0xff]  }
 0x25f   :  { %5493 = vmatpush1.bf16.msra.mxu0 %v8044_v3  ;;  %v8121_v3 = vld [vmem:[#allocation5 + $0xeec] ss:$16 sps:$4 sm:$0xff]  }
 0x260   :  { %5534 = vmatpush1.bf16.msra.mxu1 %v8047_v12  ;;  %5494 = vmatprep.subr.bf16.mxu0 %v8052_v57  ;;  %v8116_v12 = vld [vmem:[#allocation5 + $0xce8] ss:$16 sps:$4 sm:$0xff]  }
 0x261   :  { %5535 = vmatprep.subr.bf16.mxu1 %v8055_v13  ;;  %v8119_v57 = vld [vmem:[#allocation5 + $0xee8] ss:$16 sps:$4 sm:$0xff]   ;;  %v8124_v13 = vld [vmem:[#allocation5 + $0xccc] ss:$16 sps:$4 sm:$0xff]  }
 0x263   :  { %5495 = vmatpush1.bf16.msra.mxu0 %v8050_v14  ;;  %v8127_v14 = vld [vmem:[#allocation5 + $0xecc] ss:$16 sps:$4 sm:$0xff]  }
 0x264   :  { %5536 = vmatpush1.bf16.msra.mxu1 %v8053_v15  ;;  %5496 = vmatprep.subr.bf16.mxu0 %v8058_v6 }
 0x265   :  { %5537 = vmatprep.subr.bf16.mxu1 %v8061_v7 }
 0x267   :  { %5497 = vmatpush1.bf16.msra.mxu0 %v8056_v20  ;;  %v8122_v20 = vld [vmem:[#allocation5 + $0xcc8] ss:$16 sps:$4 sm:$0xff]  }
 0x268   :  { %5538 = vmatpush1.bf16.msra.mxu1 %v8059_v21  ;;  %5498 = vmatprep.subr.bf16.mxu0 %v8064_v27  ;;  %v8125_v21 = vld [vmem:[#allocation5 + $0xec8] ss:$16 sps:$4 sm:$0xff]  }
 0x269   :  { %5539 = vmatprep.subr.bf16.mxu1 %v8067_v26 }
 0x26b   :  { %5499 = vmatpush1.bf16.msra.mxu0 %v8062_v29  ;;  %v8130_v29 = vld [vmem:[#allocation5 + $0xcac] ss:$16 sps:$4 sm:$0xff]  }
 0x26c   :  { %5540 = vmatpush1.bf16.msra.mxu1 %v8065_v18  ;;  %5500 = vmatprep.subr.bf16.mxu0 %v8070_v36  ;;  %v8133_v18 = vld [vmem:[#allocation5 + $0xeac] ss:$16 sps:$4 sm:$0xff]  }
 0x26d   :  { %5541 = vmatprep.subr.bf16.mxu1 %v8073_v37 }
 0x26f   :  { %5501 = vmatpush2.bf16.msra.mxu0 %v8068_v30  ;;  %v8128_v30 = vld [vmem:[#allocation5 + $0xca8] ss:$16 sps:$4 sm:$0xff]  }
 0x270   :  { %5542 = vmatpush2.bf16.msra.mxu1 %v8071_v32  ;;  %5502 = vmatprep.subr.bf16.mxu0 %v8076_v33  ;;  %v8131_v32 = vld [vmem:[#allocation5 + $0xea8] ss:$16 sps:$4 sm:$0xff]  }
 0x271   :  { %5543 = vmatprep.subr.bf16.mxu1 %v8079_v31 }
 0x273   :  { %5503 = vmatpush2.bf16.msra.mxu0 %v8074_v28  ;;  %v8136_v28 = vld [vmem:[#allocation5 + $0xc8c] ss:$16 sps:$4 sm:$0xff]  }
 0x274   :  { %5544 = vmatpush2.bf16.msra.mxu1 %v8077_v34  ;;  %5504 = vmatprep.subr.bf16.mxu0 %v8082_v47  ;;  %v8139_v34 = vld [vmem:[#allocation5 + $0xe8c] ss:$16 sps:$4 sm:$0xff]  }
 0x275   :  { %5545 = vmatprep.subr.bf16.mxu1 %v8085_v51  ;;  %v8145_v47 = vld [vmem:[#allocation5 + $0xe6c] ss:$16 sps:$4 sm:$0xff]   ;;  %v8140_v51 = vld [vmem:[#allocation5 + $0xc68] ss:$16 sps:$4 sm:$0xff]  }
 0x277   :  { %5505 = vmatpush2.bf16.msra.mxu0 %v8080_v41  ;;  %v8143_v41 = vld [vmem:[#allocation5 + $0xe68] ss:$16 sps:$4 sm:$0xff]  }
 0x278   :  { %5546 = vmatpush2.bf16.msra.mxu1 %v8083_v42  ;;  %5506 = vmatprep.subr.bf16.mxu0 %v8088_v43  ;;  %v8148_v42 = vld [vmem:[#allocation5 + $0xc4c] ss:$16 sps:$4 sm:$0xff]  }
 0x279   :  { %5547 = vmatprep.subr.bf16.mxu1 %v8091_v23  ;;  %v8151_v43 = vld [vmem:[#allocation5 + $0xe4c] ss:$16 sps:$4 sm:$0xff]   ;;  %v8146_v23 = vld [vmem:[#allocation5 + $0xc48] ss:$16 sps:$4 sm:$0xff]  }
 0x27b   :  { %5507 = vmatpush2.bf16.msra.mxu0 %v8086_v45  ;;  %v8149_v45 = vld [vmem:[#allocation5 + $0xe48] ss:$16 sps:$4 sm:$0xff]  }
 0x27c   :  { %5548 = vmatpush2.bf16.msra.mxu1 %v8089_v46  ;;  %5508 = vmatprep.subr.bf16.mxu0 %v8094_v48  ;;  %v8154_v46 = vld [vmem:[#allocation5 + $0xc2c] ss:$16 sps:$4 sm:$0xff]  }
 0x27d   :  { %5549 = vmatprep.subr.bf16.mxu1 %v8097_v49  ;;  %v8157_v48 = vld [vmem:[#allocation5 + $0xe2c] ss:$16 sps:$4 sm:$0xff]   ;;  %v8152_v49 = vld [vmem:[#allocation5 + $0xc28] ss:$16 sps:$4 sm:$0xff]  }
 0x27f   :  { %5509 = vmatpush2.bf16.msra.mxu0 %v8092_v50  ;;  %v8155_v50 = vld [vmem:[#allocation5 + $0xe28] ss:$16 sps:$4 sm:$0xff]  }
 0x280   :  { %5550 = vmatpush2.bf16.msra.mxu1 %v8095_v52  ;;  %5510 = vmatprep.subr.bf16.mxu0 %v8100_v55  ;;  %v8160_v52 = vld [vmem:[#allocation5 + $0xc0c] ss:$16 sps:$4 sm:$0xff]  }
 0x281   :  { %5551 = vmatprep.subr.bf16.mxu1 %v8103_v16  ;;  %v8163_v55 = vld [vmem:[#allocation5 + $0xe0c] ss:$16 sps:$4 sm:$0xff]   ;;  %v8158_v16 = vld [vmem:[#allocation5 + $0xc08] ss:$16 sps:$4 sm:$0xff]  }
 0x283   :  { %5511 = vmatpush2.bf16.msra.mxu0 %v8098_v17  ;;  %v8161_v17 = vld [vmem:[#allocation5 + $0xe08] ss:$16 sps:$4 sm:$0xff]  }
 0x284   :  { %5552 = vmatpush2.bf16.msra.mxu1 %v8101_v56  ;;  %5512 = vmatprep.subr.bf16.mxu0 %v8106_v59  ;;  %v8166_v56 = vld [vmem:[#allocation5 + $0xdec] ss:$16 sps:$4 sm:$0xff]  }
 0x285   :  { %5553 = vmatprep.subr.bf16.mxu1 %v8109_v60  ;;  %v8169_v59 = vld [vmem:[#allocation5 + $0xfec] ss:$16 sps:$4 sm:$0xff]   ;;  %v8164_v60 = vld [vmem:[#allocation5 + $0xde8] ss:$16 sps:$4 sm:$0xff]  }
 0x287   :  { %5513 = vmatpush2.bf16.msra.mxu0 %v8104_v5  ;;  %v8167_v5 = vld [vmem:[#allocation5 + $0xfe8] ss:$16 sps:$4 sm:$0xff]  }
 0x288   :  { %5554 = vmatpush2.bf16.msra.mxu1 %v8107_v8  ;;  %5514 = vmatprep.subr.bf16.mxu0 %v8112_v10  ;;  %v8172_v8 = vld [vmem:[#allocation5 + $0xdcc] ss:$16 sps:$4 sm:$0xff]  }
 0x289   :  { %5555 = vmatprep.subr.bf16.mxu1 %v8115_v19  ;;  %v8175_v10 = vld [vmem:[#allocation5 + $0xfcc] ss:$16 sps:$4 sm:$0xff]   ;;  %v8170_v19 = vld [vmem:[#allocation5 + $0xdc8] ss:$16 sps:$4 sm:$0xff]  }
 0x28b   :  { %5515 = vmatpush2.bf16.msra.mxu0 %v8110_v24  ;;  %v8173_v24 = vld [vmem:[#allocation5 + $0xfc8] ss:$16 sps:$4 sm:$0xff]  }
 0x28c   :  { %5556 = vmatpush2.bf16.msra.mxu1 %v8113_v25  ;;  %5566 = vmatprep.subr.bf16.mxu0 %v8118_v11  ;;  %v8178_v25 = vld [vmem:[#allocation5 + $0xdac] ss:$16 sps:$4 sm:$0xff]  }
 0x28d   :  { %5607 = vmatprep.subr.bf16.mxu1 %v8121_v3  ;;  %v8181_v11 = vld [vmem:[#allocation5 + $0xfac] ss:$16 sps:$4 sm:$0xff]   ;;  %v8176_v3 = vld [vmem:[#allocation5 + $0xda8] ss:$16 sps:$4 sm:$0xff]  }
 0x28e   :  { %v5272_v15 = vpop.f32.mrf.mxu0  ;;  %5517 = vmatmul.mubr.bf16.vlgmr.msra.gmra.mxu0 %v8724_v38 }
 0x28f   :  { %v5313_v6 = vpop.f32.mrf.mxu1  ;;  %5558 = vmatmul.mubr.bf16.vlgmr.msra.gmra.mxu1 %v8728_v39  ;;  %v5273_v7 = vadd.f32 %v5272_v15, %v8837_v53  ;;  %5567 = vmatpush1.bf16.msra.mxu0 %v8116_v12  ;;  %v8179_v12 = vld [vmem:[#allocation5 + $0xfa8] ss:$16 sps:$4 sm:$0xff]  }
 0x290   :  { %5608 = vmatpush1.bf16.msra.mxu1 %v8119_v57  ;;  %v5274_v27 = vpop.f32.mrf.mxu0  ;;  %5568 = vmatprep.subr.bf16.mxu0 %v8124_v13  ;;  %v8184_v57 = vld [vmem:[#allocation5 + $0xd8c] ss:$16 sps:$4 sm:$0xff]   ;;  %v8185_v15 = vld [vmem:[#allocation5 + $0xf88] ss:$16 sps:$4 sm:$0xff]  }
 0x291   :  { %v5315_v26 = vpop.f32.mrf.mxu1  ;;  %5609 = vmatprep.subr.bf16.mxu1 %v8127_v14  ;;  %v8847_v36 = vadd.f32 %v5313_v6, %v5273_v7  ;;  %v5275_v37 = vadd.f32 %v5274_v27, %v8842_v58  ;;  %5598 = vmatprep.mubr.bf16.mxu0 %v8734_v44  ;;  %v8134_v58 = vld [vmem:[#allocation5 + $0xc88] ss:$16 sps:$4 sm:$0xff]   ;;  %v8187_v13 = vld [vmem:[#allocation5 + $0xf8c] ss:$16 sps:$4 sm:$0xff]  }
 0x292   :  { %5639 = vmatprep.mubr.bf16.mxu1 %v8738_v22  ;;  %v5276_v38 = vpop.f32.mrf.mxu0  ;;  %v8137_v44 = vld [vmem:[#allocation5 + $0xe88] ss:$16 sps:$4 sm:$0xff]   ;;  %v8142_v22 = vld [vmem:[#allocation5 + $0xc6c] ss:$16 sps:$4 sm:$0xff]  }
 0x293   :  { %v5317_v39 = vpop.f32.mrf.mxu1  ;;  %v8852_v53 = vadd.f32 %v5315_v26, %v5275_v37  ;;  %5569 = vmatpush1.bf16.msra.mxu0 %v8122_v20  ;;  %v8182_v14 = vld [vmem:[#allocation5 + $0xd88] ss:$16 sps:$4 sm:$0xff]   ;;  %v8190_v6 = vld [vmem:[#allocation5 + $0xd6c] ss:$16 sps:$4 sm:$0xff]  }
 0x294   :  { %5610 = vmatpush1.bf16.msra.mxu1 %v8125_v21  ;;  %v5277_v33 = vpop.f32.mrf.mxu0  ;;  %5570 = vmatprep.subr.bf16.mxu0 %v8130_v29  ;;  %v8193_v7 = vld [vmem:[#allocation5 + $0xf6c] ss:$16 sps:$4 sm:$0xff]   ;;  %v8188_v20 = vld [vmem:[#allocation5 + $0xd68] ss:$16 sps:$4 sm:$0xff]  }
 0x295   :  { %v5318_v31 = vpop.f32.mrf.mxu1  ;;  %5611 = vmatprep.subr.bf16.mxu1 %v8133_v18  ;;  %v8191_v21 = vld [vmem:[#allocation5 + $0xf68] ss:$16 sps:$4 sm:$0xff]   ;;  %v8196_v27 = vld [vmem:[#allocation5 + $0xd4c] ss:$16 sps:$4 sm:$0xff]  }
 0x296   :  { %v8199_v26 = vld [vmem:[#allocation5 + $0xf4c] ss:$16 sps:$4 sm:$0xff]   ;;  %v8194_v29 = vld [vmem:[#allocation5 + $0xd48] ss:$16 sps:$4 sm:$0xff]  }
 0x297   :  { %5571 = vmatpush1.bf16.msra.mxu0 %v8128_v30  ;;  %v8197_v18 = vld [vmem:[#allocation5 + $0xf48] ss:$16 sps:$4 sm:$0xff]   ;;  %v8202_v37 = vld [vmem:[#allocation5 + $0xd2c] ss:$16 sps:$4 sm:$0xff]  }
 0x298   :  { %5612 = vmatpush1.bf16.msra.mxu1 %v8131_v32  ;;  %5572 = vmatprep.subr.bf16.mxu0 %v8136_v28  ;;  %v8205_v38 = vld [vmem:[#allocation5 + $0xf2c] ss:$16 sps:$4 sm:$0xff]   ;;  %v8200_v39 = vld [vmem:[#allocation5 + $0xd28] ss:$16 sps:$4 sm:$0xff]  }
 0x299   :  { %5613 = vmatprep.subr.bf16.mxu1 %v8139_v34  ;;  %v8203_v30 = vld [vmem:[#allocation5 + $0xf28] ss:$16 sps:$4 sm:$0xff]   ;;  %v8208_v32 = vld [vmem:[#allocation5 + $0xd0c] ss:$16 sps:$4 sm:$0xff]   ;;  %v894_v34 = vsub.s32 2, %v8744_v54 }
 0x29a   :  { %v8211_v33 = vld [vmem:[#allocation5 + $0xf0c] ss:$16 sps:$4 sm:$0xff]   ;;  %v8206_v31 = vld [vmem:[#allocation5 + $0xd08] ss:$16 sps:$4 sm:$0xff]  }
 0x29b   :  { %5573 = vmatpush1.bf16.msra.mxu0 %v8134_v58  ;;  %v8209_v28 = vld [vmem:[#allocation5 + $0xf08] ss:$16 sps:$4 sm:$0xff]   ;;  %v8214_v58 = vld [vmem:[#allocation5 + $0x10ec] ss:$16 sps:$4 sm:$0xff]  }
 0x29c   :  { %5614 = vmatpush1.bf16.msra.mxu1 %v8137_v44  ;;  %5574 = vmatprep.subr.bf16.mxu0 %v8142_v22  ;;  %v8217_v44 = vld [vmem:[#allocation5 + $0x12ec] ss:$16 sps:$4 sm:$0xff]   ;;  %v898_v22 = vsub.s32 3, %v8744_v54  ;;  %v8218_v54 = vld [vmem:[#allocation5 + $0x10c8] ss:$16 sps:$4 sm:$0xff]  }
 0x29d   :  { %5615 = vmatprep.subr.bf16.mxu1 %v8145_v47  ;;  %v8448_v47 = vld [vmem:[#allocation7] sm:$0xf] }
 0x29f   :  { %5575 = vmatpush1.bf16.msra.mxu0 %v8140_v51  ;;  %v895_v51 = vrot.slane %v8448_v47, %v894_v34  ;;  %v8269_v34 = vld [vmem:[#allocation5 + $0x13c8] ss:$16 sps:$4 sm:$0xff]  }
 0x2a0   :  { %5616 = vmatpush1.bf16.msra.mxu1 %v8143_v41  ;;  %5576 = vmatprep.subr.bf16.mxu0 %v8148_v42  ;;  %v8212_v41 = vld [vmem:[#allocation5 + $0x10e8] ss:$16 sps:$4 sm:$0xff]  }
 0x2a1   :  { %5617 = vmatprep.subr.bf16.mxu1 %v8151_v43  ;;  %v8215_v42 = vld [vmem:[#allocation5 + $0x12e8] ss:$16 sps:$4 sm:$0xff]   ;;  %v8220_v43 = vld [vmem:[#allocation5 + $0x10cc] ss:$16 sps:$4 sm:$0xff]  }
 0x2a3   :  { %5577 = vmatpush1.bf16.msra.mxu0 %v8146_v23  ;;  %v8223_v23 = vld [vmem:[#allocation5 + $0x12cc] ss:$16 sps:$4 sm:$0xff]  }
 0x2a4   :  { %5618 = vmatpush1.bf16.msra.mxu1 %v8149_v45  ;;  %5578 = vmatprep.subr.bf16.mxu0 %v8154_v46  ;;  %v899_v45 = vrot.slane %v8448_v47, %v898_v22  ;;  %v8272_v22 = vld [vmem:[#allocation5 + $0x11a8] ss:$16 sps:$4 sm:$0xff]  }
 0x2a5   :  { %5619 = vmatprep.subr.bf16.mxu1 %v8157_v48  ;;  %v8275_v47 = vld [vmem:[#allocation5 + $0x13a8] ss:$16 sps:$4 sm:$0xff]  }
 0x2a7   :  { %5579 = vmatpush1.bf16.msra.mxu0 %v8152_v49 }
 0x2a8   :  { %5620 = vmatpush1.bf16.msra.mxu1 %v8155_v50  ;;  %5580 = vmatprep.subr.bf16.mxu0 %v8160_v52  ;;  %v8221_v50 = vld [vmem:[#allocation5 + $0x12c8] ss:$16 sps:$4 sm:$0xff]  }
 0x2a9   :  { %5621 = vmatprep.subr.bf16.mxu1 %v8163_v55 }
 0x2ab   :  { %5581 = vmatpush1.bf16.msra.mxu0 %v8158_v16  ;;  %v8226_v16 = vld [vmem:[#allocation5 + $0x10ac] ss:$16 sps:$4 sm:$0xff]  }
 0x2ac   :  { %5622 = vmatpush1.bf16.msra.mxu1 %v8161_v17  ;;  %5582 = vmatprep.subr.bf16.mxu0 %v8166_v56  ;;  %v8229_v17 = vld [vmem:[#allocation5 + $0x12ac] ss:$16 sps:$4 sm:$0xff]  }
 0x2ad   :  { %5623 = vmatprep.subr.bf16.mxu1 %v8169_v59 }
 0x2af   :  { %5583 = vmatpush2.bf16.msra.mxu0 %v8164_v60 }
 0x2b0   :  { %5624 = vmatpush2.bf16.msra.mxu1 %v8167_v5  ;;  %5584 = vmatprep.subr.bf16.mxu0 %v8172_v8  ;;  %v8224_v5 = vld [vmem:[#allocation5 + $0x10a8] ss:$16 sps:$4 sm:$0xff]  }
 0x2b1   :  { %5625 = vmatprep.subr.bf16.mxu1 %v8175_v10  ;;  %v8227_v8 = vld [vmem:[#allocation5 + $0x12a8] ss:$16 sps:$4 sm:$0xff]  }
 0x2b3   :  { %5585 = vmatpush2.bf16.msra.mxu0 %v8170_v19 }
 0x2b4   :  { %5626 = vmatpush2.bf16.msra.mxu1 %v8173_v24  ;;  %5586 = vmatprep.subr.bf16.mxu0 %v8178_v25  ;;  %v8232_v24 = vld [vmem:[#allocation5 + $0x108c] ss:$16 sps:$4 sm:$0xff]  }
 0x2b5   :  { %5627 = vmatprep.subr.bf16.mxu1 %v8181_v11  ;;  %v8235_v25 = vld [vmem:[#allocation5 + $0x128c] ss:$16 sps:$4 sm:$0xff]   ;;  %v8230_v11 = vld [vmem:[#allocation5 + $0x1088] ss:$16 sps:$4 sm:$0xff]  }
 0x2b7   :  { %5587 = vmatpush2.bf16.msra.mxu0 %v8176_v3  ;;  %v8241_v3 = vld [vmem:[#allocation5 + $0x126c] ss:$16 sps:$4 sm:$0xff]  }
 0x2b8   :  { %5628 = vmatpush2.bf16.msra.mxu1 %v8179_v12  ;;  %5588 = vmatprep.subr.bf16.mxu0 %v8184_v57  ;;  %v8236_v12 = vld [vmem:[#allocation5 + $0x1068] ss:$16 sps:$4 sm:$0xff]  }
 0x2b9   :  { %5629 = vmatprep.subr.bf16.mxu1 %v8187_v13  ;;  %v8239_v57 = vld [vmem:[#allocation5 + $0x1268] ss:$16 sps:$4 sm:$0xff]   ;;  %v8244_v13 = vld [vmem:[#allocation5 + $0x104c] ss:$16 sps:$4 sm:$0xff]  }
 0x2bb   :  { %5589 = vmatpush2.bf16.msra.mxu0 %v8182_v14  ;;  %v8247_v14 = vld [vmem:[#allocation5 + $0x124c] ss:$16 sps:$4 sm:$0xff]  }
 0x2bc   :  { %5630 = vmatpush2.bf16.msra.mxu1 %v8185_v15  ;;  %5590 = vmatprep.subr.bf16.mxu0 %v8190_v6  ;;  %v8242_v15 = vld [vmem:[#allocation5 + $0x1048] ss:$16 sps:$4 sm:$0xff]  }
 0x2bd   :  { %5631 = vmatprep.subr.bf16.mxu1 %v8193_v7  ;;  %v8245_v6 = vld [vmem:[#allocation5 + $0x1248] ss:$16 sps:$4 sm:$0xff]   ;;  %v8250_v7 = vld [vmem:[#allocation5 + $0x102c] ss:$16 sps:$4 sm:$0xff]  }
 0x2bf   :  { %5591 = vmatpush2.bf16.msra.mxu0 %v8188_v20  ;;  %v8253_v20 = vld [vmem:[#allocation5 + $0x122c] ss:$16 sps:$4 sm:$0xff]  }
 0x2c0   :  { %5632 = vmatpush2.bf16.msra.mxu1 %v8191_v21  ;;  %5592 = vmatprep.subr.bf16.mxu0 %v8196_v27  ;;  %v8248_v21 = vld [vmem:[#allocation5 + $0x1028] ss:$16 sps:$4 sm:$0xff]  }
 0x2c1   :  { %5633 = vmatprep.subr.bf16.mxu1 %v8199_v26  ;;  %v8251_v27 = vld [vmem:[#allocation5 + $0x1228] ss:$16 sps:$4 sm:$0xff]   ;;  %v8256_v26 = vld [vmem:[#allocation5 + $0x100c] ss:$16 sps:$4 sm:$0xff]  }
 0x2c3   :  { %5593 = vmatpush2.bf16.msra.mxu0 %v8194_v29  ;;  %v8259_v29 = vld [vmem:[#allocation5 + $0x120c] ss:$16 sps:$4 sm:$0xff]  }
 0x2c4   :  { %5634 = vmatpush2.bf16.msra.mxu1 %v8197_v18  ;;  %5594 = vmatprep.subr.bf16.mxu0 %v8202_v37  ;;  %v8254_v18 = vld [vmem:[#allocation5 + $0x1008] ss:$16 sps:$4 sm:$0xff]  }
 0x2c5   :  { %5635 = vmatprep.subr.bf16.mxu1 %v8205_v38  ;;  %v8257_v37 = vld [vmem:[#allocation5 + $0x1208] ss:$16 sps:$4 sm:$0xff]   ;;  %v8262_v38 = vld [vmem:[#allocation5 + $0x11ec] ss:$16 sps:$4 sm:$0xff]  }
 0x2c7   :  { %5595 = vmatpush2.bf16.msra.mxu0 %v8200_v39  ;;  %v8265_v39 = vld [vmem:[#allocation5 + $0x13ec] ss:$16 sps:$4 sm:$0xff]  }
 0x2c8   :  { %5636 = vmatpush2.bf16.msra.mxu1 %v8203_v30  ;;  %5596 = vmatprep.subr.bf16.mxu0 %v8208_v32  ;;  %v8260_v30 = vld [vmem:[#allocation5 + $0x11e8] ss:$16 sps:$4 sm:$0xff]  }
 0x2c9   :  { %5637 = vmatprep.subr.bf16.mxu1 %v8211_v33  ;;  %v8263_v32 = vld [vmem:[#allocation5 + $0x13e8] ss:$16 sps:$4 sm:$0xff]   ;;  %v8268_v33 = vld [vmem:[#allocation5 + $0x11cc] ss:$16 sps:$4 sm:$0xff]  }
 0x2cb   :  { %5597 = vmatpush2.bf16.msra.mxu0 %v8206_v31  ;;  %v8271_v31 = vld [vmem:[#allocation5 + $0x13cc] ss:$16 sps:$4 sm:$0xff]  }
 0x2cc   :  { %5638 = vmatpush2.bf16.msra.mxu1 %v8209_v28  ;;  %5648 = vmatprep.subr.bf16.mxu0 %v8214_v58  ;;  %v8266_v28 = vld [vmem:[#allocation5 + $0x11c8] ss:$16 sps:$4 sm:$0xff]   ;;  %v8274_v58 = vld [vmem:[#allocation5 + $0x11ac] ss:$16 sps:$4 sm:$0xff]  }
 0x2cd   :  { %5689 = vmatprep.subr.bf16.mxu1 %v8217_v44  ;;  %v8277_v44 = vld [vmem:[#allocation5 + $0x13ac] ss:$16 sps:$4 sm:$0xff]  }
 0x2ce   :  { %v5354_v46 = vpop.f32.mrf.mxu0  ;;  %5599 = vmatmul.mubr.bf16.vlgmr.msra.gmra.mxu0 %v8750_v0 }
 0x2cf   :  { %v5395_v48 = vpop.f32.mrf.mxu1  ;;  %5640 = vmatmul.mubr.bf16.vlgmr.msra.gmra.mxu1 %v8754_v1  ;;  %v5355_v49 = vadd.f32 %v5354_v46, %v895_v51  ;;  %5649 = vmatpush1.bf16.msra.mxu0 %v8212_v41  ;;  %v8280_v51 = vld [vmem:[#allocation5 + $0x118c] ss:$16 sps:$4 sm:$0xff]   ;;  %v8284_v46 = vld [vmem:[#allocation5 + $0x1168] ss:$16 sps:$4 sm:$0xff]  }
 0x2d0   :  { %5690 = vmatpush1.bf16.msra.mxu1 %v8215_v42  ;;  %v5356_v52 = vpop.f32.mrf.mxu0  ;;  %5650 = vmatprep.subr.bf16.mxu0 %v8220_v43  ;;  %v8283_v41 = vld [vmem:[#allocation5 + $0x138c] ss:$16 sps:$4 sm:$0xff]   ;;  %v8278_v42 = vld [vmem:[#allocation5 + $0x1188] ss:$16 sps:$4 sm:$0xff]  }
 0x2d1   :  { %v5397_v55 = vpop.f32.mrf.mxu1  ;;  %5691 = vmatprep.subr.bf16.mxu1 %v8223_v23  ;;  %v8858_v56 = vadd.f32 %v5395_v48, %v5355_v49  ;;  %v5357_v59 = vadd.f32 %v5356_v52, %v899_v45  ;;  %5680 = vmatprep.mubr.bf16.mxu0 %v8762_v35  ;;  %v8233_v35 = vld [vmem:[#allocation5 + $0x1288] ss:$16 sps:$4 sm:$0xff]   ;;  %v8286_v23 = vld [vmem:[#allocation5 + $0x116c] ss:$16 sps:$4 sm:$0xff]  }
 0x2d2   :  { %5721 = vmatprep.mubr.bf16.mxu1 %v8766_v40  ;;  %v5358_v0 = vpop.f32.mrf.mxu0  ;;  %v8238_v40 = vld [vmem:[#allocation5 + $0x106c] ss:$16 sps:$4 sm:$0xff]   ;;  %v8281_v43 = vld [vmem:[#allocation5 + $0x1388] ss:$16 sps:$4 sm:$0xff]  }
 0x2d3   :  { %v5399_v1 = vpop.f32.mrf.mxu1  ;;  %v8862_v60 = vadd.f32 %v5397_v55, %v5357_v59  ;;  %5651 = vmatpush1.bf16.msra.mxu0 %v8218_v54  ;;  %v8289_v45 = vld [vmem:[#allocation5 + $0x136c] ss:$16 sps:$4 sm:$0xff]   ;;  %v8287_v48 = vld [vmem:[#allocation5 + $0x1368] ss:$16 sps:$4 sm:$0xff]  }
 0x2d4   :  { %5692 = vmatpush1.bf16.msra.mxu1 %v8221_v50  ;;  %v5359_v10 = vpop.f32.mrf.mxu0  ;;  %5652 = vmatprep.subr.bf16.mxu0 %v8226_v16  ;;  %v8292_v49 = vld [vmem:[#allocation5 + $0x114c] ss:$16 sps:$4 sm:$0xff]   ;;  %v8290_v50 = vld [vmem:[#allocation5 + $0x1148] ss:$16 sps:$4 sm:$0xff]  }
 0x2d5   :  { %v5400_v19 = vpop.f32.mrf.mxu1  ;;  %5693 = vmatprep.subr.bf16.mxu1 %v8229_v17  ;;  %v8295_v54 = vld [vmem:[#allocation5 + $0x134c] ss:$16 sps:$4 sm:$0xff]   ;;  %v8293_v52 = vld [vmem:[#allocation5 + $0x1348] ss:$16 sps:$4 sm:$0xff]  }
 0x2d6   :  { %v8298_v55 = vld [vmem:[#allocation5 + $0x112c] ss:$16 sps:$4 sm:$0xff]   ;;  %v8296_v17 = vld [vmem:[#allocation5 + $0x1128] ss:$16 sps:$4 sm:$0xff]  }
 0x2d7   :  { %5653 = vmatpush1.bf16.msra.mxu0 %v8224_v5  ;;  %v8301_v16 = vld [vmem:[#allocation5 + $0x132c] ss:$16 sps:$4 sm:$0xff]   ;;  %v8299_v59 = vld [vmem:[#allocation5 + $0x1328] ss:$16 sps:$4 sm:$0xff]  }
 0x2d8   :  { %5694 = vmatpush1.bf16.msra.mxu1 %v8227_v8  ;;  %5654 = vmatprep.subr.bf16.mxu0 %v8232_v24  ;;  %v8304_v0 = vld [vmem:[#allocation5 + $0x110c] ss:$16 sps:$4 sm:$0xff]   ;;  %v8302_v5 = vld [vmem:[#allocation5 + $0x1108] ss:$16 sps:$4 sm:$0xff]  }
 0x2d9   :  { %5695 = vmatprep.subr.bf16.mxu1 %v8235_v25  ;;  %v8307_v1 = vld [vmem:[#allocation5 + $0x130c] ss:$16 sps:$4 sm:$0xff]   ;;  %v8305_v8 = vld [vmem:[#allocation5 + $0x1308] ss:$16 sps:$4 sm:$0xff]  }
 0x2da   :  { %v8310_v10 = vld [vmem:[#allocation5 + $0x14ec] ss:$16 sps:$4 sm:$0xff]   ;;  %v8308_v24 = vld [vmem:[#allocation5 + $0x14e8] ss:$16 sps:$4 sm:$0xff]  }
 0x2db   :  { %5655 = vmatpush1.bf16.msra.mxu0 %v8230_v11  ;;  %v8313_v19 = vld [vmem:[#allocation5 + $0x16ec] ss:$16 sps:$4 sm:$0xff]   ;;  %v8311_v25 = vld [vmem:[#allocation5 + $0x16e8] ss:$16 sps:$4 sm:$0xff]  }
 0x2dc   :  { %5696 = vmatpush1.bf16.msra.mxu1 %v8233_v35  ;;  %5656 = vmatprep.subr.bf16.mxu0 %v8238_v40  ;;  %v8316_v11 = vld [vmem:[#allocation5 + $0x14cc] ss:$16 sps:$4 sm:$0xff]  }
 0x2dd   :  { %5697 = vmatprep.subr.bf16.mxu1 %v8241_v3  ;;  %v8319_v35 = vld [vmem:[#allocation5 + $0x16cc] ss:$16 sps:$4 sm:$0xff]  }
 0x2df   :  { %5657 = vmatpush1.bf16.msra.mxu0 %v8236_v12 }
 0x2e0   :  { %5698 = vmatpush1.bf16.msra.mxu1 %v8239_v57  ;;  %5658 = vmatprep.subr.bf16.mxu0 %v8244_v13  ;;  %v8314_v57 = vld [vmem:[#allocation5 + $0x14c8] ss:$16 sps:$4 sm:$0xff]  }
 0x2e1   :  { %5699 = vmatprep.subr.bf16.mxu1 %v8247_v14  ;;  %v8317_v13 = vld [vmem:[#allocation5 + $0x16c8] ss:$16 sps:$4 sm:$0xff]  }
 0x2e3   :  { %5659 = vmatpush1.bf16.msra.mxu0 %v8242_v15 }
 0x2e4   :  { %5700 = vmatpush1.bf16.msra.mxu1 %v8245_v6  ;;  %5660 = vmatprep.subr.bf16.mxu0 %v8250_v7  ;;  %v8322_v6 = vld [vmem:[#allocation5 + $0x14ac] ss:$16 sps:$4 sm:$0xff]  }
 0x2e5   :  { %5701 = vmatprep.subr.bf16.mxu1 %v8253_v20  ;;  %v8325_v7 = vld [vmem:[#allocation5 + $0x16ac] ss:$16 sps:$4 sm:$0xff]  }
 0x2e7   :  { %5661 = vmatpush1.bf16.msra.mxu0 %v8248_v21 }
 0x2e8   :  { %5702 = vmatpush1.bf16.msra.mxu1 %v8251_v27  ;;  %5662 = vmatprep.subr.bf16.mxu0 %v8256_v26  ;;  %v8320_v27 = vld [vmem:[#allocation5 + $0x14a8] ss:$16 sps:$4 sm:$0xff]  }
 0x2e9   :  { %5703 = vmatprep.subr.bf16.mxu1 %v8259_v29  ;;  %v8323_v26 = vld [vmem:[#allocation5 + $0x16a8] ss:$16 sps:$4 sm:$0xff]  }
 0x2eb   :  { %5663 = vmatpush1.bf16.msra.mxu0 %v8254_v18 }
 0x2ec   :  { %5704 = vmatpush1.bf16.msra.mxu1 %v8257_v37  ;;  %5664 = vmatprep.subr.bf16.mxu0 %v8262_v38  ;;  %v8328_v37 = vld [vmem:[#allocation5 + $0x148c] ss:$16 sps:$4 sm:$0xff]  }
 0x2ed   :  { %5705 = vmatprep.subr.bf16.mxu1 %v8265_v39  ;;  %v8331_v38 = vld [vmem:[#allocation5 + $0x168c] ss:$16 sps:$4 sm:$0xff]  }
 0x2ee   :  { %v8337_v39 = vld [vmem:[#allocation5 + $0x166c] ss:$16 sps:$4 sm:$0xff]  }
 0x2ef   :  { %5665 = vmatpush2.bf16.msra.mxu0 %v8260_v30  ;;  %v8332_v30 = vld [vmem:[#allocation5 + $0x1468] ss:$16 sps:$4 sm:$0xff]  }
 0x2f0   :  { %5706 = vmatpush2.bf16.msra.mxu1 %v8263_v32  ;;  %5666 = vmatprep.subr.bf16.mxu0 %v8268_v33  ;;  %v8335_v32 = vld [vmem:[#allocation5 + $0x1668] ss:$16 sps:$4 sm:$0xff]   ;;  %v8340_v33 = vld [vmem:[#allocation5 + $0x144c] ss:$16 sps:$4 sm:$0xff]  }
 0x2f1   :  { %5707 = vmatprep.subr.bf16.mxu1 %v8271_v31  ;;  %v8343_v31 = vld [vmem:[#allocation5 + $0x164c] ss:$16 sps:$4 sm:$0xff]  }
 0x2f3   :  { %5667 = vmatpush2.bf16.msra.mxu0 %v8266_v28  ;;  %v8338_v28 = vld [vmem:[#allocation5 + $0x1448] ss:$16 sps:$4 sm:$0xff]  }
 0x2f4   :  { %5708 = vmatpush2.bf16.msra.mxu1 %v8269_v34  ;;  %5668 = vmatprep.subr.bf16.mxu0 %v8274_v58  ;;  %v8341_v34 = vld [vmem:[#allocation5 + $0x1648] ss:$16 sps:$4 sm:$0xff]   ;;  %v8346_v58 = vld [vmem:[#allocation5 + $0x142c] ss:$16 sps:$4 sm:$0xff]  }
 0x2f5   :  { %5709 = vmatprep.subr.bf16.mxu1 %v8277_v44  ;;  %v8349_v44 = vld [vmem:[#allocation5 + $0x162c] ss:$16 sps:$4 sm:$0xff]  }
 0x2f7   :  { %5669 = vmatpush2.bf16.msra.mxu0 %v8272_v22  ;;  %v8344_v22 = vld [vmem:[#allocation5 + $0x1428] ss:$16 sps:$4 sm:$0xff]  }
 0x2f8   :  { %5710 = vmatpush2.bf16.msra.mxu1 %v8275_v47  ;;  %5670 = vmatprep.subr.bf16.mxu0 %v8280_v51  ;;  %v8347_v47 = vld [vmem:[#allocation5 + $0x1628] ss:$16 sps:$4 sm:$0xff]   ;;  %v8352_v51 = vld [vmem:[#allocation5 + $0x140c] ss:$16 sps:$4 sm:$0xff]  }
 0x2f9   :  { %5711 = vmatprep.subr.bf16.mxu1 %v8283_v41  ;;  %v8355_v41 = vld [vmem:[#allocation5 + $0x160c] ss:$16 sps:$4 sm:$0xff]  }
 0x2fb   :  { %5671 = vmatpush2.bf16.msra.mxu0 %v8278_v42  ;;  %v8350_v42 = vld [vmem:[#allocation5 + $0x1408] ss:$16 sps:$4 sm:$0xff]  }
 0x2fc   :  { %5712 = vmatpush2.bf16.msra.mxu1 %v8281_v43  ;;  %5672 = vmatprep.subr.bf16.mxu0 %v8286_v23  ;;  %v8353_v43 = vld [vmem:[#allocation5 + $0x1608] ss:$16 sps:$4 sm:$0xff]   ;;  %v8358_v23 = vld [vmem:[#allocation5 + $0x15ec] ss:$16 sps:$4 sm:$0xff]  }
 0x2fd   :  { %5713 = vmatprep.subr.bf16.mxu1 %v8289_v45  ;;  %v8361_v45 = vld [vmem:[#allocation5 + $0x17ec] ss:$16 sps:$4 sm:$0xff]  }
 0x2ff   :  { %5673 = vmatpush2.bf16.msra.mxu0 %v8284_v46  ;;  %v8356_v46 = vld [vmem:[#allocation5 + $0x15e8] ss:$16 sps:$4 sm:$0xff]  }
 0x300   :  { %5714 = vmatpush2.bf16.msra.mxu1 %v8287_v48  ;;  %5674 = vmatprep.subr.bf16.mxu0 %v8292_v49  ;;  %v8359_v48 = vld [vmem:[#allocation5 + $0x17e8] ss:$16 sps:$4 sm:$0xff]   ;;  %v8364_v49 = vld [vmem:[#allocation5 + $0x15cc] ss:$16 sps:$4 sm:$0xff]  }
 0x301   :  { %5715 = vmatprep.subr.bf16.mxu1 %v8295_v54  ;;  %v8367_v54 = vld [vmem:[#allocation5 + $0x17cc] ss:$16 sps:$4 sm:$0xff]  }
 0x303   :  { %5675 = vmatpush2.bf16.msra.mxu0 %v8290_v50  ;;  %v8362_v50 = vld [vmem:[#allocation5 + $0x15c8] ss:$16 sps:$4 sm:$0xff]  }
 0x304   :  { %5716 = vmatpush2.bf16.msra.mxu1 %v8293_v52  ;;  %5676 = vmatprep.subr.bf16.mxu0 %v8298_v55  ;;  %v8365_v52 = vld [vmem:[#allocation5 + $0x17c8] ss:$16 sps:$4 sm:$0xff]   ;;  %v8370_v55 = vld [vmem:[#allocation5 + $0x15ac] ss:$16 sps:$4 sm:$0xff]  }
 0x305   :  { %5717 = vmatprep.subr.bf16.mxu1 %v8301_v16  ;;  %v8373_v16 = vld [vmem:[#allocation5 + $0x17ac] ss:$16 sps:$4 sm:$0xff]  }
 0x307   :  { %5677 = vmatpush2.bf16.msra.mxu0 %v8296_v17  ;;  %v8368_v17 = vld [vmem:[#allocation5 + $0x15a8] ss:$16 sps:$4 sm:$0xff]  }
 0x308   :  { %5718 = vmatpush2.bf16.msra.mxu1 %v8299_v59  ;;  %5678 = vmatprep.subr.bf16.mxu0 %v8304_v0  ;;  %v8371_v59 = vld [vmem:[#allocation5 + $0x17a8] ss:$16 sps:$4 sm:$0xff]   ;;  %v8376_v0 = vld [vmem:[#allocation5 + $0x158c] ss:$16 sps:$4 sm:$0xff]  }
 0x309   :  { %5719 = vmatprep.subr.bf16.mxu1 %v8307_v1  ;;  %v8379_v1 = vld [vmem:[#allocation5 + $0x178c] ss:$16 sps:$4 sm:$0xff]  }
 0x30b   :  { %5679 = vmatpush2.bf16.msra.mxu0 %v8302_v5  ;;  %v8374_v5 = vld [vmem:[#allocation5 + $0x1588] ss:$16 sps:$4 sm:$0xff]  }
 0x30c   :  { %5720 = vmatpush2.bf16.msra.mxu1 %v8305_v8  ;;  %5730 = vmatprep.subr.bf16.mxu0 %v8310_v10  ;;  %v8377_v8 = vld [vmem:[#allocation5 + $0x1788] ss:$16 sps:$4 sm:$0xff]   ;;  %v8382_v10 = vld [vmem:[#allocation5 + $0x156c] ss:$16 sps:$4 sm:$0xff]  }
 0x30d   :  { %5771 = vmatprep.subr.bf16.mxu1 %v8313_v19  ;;  %v8385_v19 = vld [vmem:[#allocation5 + $0x176c] ss:$16 sps:$4 sm:$0xff]  }
 0x30e   :  { %v5436_v40 = vpop.f32.mrf.mxu0  ;;  %5681 = vmatmul.mubr.bf16.vlgmr.msra.gmra.mxu0 %v8782_v61 }
 0x30f   :  { %v5477_v3 = vpop.f32.mrf.mxu1  ;;  %5722 = vmatmul.mubr.bf16.vlgmr.msra.gmra.mxu1 %v8786_v62  ;;  %v5437_v12 = vadd.f32 %v5436_v40, %v8858_v56  ;;  %5731 = vmatpush1.bf16.msra.mxu0 %v8308_v24  ;;  %v8380_v24 = vld [vmem:[#allocation5 + $0x1568] ss:$16 sps:$4 sm:$0xff]  }
 0x310   :  { %5772 = vmatpush1.bf16.msra.mxu1 %v8311_v25  ;;  %v5438_v14 = vpop.f32.mrf.mxu0  ;;  %5732 = vmatprep.subr.bf16.mxu0 %v8316_v11  ;;  %v8383_v25 = vld [vmem:[#allocation5 + $0x1768] ss:$16 sps:$4 sm:$0xff]   ;;  %v8388_v11 = vld [vmem:[#allocation5 + $0x154c] ss:$16 sps:$4 sm:$0xff]  }
 0x311   :  { %v5479_v15 = vpop.f32.mrf.mxu1  ;;  %5773 = vmatprep.subr.bf16.mxu1 %v8319_v35  ;;  %v8867_v20 = vadd.f32 %v5477_v3, %v5437_v12  ;;  %v5439_v21 = vadd.f32 %v5438_v14, %v8862_v60  ;;  %5762 = vmatprep.mubr.bf16.mxu0 %v8790_v9  ;;  %v8326_v60 = vld [vmem:[#allocation5 + $0x1488] ss:$16 sps:$4 sm:$0xff]   ;;  %v8391_v35 = vld [vmem:[#allocation5 + $0x174c] ss:$16 sps:$4 sm:$0xff]  }
 0x312   :  { %5803 = vmatprep.mubr.bf16.mxu1 %v8794_v2  ;;  %v5440_v61 = vpop.f32.mrf.mxu0  ;;  %v8329_v9 = vld [vmem:[#allocation5 + $0x1688] ss:$16 sps:$4 sm:$0xff]   ;;  %v8334_v2 = vld [vmem:[#allocation5 + $0x146c] ss:$16 sps:$4 sm:$0xff]  }
 0x313   :  { %v5481_v62 = vpop.f32.mrf.mxu1  ;;  %v8872_v56 = vadd.f32 %v5479_v15, %v5439_v21  ;;  %5733 = vmatpush1.bf16.msra.mxu0 %v8314_v57  ;;  %v8386_v40 = vld [vmem:[#allocation5 + $0x1548] ss:$16 sps:$4 sm:$0xff]   ;;  %v8394_v12 = vld [vmem:[#allocation5 + $0x152c] ss:$16 sps:$4 sm:$0xff]  }
 0x314   :  { %5774 = vmatpush1.bf16.msra.mxu1 %v8317_v13  ;;  %v5441_v29 = vpop.f32.mrf.mxu0  ;;  %5734 = vmatprep.subr.bf16.mxu0 %v8322_v6  ;;  %v8389_v3 = vld [vmem:[#allocation5 + $0x1748] ss:$16 sps:$4 sm:$0xff]   ;;  %v8397_v57 = vld [vmem:[#allocation5 + $0x172c] ss:$16 sps:$4 sm:$0xff]   ;;  %v5813_v62 = vmax.f32 %v8852_v53, 0.0 }
 0x315   :  { %v5482_v18 = vpop.f32.mrf.mxu1  ;;  %5775 = vmatprep.subr.bf16.mxu1 %v8325_v7  ;;  %v8392_v13 = vld [vmem:[#allocation5 + $0x1528] ss:$16 sps:$4 sm:$0xff]   ;;  %v8400_v15 = vld [vmem:[#allocation5 + $0x150c] ss:$16 sps:$4 sm:$0xff]  }
 0x316   :  { %v8395_v14 = vld [vmem:[#allocation5 + $0x1728] ss:$16 sps:$4 sm:$0xff]   ;;  %v8403_v6 = vld [vmem:[#allocation5 + $0x170c] ss:$16 sps:$4 sm:$0xff]   ;;  %v5817_v29 = vpack.c.bf16 %v5813_v62, %v5813_v62 }
 0x317   :  { %5735 = vmatpush1.bf16.msra.mxu0 %v8320_v27  ;;  %v8398_v7 = vld [vmem:[#allocation5 + $0x1508] ss:$16 sps:$4 sm:$0xff]   ;;  %v8404_v61 = vld [vmem:[#allocation8 + $0x78] sm:$0xff]   ;;  %v8408_v53 = vld [vmem:[#allocation8 + $0x68] sm:$0xff]  }
 0x318   :  { %5776 = vmatpush1.bf16.msra.mxu1 %v8323_v26  ;;  %5736 = vmatprep.subr.bf16.mxu0 %v8328_v37  ;;  %v8401_v21 = vld [vmem:[#allocation5 + $0x1708] ss:$16 sps:$4 sm:$0xff]   ;;  %v8405_v27 = vld [vmem:[#allocation8 + $0x38] sm:$0xff]  }
 0x319   :  { %5777 = vmatprep.subr.bf16.mxu1 %v8331_v38  ;;  %v8406_v26 = vld [vmem:[#allocation8 + $0x70] sm:$0xff]  }
 0x31a   :  { %v8440_v62 = vld [vmem:[%s8915_s5 + $0x18] sm:$0xff]  }
 0x31b   :  { %5737 = vmatpush1.bf16.msra.mxu0 %v8326_v60  ;;  %v8407_v60 = vld [vmem:[#allocation8 + $0x30] sm:$0xff]  }
 0x31c   :  { %5778 = vmatpush1.bf16.msra.mxu1 %v8329_v9  ;;  %5738 = vmatprep.subr.bf16.mxu0 %v8334_v2 }
 0x31d   :  { %5779 = vmatprep.subr.bf16.mxu1 %v8337_v39 }
 0x31f   :  { %5739 = vmatpush1.bf16.msra.mxu0 %v8332_v30 }
 0x320   :  { %5780 = vmatpush1.bf16.msra.mxu1 %v8335_v32  ;;  %5740 = vmatprep.subr.bf16.mxu0 %v8340_v33 }
 0x321   :  { %5781 = vmatprep.subr.bf16.mxu1 %v8343_v31 }
 0x323   :  { %5741 = vmatpush1.bf16.msra.mxu0 %v8338_v28  ;;  %v8409_v28 = vld [vmem:[#allocation8 + $0x28] sm:$0xff]  }
 0x324   :  { %5782 = vmatpush1.bf16.msra.mxu1 %v8341_v34  ;;  %5742 = vmatprep.subr.bf16.mxu0 %v8346_v58  ;;  %v8421_v58 = vld [vmem:[#allocation8 + $0xb8] sm:$0xff]  }
 0x325   :  { %5783 = vmatprep.subr.bf16.mxu1 %v8349_v44  ;;  %v8422_v44 = vld [vmem:[#allocation8 + $0xf0] sm:$0xff]  }
 0x327   :  { %5743 = vmatpush1.bf16.msra.mxu0 %v8344_v22  ;;  %v8411_v22 = vld [vmem:[#allocation8 + $0x20] sm:$0xff]  }
 0x328   :  { %5784 = vmatpush1.bf16.msra.mxu1 %v8347_v47  ;;  %5744 = vmatprep.subr.bf16.mxu0 %v8352_v51  ;;  %v8423_v47 = vld [vmem:[#allocation8 + $0xb0] sm:$0xff]   ;;  %v8412_v51 = vld [vmem:[#allocation8 + $0x58] sm:$0xff]  }
 0x329   :  { %5785 = vmatprep.subr.bf16.mxu1 %v8355_v41  ;;  %v8413_v41 = vld [vmem:[#allocation8 + $0x18] sm:$0xff]  }
 0x32b   :  { %5745 = vmatpush1.bf16.msra.mxu0 %v8350_v42  ;;  %v8425_v42 = vld [vmem:[#allocation8 + $0xa8] sm:$0xff]  }
 0x32c   :  { %5786 = vmatpush1.bf16.msra.mxu1 %v8353_v43  ;;  %5746 = vmatprep.subr.bf16.mxu0 %v8358_v23  ;;  %v8414_v43 = vld [vmem:[#allocation8 + $0x50] sm:$0xff]   ;;  %v8426_v23 = vld [vmem:[#allocation8 + $0xe0] sm:$0xff]  }
 0x32d   :  { %5787 = vmatprep.subr.bf16.mxu1 %v8361_v45  ;;  %v8415_v45 = vld [vmem:[#allocation8 + $0x10] sm:$0xff]  }
 0x32f   :  { %5747 = vmatpush2.bf16.msra.mxu0 %v8356_v46  ;;  %v8427_v46 = vld [vmem:[#allocation8 + $0xa0] sm:$0xff]  }
 0x330   :  { %5788 = vmatpush2.bf16.msra.mxu1 %v8359_v48  ;;  %5748 = vmatprep.subr.bf16.mxu0 %v8364_v49  ;;  %v8416_v48 = vld [vmem:[#allocation8 + $0x48] sm:$0xff]   ;;  %v8428_v49 = vld [vmem:[#allocation8 + $0xd8] sm:$0xff]  }
 0x331   :  { %5789 = vmatprep.subr.bf16.mxu1 %v8367_v54  ;;  %v8417_v54 = vld [vmem:[#allocation8 + $0x8] sm:$0xff]  }
 0x333   :  { %5749 = vmatpush2.bf16.msra.mxu0 %v8362_v50  ;;  %v8429_v50 = vld [vmem:[#allocation8 + $0x98] sm:$0xff]  }
 0x334   :  { %5790 = vmatpush2.bf16.msra.mxu1 %v8365_v52  ;;  %5750 = vmatprep.subr.bf16.mxu0 %v8370_v55  ;;  %v8418_v52 = vld [vmem:[#allocation8 + $0x40] sm:$0xff]  }
 0x335   :  { %5791 = vmatprep.subr.bf16.mxu1 %v8373_v16  ;;  %v8419_v55 = vld [vmem:[#allocation8] sm:$0xff]   ;;  %v5812_v16 = vmax.f32 %v8847_v36, 0.0 }
 0x337   :  { %5751 = vmatpush2.bf16.msra.mxu0 %v8368_v17  ;;  %v5816_v17 = vpack.c.bf16 %v5812_v16, %v5812_v16 }
 0x338   :  { %5792 = vmatpush2.bf16.msra.mxu1 %v8371_v59  ;;  %5752 = vmatprep.subr.bf16.mxu0 %v8376_v0  ;;  %v8430_v59 = vld [vmem:[#allocation8 + $0xd0] sm:$0xff]  }
 0x339   :  { %5793 = vmatprep.subr.bf16.mxu1 %v8379_v1  ;;  %v8431_v0 = vld [vmem:[#allocation8 + $0x90] sm:$0xff]  }
 0x33b   :  { %5753 = vmatpush2.bf16.msra.mxu0 %v8374_v5 }
 0x33c   :  { %5794 = vmatpush2.bf16.msra.mxu1 %v8377_v8  ;;  %5754 = vmatprep.subr.bf16.mxu0 %v8382_v10 }
 0x33d   :  { %5795 = vmatprep.subr.bf16.mxu1 %v8385_v19 }
 0x33f   :  { %5755 = vmatpush2.bf16.msra.mxu0 %v8380_v24  ;;  %v8432_v24 = vld [vmem:[#allocation8 + $0xc8] sm:$0xff]  }
 0x340   :  { %5796 = vmatpush2.bf16.msra.mxu1 %v8383_v25  ;;  %5756 = vmatprep.subr.bf16.mxu0 %v8388_v11 }
 0x341   :  { %5797 = vmatprep.subr.bf16.mxu1 %v8391_v35  ;;  %v8433_v35 = vld [vmem:[#allocation8 + $0x88] sm:$0xff]  }
 0x343   :  { %5757 = vmatpush2.bf16.msra.mxu0 %v8386_v40 }
 0x344   :  { %5798 = vmatpush2.bf16.msra.mxu1 %v8389_v3  ;;  %5758 = vmatprep.subr.bf16.mxu0 %v8394_v12 }
 0x345   :  { %5799 = vmatprep.subr.bf16.mxu1 %v8397_v57 }
 0x347   :  { %5759 = vmatpush2.bf16.msra.mxu0 %v8392_v13  ;;  %v8434_v13 = vld [vmem:[#allocation8 + $0xc0] sm:$0xff]  }
 0x348   :  { %5800 = vmatpush2.bf16.msra.mxu1 %v8395_v14  ;;  %5760 = vmatprep.subr.bf16.mxu0 %v8400_v15  ;;  %v8435_v14 = vld [vmem:[#allocation8 + $0x80] sm:$0xff]   ;;  %v8436_v15 = vld [vmem:[%s8915_s5 + $0x38] sm:$0xff]  }
 0x349   :  { %5801 = vmatprep.subr.bf16.mxu1 %v8403_v6  ;;  %v8609_v6 = vmov 0.0  }
 0x34b   :  { %5761 = vmatpush2.bf16.msra.mxu0 %v8398_v7  ;;  %v8437_v7 = vld [vmem:[%s8915_s5 + $0x30] sm:$0xff]  }
 0x34c   :  { %5802 = vmatpush2.bf16.msra.mxu1 %v8401_v21  ;;  %7142 = vmatprep.subr.bf16.mxu0 %v8404_v61  ;;  %v8438_v21 = vld [vmem:[%s8915_s5 + $0x28] sm:$0xff]   ;;  %v8439_v61 = vld [vmem:[%s8915_s5 + $0x20] sm:$0xff]  }
 0x34e   :  { %v5518_v18 = vpop.f32.mrf.mxu0  ;;  %5763 = vmatmul.mubr.bf16.vlgmr.msra.gmra.mxu0 %v8808_v63  ;;  %v8410_v63 = vld [vmem:[#allocation8 + $0x60] sm:$0xff]  }
 0x34f   :  { %v5559_v37 = vpop.f32.mrf.mxu1  ;;  %5804 = vmatmul.mubr.bf16.vlgmr.msra.gmra.mxu1 %v8812_v4  ;;  %v5519_v38 = vadd.f32 %v5518_v18, %v8867_v20  ;;  %7143 = vmatpush3.bf16.msra.mxu0 %v8405_v27  ;;  %v8420_v20 = vld [vmem:[#allocation8 + $0xf8] sm:$0xff]  }
 0x350   :  { %6115 = vmatprep.mubr.bf16.mxu0 %v5817_v29  ;;  %v5520_v9 = vpop.f32.mrf.mxu0  ;;  %7144 = vmatprep.subr.bf16.mxu0 %v8406_v26 }
 0x351   :  { %v5561_v2 = vpop.f32.mrf.mxu1  ;;  %v5560_v39 = vadd.f32 %v5559_v37, %v5519_v38  ;;  %v5521_v30 = vadd.f32 %v5520_v9, %v8872_v56  ;;  %7164 = vmatprep.subr.bf16.mxu1 %v8420_v20  ;;  %v8424_v56 = vld [vmem:[#allocation8 + $0xe8] sm:$0xff]  }
 0x352   :  { %v5522_v32 = vpop.f32.mrf.mxu0  ;;  %7165 = vmatpush3.bf16.msra.mxu1 %v8421_v58 }
 0x353   :  { %v5563_v33 = vpop.f32.mrf.mxu1  ;;  %v5562_v31 = vadd.f32 %v5561_v2, %v5521_v30  ;;  %7145 = vmatpush3.bf16.msra.mxu0 %v8407_v60  ;;  %7166 = vmatprep.subr.bf16.mxu1 %v8422_v44 }
 0x354   :  { %v5523_v34 = vpop.f32.mrf.mxu0  ;;  %7146 = vmatprep.subr.bf16.mxu0 %v8408_v53 }
 0x355   :  { %v5564_v4 = vpop.f32.mrf.mxu1 }
 0x356   :  { %7167 = vmatpush3.bf16.msra.mxu1 %v8423_v47 }
 0x357   :  { %7147 = vmatpush3.bf16.msra.mxu0 %v8409_v28  ;;  %7168 = vmatprep.subr.bf16.mxu1 %v8424_v56 }
 0x358   :  { %7148 = vmatprep.subr.bf16.mxu0 %v8410_v63 }
 0x35a   :  { %7169 = vmatpush3.bf16.msra.mxu1 %v8425_v42 }
 0x35b   :  { %7149 = vmatpush3.bf16.msra.mxu0 %v8411_v22  ;;  %7170 = vmatprep.subr.bf16.mxu1 %v8426_v23 }
 0x35c   :  { %7150 = vmatprep.subr.bf16.mxu0 %v8412_v51 }
 0x35e   :  { %7171 = vmatpush3.bf16.msra.mxu1 %v8427_v46 }
 0x35f   :  { %7151 = vmatpush3.bf16.msra.mxu0 %v8413_v41  ;;  %7172 = vmatprep.subr.bf16.mxu1 %v8428_v49  ;;  %v8441_v49 = vld [vmem:[%s8915_s5 + $0x10] sm:$0xff]  }
 0x360   :  { %7152 = vmatprep.subr.bf16.mxu0 %v8414_v43 }
 0x362   :  { %7173 = vmatpush3.bf16.msra.mxu1 %v8429_v50  ;;  %v8443_v50 = vld [vmem:[%s8915_s5] sm:$0xff]  }
 0x363   :  { %7153 = vmatpush3.bf16.msra.mxu0 %v8415_v45  ;;  %7174 = vmatprep.subr.bf16.mxu1 %v8430_v59 }
 0x364   :  { %7154 = vmatprep.subr.bf16.mxu0 %v8416_v48 }
 0x366   :  { %7175 = vmatpush3.bf16.msra.mxu1 %v8431_v0 }
 0x367   :  { %7155 = vmatpush3.bf16.msra.mxu0 %v8417_v54  ;;  %7176 = vmatprep.subr.bf16.mxu1 %v8432_v24  ;;  %v8442_v54 = vld [vmem:[%s8915_s5 + $0x8] sm:$0xff]   ;;  %s8611_s5 = smov [#allocation13]  }
 0x368   :  { %7156 = vmatprep.subr.bf16.mxu0 %v8418_v52  ;;  %v7100_v52 = vld [vmem:[#allocation10] ss:$0 sm:$0xff]  ;;  %s6296_s22 = sshll.u32 %s8611_s5, 4  ;;  %s6297_s22 = int_to_ptr.vmem [resolvable:$true] %s6296_s22 }
 0x369   :  { %s8569_s23 = scalar_lea.vmem %s6297_s22, 128  ;;  %p8574_p3 = scmp.lt.s32.totalorder %s6297_s22, %s6297_s22 }
 0x36a   :  { %7177 = vmatpush3.bf16.msra.mxu1 %v8433_v35  ;;  %p8570_p2 = scmp.ne.s32.totalorder %s6297_s22, %s8569_s23  ;;  %p8575_p4 = scmp.lt.s32.totalorder %s8569_s23, %s8569_s23 }
 0x36b   :  { %7157 = vmatpush3.bf16.msra.mxu0 %v8419_v55  ;;  %7178 = vmatprep.subr.bf16.mxu1 %v8434_v13 }
 0x36c   :  { %7195 = vmatprep.subr.bf16.mxu0 %v8609_v6  ;;  %p8576_p5 = por %p8575_p4, %p8574_p3 }
 0x36e   :  { %6116 = vmatmul.mubr.bf16.vlgmr.msra.gmra.mxu0 %v5816_v17  ;;  %7179 = vmatpush3.bf16.msra.mxu1 %v8435_v14  ;;  %p8577_p6 = pnand %p8576_p5, %p8570_p2 }
 0x36f   :  { %7196 = vmatpush3.bf16.msra.mxu0 %v8436_v15  ;;  %7211 = vmatprep.mubr.msk.bf16.mxu0 %vm8610_vm0, %v8609_v6 }
 0x370   :  { %7197 = vmatprep.subr.bf16.mxu0 %v8609_v6 }
 0x373   :  { %7198 = vmatpush3.bf16.msra.mxu0 %v8437_v7 }
 0x374   :  { %7199 = vmatprep.subr.bf16.mxu0 %v8609_v6 }
 0x377   :  { %7200 = vmatpush3.bf16.msra.mxu0 %v8438_v21 }
 0x378   :  { %7201 = vmatprep.subr.bf16.mxu0 %v8609_v6 }
 0x37b   :  { %7202 = vmatpush3.bf16.msra.mxu0 %v8439_v61 }
 0x37c   :  { %7203 = vmatprep.subr.bf16.mxu0 %v8609_v6 }
 0x37f   :  { %7204 = vmatpush3.bf16.msra.mxu0 %v8440_v62 }
 0x380   :  { %7205 = vmatprep.subr.bf16.mxu0 %v8609_v6 }
 0x383   :  { %7206 = vmatpush3.bf16.msra.mxu0 %v8441_v49 }
 0x384   :  { %7207 = vmatprep.subr.bf16.mxu0 %v8609_v6 }
 0x387   :  { %7208 = vmatpush3.bf16.msra.mxu0 %v8442_v54 }
 0x388   :  { %7209 = vmatprep.subr.bf16.mxu0 %v8609_v6 }
 0x38b   :  { %7210 = vmatpush3.bf16.msra.mxu0 %v8443_v50 }
 0x38e   :  { %v5600_v1 = vpop.f32.mrf.mxu0 }
 0x38f   :  { %v5641_v5 = vpop.f32.mrf.mxu1  ;;  %v5601_v8 = vadd.f32 %v5600_v1, %v5560_v39 }
 0x390   :  { %v5602_v10 = vpop.f32.mrf.mxu0 }
 0x391   :  { %v5643_v19 = vpop.f32.mrf.mxu1  ;;  %v5642_v25 = vadd.f32 %v5641_v5, %v5601_v8  ;;  %v5603_v11 = vadd.f32 %v5602_v10, %v5562_v31 }
 0x392   :  { %v5604_v40 = vpop.f32.mrf.mxu0 }
 0x393   :  { %v5645_v3 = vpop.f32.mrf.mxu1  ;;  %v5644_v36 = vadd.f32 %v5643_v19, %v5603_v11  ;;  %v7133_v19 = vld [vmem:[#allocation11] ss:$0 sm:$0xff] }
 0x394   :  { %v5605_v12 = vpop.f32.mrf.mxu0 }
 0x395   :  { %v5646_v57 = vpop.f32.mrf.mxu1 }
 0x3ce   :  { %v5682_v27 = vpop.f32.mrf.mxu0 }
 0x3cf   :  { %v5723_v26 = vpop.f32.mrf.mxu1  ;;  %v5683_v29 = vadd.f32 %v5682_v27, %v5642_v25 }
 0x3d0   :  { %v5684_v18 = vpop.f32.mrf.mxu0 }
 0x3d1   :  { %v5725_v37 = vpop.f32.mrf.mxu1  ;;  %v5724_v38 = vadd.f32 %v5723_v26, %v5683_v29  ;;  %v5685_v39 = vadd.f32 %v5684_v18, %v5644_v36 }
 0x3d2   :  { %v5686_v60 = vpop.f32.mrf.mxu0 }
 0x3d3   :  { %v5727_v9 = vpop.f32.mrf.mxu1  ;;  %v5726_v33 = vadd.f32 %v5725_v37, %v5685_v39 }
 0x3d4   :  { %v5687_v2 = vpop.f32.mrf.mxu0 }
 0x3d5   :  { %v5728_v53 = vpop.f32.mrf.mxu1 }
 0x40e   :  { %v5764_v30 = vpop.f32.mrf.mxu0 }
 0x40f   :  { %v5805_v32 = vpop.f32.mrf.mxu1  ;;  %v5765_v31 = vadd.f32 %v5764_v30, %v5724_v38 }
 0x410   :  { %v5766_v28 = vpop.f32.mrf.mxu0 }
 0x411   :  { %v5807_v63 = vpop.f32.mrf.mxu1  ;;  %v5806_v34 = vadd.f32 %v5805_v32, %v5765_v31  ;;  %v5767_v4 = vadd.f32 %v5766_v28, %v5726_v33 }
 0x412   :  { %v5768_v20 = vpop.f32.mrf.mxu0 }
 0x413   :  { %v5809_v58 = vpop.f32.mrf.mxu1  ;;  %v5808_v44 = vadd.f32 %v5807_v63, %v5767_v4  ;;  %v5814_v22 = vmax.f32 %v5806_v34, 0.0 }
 0x414   :  { %v5769_v47 = vpop.f32.mrf.mxu0 }
 0x415   :  { %v5810_v51 = vpop.f32.mrf.mxu1  ;;  %v5815_v56 = vmax.f32 %v5808_v44, 0.0  ;;  %v5818_v42 = vpack.c.bf16 %v5814_v22, %v5814_v22 }
 0x417   :  { %v5819_v41 = vpack.c.bf16 %v5815_v56, %v5815_v56 }
 0x419   :  { %6155 = vmatprep.mubr.bf16.mxu1 %v5819_v41 }
 0x41a   :  { %6156 = vmatmul.mubr.bf16.vlgmr.msra.gmra.mxu1 %v5818_v42 }
 0x42e   :  { %v7158_v43 = vpop.f32.mrf.mxu0 }
 0x430   :  { %v7159_v23 = vpop.f32.mrf.mxu0 }
 0x431   :  { %v7160_v45 = vadd.f32 %v7159_v23, %v7158_v43 }
 0x432   :  { %v7161_v46 = vpop.f32.mrf.mxu0 }
 0x433   :  { %v6118_v17 = vadd.f32 %v7160_v45, %v7100_v52 }
 0x434   :  { %v7162_v48 = vpop.f32.mrf.mxu0 }
 0x4da   :  { %v7180_v55 = vpop.f32.mrf.mxu1 }
 0x4dc   :  { %v7181_v16 = vpop.f32.mrf.mxu1 }
 0x4dd   :  { %v7182_v59 = vadd.f32 %v7181_v16, %v7180_v55 }
 0x4de   :  { %v7183_v0 = vpop.f32.mrf.mxu1 }
 0x4df   :  { %v6158_v1 = vadd.f32 %v7182_v59, %v6118_v17 }
 0x4e0   :  { %v7184_v5 = vpop.f32.mrf.mxu1 }
 0x4e1   :  { %v6163_v8 = vmax.f32 %v6158_v1, 0.0 }
 0x4e3   :  { %v6164_v10 = vpack.c.bf16 %v6163_v8, %v6163_v8 }
 0x4e5   :  { %7212 = vmatmul.mubr.bf16.vlgmr.msra.gmra.mxu0 %v6164_v10 }
 0x5a5   :  { %v6270_v24 = vpop.f32.mrf.mxu0 }
 0x5a6   :  { %v6271_v25 = vadd.f32 %v7133_v19, %v6270_v24 }
 0x5a7   :  { %v7213_v11 = vpop.f32.mrf.mxu0 }
 0x5a8   :  { %v6277_v35 = vsel %vm6276_vm1, %v6271_v25, -inf }
 0x5a9   :  { %6278 = vmax.xlane.f32.xlu0 %v6277_v35  ;;  %v6273_v40 = vpop.f32.mrf.mxu0 }
 0x5ab   :  { %v7214_v3 = vpop.f32.mrf.mxu0 }
 0x632   :  { %v6279_v36 = vpop.xlane.xlu0 %6278 }
 0x633   :  { %v6280_v12 = vsub.f32 %v6271_v25, %v6279_v36 }
 0x635   :  { %v6281_v57 = vmul.f32 1.442695, %v6280_v12 }
 0x637   :  { %8444 = vpow2.f32 %v6281_v57 }
 0x644   :  { %v8445_v13 = vpop.eup %8444 }
 0x645   :  { %v6283_v14 = vsel %vm6276_vm1, %v8445_v13, 0.0 }
 0x646   :  { %6284 = vadd.xlane.f32.xlu0 %v6283_v14 }
 0x6cf   :  { %v6285_v15 = vpop.xlane.xlu0 %6284 }
 0x6d0   :  { %8446 = vlog2.f32 %v6285_v15 }
 0x6dd   :  { %v8447_v6 = vpop.eup %8446 }
 0x6de   :  { %v6287_v7 = vmul.f32 0.6931472, %v8447_v6 }
 0x6e0   :  { %v6288_v21 = vsub.f32 %v6280_v12, %v6287_v7 }
 0x6e2   :  { %6289 = vst.msk [vmem:[#allocation13] sm:$0xff] %vm6276_vm1, %v6288_v21 }
 0x6e3   :  { %8580 = shalt.err (!%p8577_p6)
}
 0x6e4   :  { %6299 = dma.vmem_to_hbm [thread:$0]  %s6297_s22, 128, %s8917_s7, [#allocation4]  }
 0x6e5   :  { %8597 = dma.done.wait [#allocation4], 128  }
 0x6e6   :  { %8598 = vsyncadd [#allocation4], 4294967168 }
 0x6e7   :  { %6303 = vsyncpa [#allocation3], 1 }
 0x6e8   :  { %6304 = vsyncpa [#allocation6], 1 }
 0x6e9   :  { %6305 = vsyncpa [#allocation9], 1 }
 0x6ea   :  { %6306 = vsyncpa [#allocation12], 1 }
 0x6eb   :  { %6307 = vsyncpa [#allocation4], 1 }

</bundles_post_ra>
